<compile_context>
chip_gen: v7x
topology: tpu7x:2x2x1
jax: 0.10.0
libtpu: 0.0.40
codegen_flags: <defaults>
</compile_context>

<pallas_src>
import math
import jax
import jax.numpy as jnp
from jax.experimental import pallas as pl
from jax.experimental.pallas import tpu as pltpu

# ---------------- model dimensions (small, consistent with the forward pass) ----------------
B, S, H = 2, 8, 32                 # batch, seq len, hidden size
NUM_HEADS, HEAD_DIM = 4, 8         # H = NUM_HEADS * HEAD_DIM
FFN = 4 * H
NUM_LAYERS = 2
VOCAB, MAX_POS = 100, 32
NUM_SYNDROMES, NUM_DISEASES, NUM_HERBS = 16, 8, 128
LN_EPS = 1e-12
PACK = 256                         # lane-dense packed output: [syn(16) | dis(8) | pad | herbs(128)]


# ---------------- shared math helpers (usable inside kernels) ----------------
def _layer_norm(x, g, b, eps=LN_EPS):
    mu = jnp.mean(x, axis=-1, keepdims=True)
    var = jnp.mean((x - mu) ** 2, axis=-1, keepdims=True)
    return (x - mu) * jax.lax.rsqrt(var + eps) * g + b


def _gelu(x):
    return 0.5 * x * (1.0 + jnp.tanh(0.7978845608028654 * (x + 0.044715 * x * x * x)))


def _sigmoid(x):
    return 1.0 / (1.0 + jnp.exp(-x))


def _mm(x, w, b=None):
    """bf16-operand matmul (MXU-native on v6e/v7x) with f32 accumulation."""
    y = jnp.dot(x.astype(jnp.bfloat16), w.astype(jnp.bfloat16),
                preferred_element_type=jnp.float32)
    return y if b is None else y + b


# ---------------- single fused Pallas kernel: encoder layers + pooler + joint heads ----------------
def tcm_fused_kernel(x_ref, maskb_ref,
                     wq_ref, bq_ref, wk_ref, bk_ref, wv_ref, bv_ref,
                     wo_ref, bo_ref, ln1g_ref, ln1b_ref,
                     w1_ref, b1_ref, w2_ref, b2_ref, ln2g_ref, ln2b_ref,
                     pw_ref, pb_ref, syn_w_ref, syn_b_ref, dis_w_ref, dis_b_ref,
                     herb_w_ref, herb_b_ref, s2h_w_ref, s2h_b_ref,
                     d2h_w_ref, d2h_b_ref, g1_w_ref, g2_w_ref, g_b_ref,
                     out_ref):
    x2 = x_ref[...].astype(jnp.float32).reshape(B * S, H)   # [B*S, H]
    bias = maskb_ref[...][:, None, :]                       # [B, 1, S] additive attn bias
    scale = 1.0 / math.sqrt(HEAD_DIM)

    # ---- transformer encoder: static unroll over the 2 layers, all weights resident in VMEM ----
    for l in range(NUM_LAYERS):
        wo = wo_ref[l]
        q = _mm(x2, wq_ref[l], bq_ref[l]) * scale           # scale folded into q once
        k = _mm(x2, wk_ref[l], bk_ref[l])
        v = _mm(x2, wv_ref[l], bv_ref[l])
        q3 = q.reshape(B, S, H)
        k3 = k.reshape(B, S, H)
        v3 = v.reshape(B, S, H)

        attn = jnp.zeros((B * S, H), jnp.float32)
        for h in range(NUM_HEADS):                          # 4 static iters, batched over B
            sl = slice(h * HEAD_DIM, (h + 1) * HEAD_DIM)
            qh = q3[:, :, sl].astype(jnp.bfloat16)
            kh = k3[:, :, sl].astype(jnp.bfloat16)
            vh = v3[:, :, sl].astype(jnp.bfloat16)
            scores = jnp.einsum('bqd,bkd->bqk', qh, kh,
                                preferred_element_type=jnp.float32) + bias   # [B, S, S]
            m = jnp.max(scores, axis=-1, keepdims=True)
            e = jnp.exp(scores - m)
            probs = e * pl.reciprocal(jnp.sum(e, axis=-1, keepdims=True), approx=True)
            ctx = jnp.einsum('bqk,bkd->bqd', probs.astype(jnp.bfloat16), vh,
                             preferred_element_type=jnp.float32)             # [B, S, HEAD_DIM]
            # per-head row-slice of Wo: sum_h ctx_h @ Wo[h]  ==  concat(heads) @ Wo (no concat)
            attn = attn + _mm(ctx.reshape(B * S, HEAD_DIM), wo[sl, :])

        h1 = _layer_norm(x2 + attn + bo_ref[l], ln1g_ref[l], ln1b_ref[l])
        ffn = _mm(_gelu(_mm(h1, w1_ref[l], b1_ref[l])), w2_ref[l], b2_ref[l])
        x2 = _layer_norm(h1 + ffn, ln2g_ref[l], ln2b_ref[l])

    # ---- pooler + joint heads + knowledge transfer + gated fusion ----
    seq = x2.reshape(B, S, H)
    seq_pooled = jnp.mean(seq, axis=1)                      # sequence_output.mean(dim=1), [B, H]
    cls = seq[:, 0, :]                                      # CLS token, [B, H]
    pooled = jnp.tanh(_mm(cls, pw_ref[...], pb_ref[...]))   # BERT pooler

    # dropout is identity at inference time
    syn_logits = _mm(seq_pooled, syn_w_ref[...], syn_b_ref[...])      # [B, 16]
    dis_logits = _mm(pooled, dis_w_ref[...], dis_b_ref[...])          # [B, 8]
    herb_logits = _mm(seq_pooled, herb_w_ref[...], herb_b_ref[...])   # [B, 128]

    syn_probs = _sigmoid(syn_logits)
    m = jnp.max(dis_logits, axis=-1, keepdims=True)
    e = jnp.exp(dis_logits - m)
    dis_probs = e * pl.reciprocal(jnp.sum(e, axis=-1, keepdims=True), approx=True)

    syn_infl = _mm(syn_probs, s2h_w_ref[...], s2h_b_ref[...])         # [B, 128]
    dis_infl = _mm(dis_probs, d2h_w_ref[...], d2h_b_ref[...])         # [B, 128]

    # GatedFusion: gate = sigmoid(Linear(cat[x1, x2])) with the gate weight split into its
    # x1 / x2 halves (mathematically identical, avoids an in-kernel concat).
    gate = _sigmoid(_mm(syn_infl, g1_w_ref[...]) + _mm(dis_infl, g2_w_ref[...]) + g_b_ref[...])
    knowledge = gate * syn_infl + (1.0 - gate) * dis_infl

    pad = jnp.zeros((B, PACK - NUM_SYNDROMES - NUM_DISEASES - NUM_HERBS), jnp.float32)
    out_ref[...] = jnp.concatenate(
        [syn_logits, dis_logits, pad, herb_logits + knowledge], axis=-1
    ).astype(out_ref.dtype)                                           # one lane-dense [B, 256] store


def tcm_fused_call(x_emb, mask_bias, p):
    flat = [x_emb, mask_bias,
            p['wq'], p['bq'], p['wk'], p['bk'], p['wv'], p['bv'],
            p['wo'], p['bo'], p['ln1_g'], p['ln1_b'],
            p['w1'], p['b1'], p['w2'], p['b2'], p['ln2_g'], p['ln2_b'],
            p['pooler_w'], p['pooler_b'],
            p['syn_w'], p['syn_b'], p['dis_w'], p['dis_b'],
            p['herb_w'], p['herb_b'],
            p['s2h_w'], p['s2h_b'], p['d2h_w'], p['d2h_b'],
            p['gate_w1'], p['gate_w2'], p['gate_b']]
    vmem = pl.BlockSpec(memory_space=pltpu.MemorySpace.VMEM)
    packed = pl.pallas_call(
        tcm_fused_kernel,
        out_shape=jax.ShapeDtypeStruct((B, PACK), jnp.float32),
        in_specs=[vmem] * len(flat),
        out_specs=vmem,
    )(*flat)
    syn = packed[:, :NUM_SYNDROMES]
    dis = packed[:, NUM_SYNDROMES:NUM_SYNDROMES + NUM_DISEASES]
    herbs = packed[:, PACK - NUM_HERBS:]
    return syn, dis, herbs


# ---------------- deterministic parameter init (matmul weights bf16, rest f32) ----------------
def init_params(key):
    def nrm(k, shape, dtype=jnp.bfloat16, scale=0.02):
        return (scale * jax.random.normal(k, shape, jnp.float32)).astype(dtype)

    keys = iter(jax.random.split(key, 64))
    p = {
        # embeddings (gather glue stays in plain JAX, f32)
        'word_emb': nrm(next(keys), (VOCAB, H), jnp.float32),
        'pos_emb': nrm(next(keys), (MAX_POS, H), jnp.float32),
        'type_emb': nrm(next(keys), (2, H), jnp.float32),
        'emb_ln_g': jnp.ones((1, H), jnp.float32),
        'emb_ln_b': jnp.zeros((1, H), jnp.float32),
        # stacked encoder layers [NUM_LAYERS, ...]
        'wq': nrm(next(keys), (NUM_LAYERS, H, H)), 'bq': jnp.zeros((NUM_LAYERS, 1, H), jnp.float32),
        'wk': nrm(next(keys), (NUM_LAYERS, H, H)), 'bk': jnp.zeros((NUM_LAYERS, 1, H), jnp.float32),
        'wv': nrm(next(keys), (NUM_LAYERS, H, H)), 'bv': jnp.zeros((NUM_LAYERS, 1, H), jnp.float32),
        'wo': nrm(next(keys), (NUM_LAYERS, H, H)), 'bo': jnp.zeros((NUM_LAYERS, 1, H), jnp.float32),
        'ln1_g': jnp.ones((NUM_LAYERS, 1, H), jnp.float32),
        'ln1_b': jnp.zeros((NUM_LAYERS, 1, H), jnp.float32),
        'w1': nrm(next(keys), (NUM_LAYERS, H, FFN)), 'b1': jnp.zeros((NUM_LAYERS, 1, FFN), jnp.float32),
        'w2': nrm(next(keys), (NUM_LAYERS, FFN, H)), 'b2': jnp.zeros((NUM_LAYERS, 1, H), jnp.float32),
        'ln2_g': jnp.ones((NUM_LAYERS, 1, H), jnp.float32),
        'ln2_b': jnp.zeros((NUM_LAYERS, 1, H), jnp.float32),
        # pooler + heads (syndrome_attn / herbs_attn exist in __init__ but are unused in forward)
        'pooler_w': nrm(next(keys), (H, H)), 'pooler_b': jnp.zeros((1, H), jnp.float32),
        'syn_w': nrm(next(keys), (H, NUM_SYNDROMES)), 'syn_b': jnp.zeros((1, NUM_SYNDROMES), jnp.float32),
        'dis_w': nrm(next(keys), (H, NUM_DISEASES)), 'dis_b': jnp.zeros((1, NUM_DISEASES), jnp.float32),
        'herb_w': nrm(next(keys), (H, NUM_HERBS)), 'herb_b': jnp.zeros((1, NUM_HERBS), jnp.float32),
        's2h_w': nrm(next(keys), (NUM_SYNDROMES, NUM_HERBS)), 's2h_b': jnp.zeros((1, NUM_HERBS), jnp.float32),
        'd2h_w': nrm(next(keys), (NUM_DISEASES, NUM_HERBS)), 'd2h_b': jnp.zeros((1, NUM_HERBS), jnp.float32),
        'gate_w1': nrm(next(keys), (NUM_HERBS, NUM_HERBS)),
        'gate_w2': nrm(next(keys), (NUM_HERBS, NUM_HERBS)),
        'gate_b': jnp.zeros((1, NUM_HERBS), jnp.float32),
    }
    return p


# ---------------- full forward (mode='joint') ----------------
@jax.jit
def tcm_joint_forward(input_ids, attention_mask, params):
    # embedding lookup + LN: gather is glue, kept in plain JAX
    emb = (params['word_emb'][input_ids]
           + params['pos_emb'][:S][None, :, :]
           + params['type_emb'][0][None, None, :])
    x = _layer_norm(emb, params['emb_ln_g'][0], params['emb_ln_b'][0]).astype(jnp.float32)
    mask_bias = (1.0 - attention_mask.astype(jnp.float32)) * -10000.0   # [B, S]
    return tcm_fused_call(x, mask_bias, params)


if __name__ == "__main__":
    key = jax.random.PRNGKey(0)
    k_param, k_ids = jax.random.split(key)
    params = init_params(k_param)

    input_ids = jax.random.randint(k_ids, (B, S), 0, VOCAB, dtype=jnp.int32)
    attention_mask = jnp.ones((B, S), jnp.int32).at[1, -2:].set(0)

    syn, dis, herbs = tcm_joint_forward(input_ids, attention_mask, params)
    jax.block_until_ready((syn, dis, herbs))

    assert syn.shape == (B, NUM_SYNDROMES)
    assert dis.shape == (B, NUM_DISEASES)
    assert herbs.shape == (B, NUM_HERBS)
    assert jnp.all(jnp.isfinite(syn)) and jnp.all(jnp.isfinite(dis)) and jnp.all(jnp.isfinite(herbs))
    print("KERNEL_OK")
</pallas_src>

<mosaic_0001>
module attributes {stable_mosaic.version = 11 : i64} {
  func.func @tcm_fused_kernel(%arg0: memref<2x8x32xf32, #tpu.memory_space<vmem>>, %arg1: memref<2x8xf32, #tpu.memory_space<vmem>>, %arg2: memref<2x32x32xbf16, #tpu.memory_space<vmem>>, %arg3: memref<2x1x32xf32, #tpu.memory_space<vmem>>, %arg4: memref<2x32x32xbf16, #tpu.memory_space<vmem>>, %arg5: memref<2x1x32xf32, #tpu.memory_space<vmem>>, %arg6: memref<2x32x32xbf16, #tpu.memory_space<vmem>>, %arg7: memref<2x1x32xf32, #tpu.memory_space<vmem>>, %arg8: memref<2x32x32xbf16, #tpu.memory_space<vmem>>, %arg9: memref<2x1x32xf32, #tpu.memory_space<vmem>>, %arg10: memref<2x1x32xf32, #tpu.memory_space<vmem>>, %arg11: memref<2x1x32xf32, #tpu.memory_space<vmem>>, %arg12: memref<2x32x128xbf16, #tpu.memory_space<vmem>>, %arg13: memref<2x1x128xf32, #tpu.memory_space<vmem>>, %arg14: memref<2x128x32xbf16, #tpu.memory_space<vmem>>, %arg15: memref<2x1x32xf32, #tpu.memory_space<vmem>>, %arg16: memref<2x1x32xf32, #tpu.memory_space<vmem>>, %arg17: memref<2x1x32xf32, #tpu.memory_space<vmem>>, %arg18: memref<32x32xbf16, #tpu.memory_space<vmem>>, %arg19: memref<1x32xf32, #tpu.memory_space<vmem>>, %arg20: memref<32x16xbf16, #tpu.memory_space<vmem>>, %arg21: memref<1x16xf32, #tpu.memory_space<vmem>>, %arg22: memref<32x8xbf16, #tpu.memory_space<vmem>>, %arg23: memref<1x8xf32, #tpu.memory_space<vmem>>, %arg24: memref<32x128xbf16, #tpu.memory_space<vmem>>, %arg25: memref<1x128xf32, #tpu.memory_space<vmem>>, %arg26: memref<16x128xbf16, #tpu.memory_space<vmem>>, %arg27: memref<1x128xf32, #tpu.memory_space<vmem>>, %arg28: memref<8x128xbf16, #tpu.memory_space<vmem>>, %arg29: memref<1x128xf32, #tpu.memory_space<vmem>>, %arg30: memref<128x128xbf16, #tpu.memory_space<vmem>>, %arg31: memref<128x128xbf16, #tpu.memory_space<vmem>>, %arg32: memref<1x128xf32, #tpu.memory_space<vmem>>, %arg33: memref<2x256xf32, #tpu.memory_space<vmem>>) attributes {dimension_semantics = [], scalar_prefetch = 0 : i64, scratch_operands = 0 : i64, tpu.core_type = #tpu.core_type<tc>} {
    %c0 = arith.constant 0 : index
    %c0_0 = arith.constant 0 : index
    %c0_1 = arith.constant 0 : index
    %0 = vector.load %arg0[%c0, %c0_0, %c0_1] : memref<2x8x32xf32, #tpu.memory_space<vmem>>, vector<2x8x32xf32>
    %1 = vector.shape_cast %0 : vector<2x8x32xf32> to vector<16x32xf32>
    %c0_2 = arith.constant 0 : index
    %c0_3 = arith.constant 0 : index
    %2 = vector.load %arg1[%c0_2, %c0_3] : memref<2x8xf32, #tpu.memory_space<vmem>>, vector<2x8xf32>
    %3 = vector.shape_cast %2 : vector<2x8xf32> to vector<2x1x8xf32>
    %c0_4 = arith.constant 0 : index
    %c0_5 = arith.constant 0 : index
    %c0_6 = arith.constant 0 : index
    %4 = vector.load %arg8[%c0_4, %c0_5, %c0_6] : memref<2x32x32xbf16, #tpu.memory_space<vmem>>, vector<1x32x32xbf16>
    %5 = vector.shape_cast %4 : vector<1x32x32xbf16> to vector<32x32xbf16>
    %c0_7 = arith.constant 0 : index
    %c0_8 = arith.constant 0 : index
    %c0_9 = arith.constant 0 : index
    %6 = vector.load %arg2[%c0_7, %c0_8, %c0_9] : memref<2x32x32xbf16, #tpu.memory_space<vmem>>, vector<1x32x32xbf16>
    %7 = vector.shape_cast %6 : vector<1x32x32xbf16> to vector<32x32xbf16>
    %c0_10 = arith.constant 0 : index
    %c0_11 = arith.constant 0 : index
    %c0_12 = arith.constant 0 : index
    %8 = vector.load %arg3[%c0_10, %c0_11, %c0_12] : memref<2x1x32xf32, #tpu.memory_space<vmem>>, vector<1x1x32xf32>
    %9 = vector.shape_cast %8 : vector<1x1x32xf32> to vector<1x32xf32>
    %10 = arith.truncf %1 : vector<16x32xf32> to vector<16x32xbf16>
    %cst = arith.constant dense<0.000000e+00> : vector<16x32xf32>
    %11 = tpu.matmul %10, %7, %cst {dimension_numbers = #tpu.dot_dimension_numbers<[1], [0], [0], [1], [0, 0, 1, 1], [], []>} : vector<16x32xbf16>, vector<32x32xbf16>, vector<16x32xf32> -> vector<16x32xf32>
    %12 = vector.broadcast %9 : vector<1x32xf32> to vector<16x32xf32>
    %13 = arith.addf %11, %12 : vector<16x32xf32>
    %cst_13 = arith.constant 0.353553385 : f32
    %14 = vector.broadcast %cst_13 : f32 to vector<16x32xf32>
    %15 = arith.mulf %13, %14 : vector<16x32xf32>
    %c0_14 = arith.constant 0 : index
    %c0_15 = arith.constant 0 : index
    %c0_16 = arith.constant 0 : index
    %16 = vector.load %arg4[%c0_14, %c0_15, %c0_16] : memref<2x32x32xbf16, #tpu.memory_space<vmem>>, vector<1x32x32xbf16>
    %17 = vector.shape_cast %16 : vector<1x32x32xbf16> to vector<32x32xbf16>
    %c0_17 = arith.constant 0 : index
    %c0_18 = arith.constant 0 : index
    %c0_19 = arith.constant 0 : index
    %18 = vector.load %arg5[%c0_17, %c0_18, %c0_19] : memref<2x1x32xf32, #tpu.memory_space<vmem>>, vector<1x1x32xf32>
    %19 = vector.shape_cast %18 : vector<1x1x32xf32> to vector<1x32xf32>
    %20 = arith.truncf %1 : vector<16x32xf32> to vector<16x32xbf16>
    %cst_20 = arith.constant dense<0.000000e+00> : vector<16x32xf32>
    %21 = tpu.matmul %20, %17, %cst_20 {dimension_numbers = #tpu.dot_dimension_numbers<[1], [0], [0], [1], [0, 0, 1, 1], [], []>} : vector<16x32xbf16>, vector<32x32xbf16>, vector<16x32xf32> -> vector<16x32xf32>
    %22 = vector.broadcast %19 : vector<1x32xf32> to vector<16x32xf32>
    %23 = arith.addf %21, %22 : vector<16x32xf32>
    %c0_21 = arith.constant 0 : index
    %c0_22 = arith.constant 0 : index
    %c0_23 = arith.constant 0 : index
    %24 = vector.load %arg6[%c0_21, %c0_22, %c0_23] : memref<2x32x32xbf16, #tpu.memory_space<vmem>>, vector<1x32x32xbf16>
    %25 = vector.shape_cast %24 : vector<1x32x32xbf16> to vector<32x32xbf16>
    %c0_24 = arith.constant 0 : index
    %c0_25 = arith.constant 0 : index
    %c0_26 = arith.constant 0 : index
    %26 = vector.load %arg7[%c0_24, %c0_25, %c0_26] : memref<2x1x32xf32, #tpu.memory_space<vmem>>, vector<1x1x32xf32>
    %27 = vector.shape_cast %26 : vector<1x1x32xf32> to vector<1x32xf32>
    %28 = arith.truncf %1 : vector<16x32xf32> to vector<16x32xbf16>
    %cst_27 = arith.constant dense<0.000000e+00> : vector<16x32xf32>
    %29 = tpu.matmul %28, %25, %cst_27 {dimension_numbers = #tpu.dot_dimension_numbers<[1], [0], [0], [1], [0, 0, 1, 1], [], []>} : vector<16x32xbf16>, vector<32x32xbf16>, vector<16x32xf32> -> vector<16x32xf32>
    %30 = vector.broadcast %27 : vector<1x32xf32> to vector<16x32xf32>
    %31 = arith.addf %29, %30 : vector<16x32xf32>
    %32 = vector.shape_cast %15 : vector<16x32xf32> to vector<2x8x32xf32>
    %33 = vector.shape_cast %23 : vector<16x32xf32> to vector<2x8x32xf32>
    %34 = vector.shape_cast %31 : vector<16x32xf32> to vector<2x8x32xf32>
    %cst_28 = arith.constant 0.000000e+00 : f32
    %35 = vector.broadcast %cst_28 : f32 to vector<16x32xf32>
    %36 = vector.extract_strided_slice %32 {offsets = [0, 0, 0], sizes = [2, 8, 8], strides = [1, 1, 1]} : vector<2x8x32xf32> to vector<2x8x8xf32>
    %37 = arith.truncf %36 : vector<2x8x8xf32> to vector<2x8x8xbf16>
    %38 = vector.extract_strided_slice %33 {offsets = [0, 0, 0], sizes = [2, 8, 8], strides = [1, 1, 1]} : vector<2x8x32xf32> to vector<2x8x8xf32>
    %39 = arith.truncf %38 : vector<2x8x8xf32> to vector<2x8x8xbf16>
    %40 = vector.extract_strided_slice %34 {offsets = [0, 0, 0], sizes = [2, 8, 8], strides = [1, 1, 1]} : vector<2x8x32xf32> to vector<2x8x8xf32>
    %41 = arith.truncf %40 : vector<2x8x8xf32> to vector<2x8x8xbf16>
    "tpu.trace_start"() <{level = 10 : i32, message = "bqd,bkd->bqk"}> : () -> ()
    %cst_29 = arith.constant dense<0.000000e+00> : vector<2x8x8xf32>
    %42 = tpu.matmul %37, %39, %cst_29 {dimension_numbers = #tpu.dot_dimension_numbers<[2], [2], [1], [1], [0, 0, 0, 1, 1, 1], [0], [0]>} : vector<2x8x8xbf16>, vector<2x8x8xbf16>, vector<2x8x8xf32> -> vector<2x8x8xf32>
    "tpu.trace_stop"() : () -> ()
    %43 = vector.broadcast %3 : vector<2x1x8xf32> to vector<2x8x8xf32>
    %44 = arith.addf %42, %43 : vector<2x8x8xf32>
    %cst_30 = arith.constant dense<0xFF800000> : vector<2x8xf32>
    %45 = vector.multi_reduction <maximumf>, %44, %cst_30 [2] : vector<2x8x8xf32> to vector<2x8xf32>
    %46 = vector.shape_cast %45 : vector<2x8xf32> to vector<2x8x1xf32>
    %47 = vector.broadcast %46 : vector<2x8x1xf32> to vector<2x8x8xf32>
    %48 = arith.subf %44, %47 : vector<2x8x8xf32>
    %49 = math.exp %48 : vector<2x8x8xf32>
    %cst_31 = arith.constant dense<0.000000e+00> : vector<2x8xf32>
    %50 = vector.multi_reduction <add>, %49, %cst_31 [2] : vector<2x8x8xf32> to vector<2x8xf32>
    %51 = vector.shape_cast %50 : vector<2x8xf32> to vector<2x8x1xf32>
    %52 = tpu.reciprocal %51 {approx = true} : vector<2x8x1xf32> -> vector<2x8x1xf32>
    %53 = vector.broadcast %52 : vector<2x8x1xf32> to vector<2x8x8xf32>
    %54 = arith.mulf %49, %53 : vector<2x8x8xf32>
    %55 = arith.truncf %54 : vector<2x8x8xf32> to vector<2x8x8xbf16>
    "tpu.trace_start"() <{level = 10 : i32, message = "bqk,bkd->bqd"}> : () -> ()
    %cst_32 = arith.constant dense<0.000000e+00> : vector<2x8x8xf32>
    %56 = tpu.matmul %55, %41, %cst_32 {dimension_numbers = #tpu.dot_dimension_numbers<[2], [1], [1], [2], [0, 0, 0, 1, 1, 2], [0], [0]>} : vector<2x8x8xbf16>, vector<2x8x8xbf16>, vector<2x8x8xf32> -> vector<2x8x8xf32>
    "tpu.trace_stop"() : () -> ()
    %57 = vector.shape_cast %56 : vector<2x8x8xf32> to vector<16x8xf32>
    %58 = vector.extract_strided_slice %5 {offsets = [0, 0], sizes = [8, 32], strides = [1, 1]} : vector<32x32xbf16> to vector<8x32xbf16>
    %59 = arith.truncf %57 : vector<16x8xf32> to vector<16x8xbf16>
    %cst_33 = arith.constant dense<0.000000e+00> : vector<16x32xf32>
    %60 = tpu.matmul %59, %58, %cst_33 {dimension_numbers = #tpu.dot_dimension_numbers<[1], [0], [0], [1], [0, 0, 1, 1], [], []>} : vector<16x8xbf16>, vector<8x32xbf16>, vector<16x32xf32> -> vector<16x32xf32>
    %61 = arith.addf %35, %60 : vector<16x32xf32>
    %62 = vector.extract_strided_slice %32 {offsets = [0, 0, 8], sizes = [2, 8, 8], strides = [1, 1, 1]} : vector<2x8x32xf32> to vector<2x8x8xf32>
    %63 = arith.truncf %62 : vector<2x8x8xf32> to vector<2x8x8xbf16>
    %64 = vector.extract_strided_slice %33 {offsets = [0, 0, 8], sizes = [2, 8, 8], strides = [1, 1, 1]} : vector<2x8x32xf32> to vector<2x8x8xf32>
    %65 = arith.truncf %64 : vector<2x8x8xf32> to vector<2x8x8xbf16>
    %66 = vector.extract_strided_slice %34 {offsets = [0, 0, 8], sizes = [2, 8, 8], strides = [1, 1, 1]} : vector<2x8x32xf32> to vector<2x8x8xf32>
    %67 = arith.truncf %66 : vector<2x8x8xf32> to vector<2x8x8xbf16>
    "tpu.trace_start"() <{level = 10 : i32, message = "bqd,bkd->bqk"}> : () -> ()
    %cst_34 = arith.constant dense<0.000000e+00> : vector<2x8x8xf32>
    %68 = tpu.matmul %63, %65, %cst_34 {dimension_numbers = #tpu.dot_dimension_numbers<[2], [2], [1], [1], [0, 0, 0, 1, 1, 1], [0], [0]>} : vector<2x8x8xbf16>, vector<2x8x8xbf16>, vector<2x8x8xf32> -> vector<2x8x8xf32>
    "tpu.trace_stop"() : () -> ()
    %69 = vector.broadcast %3 : vector<2x1x8xf32> to vector<2x8x8xf32>
    %70 = arith.addf %68, %69 : vector<2x8x8xf32>
    %cst_35 = arith.constant dense<0xFF800000> : vector<2x8xf32>
    %71 = vector.multi_reduction <maximumf>, %70, %cst_35 [2] : vector<2x8x8xf32> to vector<2x8xf32>
    %72 = vector.shape_cast %71 : vector<2x8xf32> to vector<2x8x1xf32>
    %73 = vector.broadcast %72 : vector<2x8x1xf32> to vector<2x8x8xf32>
    %74 = arith.subf %70, %73 : vector<2x8x8xf32>
    %75 = math.exp %74 : vector<2x8x8xf32>
    %cst_36 = arith.constant dense<0.000000e+00> : vector<2x8xf32>
    %76 = vector.multi_reduction <add>, %75, %cst_36 [2] : vector<2x8x8xf32> to vector<2x8xf32>
    %77 = vector.shape_cast %76 : vector<2x8xf32> to vector<2x8x1xf32>
    %78 = tpu.reciprocal %77 {approx = true} : vector<2x8x1xf32> -> vector<2x8x1xf32>
    %79 = vector.broadcast %78 : vector<2x8x1xf32> to vector<2x8x8xf32>
    %80 = arith.mulf %75, %79 : vector<2x8x8xf32>
    %81 = arith.truncf %80 : vector<2x8x8xf32> to vector<2x8x8xbf16>
    "tpu.trace_start"() <{level = 10 : i32, message = "bqk,bkd->bqd"}> : () -> ()
    %cst_37 = arith.constant dense<0.000000e+00> : vector<2x8x8xf32>
    %82 = tpu.matmul %81, %67, %cst_37 {dimension_numbers = #tpu.dot_dimension_numbers<[2], [1], [1], [2], [0, 0, 0, 1, 1, 2], [0], [0]>} : vector<2x8x8xbf16>, vector<2x8x8xbf16>, vector<2x8x8xf32> -> vector<2x8x8xf32>
    "tpu.trace_stop"() : () -> ()
    %83 = vector.shape_cast %82 : vector<2x8x8xf32> to vector<16x8xf32>
    %84 = vector.extract_strided_slice %5 {offsets = [8, 0], sizes = [8, 32], strides = [1, 1]} : vector<32x32xbf16> to vector<8x32xbf16>
    %85 = arith.truncf %83 : vector<16x8xf32> to vector<16x8xbf16>
    %cst_38 = arith.constant dense<0.000000e+00> : vector<16x32xf32>
    %86 = tpu.matmul %85, %84, %cst_38 {dimension_numbers = #tpu.dot_dimension_numbers<[1], [0], [0], [1], [0, 0, 1, 1], [], []>} : vector<16x8xbf16>, vector<8x32xbf16>, vector<16x32xf32> -> vector<16x32xf32>
    %87 = arith.addf %61, %86 : vector<16x32xf32>
    %88 = vector.extract_strided_slice %32 {offsets = [0, 0, 16], sizes = [2, 8, 8], strides = [1, 1, 1]} : vector<2x8x32xf32> to vector<2x8x8xf32>
    %89 = arith.truncf %88 : vector<2x8x8xf32> to vector<2x8x8xbf16>
    %90 = vector.extract_strided_slice %33 {offsets = [0, 0, 16], sizes = [2, 8, 8], strides = [1, 1, 1]} : vector<2x8x32xf32> to vector<2x8x8xf32>
    %91 = arith.truncf %90 : vector<2x8x8xf32> to vector<2x8x8xbf16>
    %92 = vector.extract_strided_slice %34 {offsets = [0, 0, 16], sizes = [2, 8, 8], strides = [1, 1, 1]} : vector<2x8x32xf32> to vector<2x8x8xf32>
    %93 = arith.truncf %92 : vector<2x8x8xf32> to vector<2x8x8xbf16>
    "tpu.trace_start"() <{level = 10 : i32, message = "bqd,bkd->bqk"}> : () -> ()
    %cst_39 = arith.constant dense<0.000000e+00> : vector<2x8x8xf32>
    %94 = tpu.matmul %89, %91, %cst_39 {dimension_numbers = #tpu.dot_dimension_numbers<[2], [2], [1], [1], [0, 0, 0, 1, 1, 1], [0], [0]>} : vector<2x8x8xbf16>, vector<2x8x8xbf16>, vector<2x8x8xf32> -> vector<2x8x8xf32>
    "tpu.trace_stop"() : () -> ()
    %95 = vector.broadcast %3 : vector<2x1x8xf32> to vector<2x8x8xf32>
    %96 = arith.addf %94, %95 : vector<2x8x8xf32>
    %cst_40 = arith.constant dense<0xFF800000> : vector<2x8xf32>
    %97 = vector.multi_reduction <maximumf>, %96, %cst_40 [2] : vector<2x8x8xf32> to vector<2x8xf32>
    %98 = vector.shape_cast %97 : vector<2x8xf32> to vector<2x8x1xf32>
    %99 = vector.broadcast %98 : vector<2x8x1xf32> to vector<2x8x8xf32>
    %100 = arith.subf %96, %99 : vector<2x8x8xf32>
    %101 = math.exp %100 : vector<2x8x8xf32>
    %cst_41 = arith.constant dense<0.000000e+00> : vector<2x8xf32>
    %102 = vector.multi_reduction <add>, %101, %cst_41 [2] : vector<2x8x8xf32> to vector<2x8xf32>
    %103 = vector.shape_cast %102 : vector<2x8xf32> to vector<2x8x1xf32>
    %104 = tpu.reciprocal %103 {approx = true} : vector<2x8x1xf32> -> vector<2x8x1xf32>
    %105 = vector.broadcast %104 : vector<2x8x1xf32> to vector<2x8x8xf32>
    %106 = arith.mulf %101, %105 : vector<2x8x8xf32>
    %107 = arith.truncf %106 : vector<2x8x8xf32> to vector<2x8x8xbf16>
    "tpu.trace_start"() <{level = 10 : i32, message = "bqk,bkd->bqd"}> : () -> ()
    %cst_42 = arith.constant dense<0.000000e+00> : vector<2x8x8xf32>
    %108 = tpu.matmul %107, %93, %cst_42 {dimension_numbers = #tpu.dot_dimension_numbers<[2], [1], [1], [2], [0, 0, 0, 1, 1, 2], [0], [0]>} : vector<2x8x8xbf16>, vector<2x8x8xbf16>, vector<2x8x8xf32> -> vector<2x8x8xf32>
    "tpu.trace_stop"() : () -> ()
    %109 = vector.shape_cast %108 : vector<2x8x8xf32> to vector<16x8xf32>
    %110 = vector.extract_strided_slice %5 {offsets = [16, 0], sizes = [8, 32], strides = [1, 1]} : vector<32x32xbf16> to vector<8x32xbf16>
    %111 = arith.truncf %109 : vector<16x8xf32> to vector<16x8xbf16>
    %cst_43 = arith.constant dense<0.000000e+00> : vector<16x32xf32>
    %112 = tpu.matmul %111, %110, %cst_43 {dimension_numbers = #tpu.dot_dimension_numbers<[1], [0], [0], [1], [0, 0, 1, 1], [], []>} : vector<16x8xbf16>, vector<8x32xbf16>, vector<16x32xf32> -> vector<16x32xf32>
    %113 = arith.addf %87, %112 : vector<16x32xf32>
    %114 = vector.extract_strided_slice %32 {offsets = [0, 0, 24], sizes = [2, 8, 8], strides = [1, 1, 1]} : vector<2x8x32xf32> to vector<2x8x8xf32>
    %115 = arith.truncf %114 : vector<2x8x8xf32> to vector<2x8x8xbf16>
    %116 = vector.extract_strided_slice %33 {offsets = [0, 0, 24], sizes = [2, 8, 8], strides = [1, 1, 1]} : vector<2x8x32xf32> to vector<2x8x8xf32>
    %117 = arith.truncf %116 : vector<2x8x8xf32> to vector<2x8x8xbf16>
    %118 = vector.extract_strided_slice %34 {offsets = [0, 0, 24], sizes = [2, 8, 8], strides = [1, 1, 1]} : vector<2x8x32xf32> to vector<2x8x8xf32>
    %119 = arith.truncf %118 : vector<2x8x8xf32> to vector<2x8x8xbf16>
    "tpu.trace_start"() <{level = 10 : i32, message = "bqd,bkd->bqk"}> : () -> ()
    %cst_44 = arith.constant dense<0.000000e+00> : vector<2x8x8xf32>
    %120 = tpu.matmul %115, %117, %cst_44 {dimension_numbers = #tpu.dot_dimension_numbers<[2], [2], [1], [1], [0, 0, 0, 1, 1, 1], [0], [0]>} : vector<2x8x8xbf16>, vector<2x8x8xbf16>, vector<2x8x8xf32> -> vector<2x8x8xf32>
    "tpu.trace_stop"() : () -> ()
    %121 = vector.broadcast %3 : vector<2x1x8xf32> to vector<2x8x8xf32>
    %122 = arith.addf %120, %121 : vector<2x8x8xf32>
    %cst_45 = arith.constant dense<0xFF800000> : vector<2x8xf32>
    %123 = vector.multi_reduction <maximumf>, %122, %cst_45 [2] : vector<2x8x8xf32> to vector<2x8xf32>
    %124 = vector.shape_cast %123 : vector<2x8xf32> to vector<2x8x1xf32>
    %125 = vector.broadcast %124 : vector<2x8x1xf32> to vector<2x8x8xf32>
    %126 = arith.subf %122, %125 : vector<2x8x8xf32>
    %127 = math.exp %126 : vector<2x8x8xf32>
    %cst_46 = arith.constant dense<0.000000e+00> : vector<2x8xf32>
    %128 = vector.multi_reduction <add>, %127, %cst_46 [2] : vector<2x8x8xf32> to vector<2x8xf32>
    %129 = vector.shape_cast %128 : vector<2x8xf32> to vector<2x8x1xf32>
    %130 = tpu.reciprocal %129 {approx = true} : vector<2x8x1xf32> -> vector<2x8x1xf32>
    %131 = vector.broadcast %130 : vector<2x8x1xf32> to vector<2x8x8xf32>
    %132 = arith.mulf %127, %131 : vector<2x8x8xf32>
    %133 = arith.truncf %132 : vector<2x8x8xf32> to vector<2x8x8xbf16>
    "tpu.trace_start"() <{level = 10 : i32, message = "bqk,bkd->bqd"}> : () -> ()
    %cst_47 = arith.constant dense<0.000000e+00> : vector<2x8x8xf32>
    %134 = tpu.matmul %133, %119, %cst_47 {dimension_numbers = #tpu.dot_dimension_numbers<[2], [1], [1], [2], [0, 0, 0, 1, 1, 2], [0], [0]>} : vector<2x8x8xbf16>, vector<2x8x8xbf16>, vector<2x8x8xf32> -> vector<2x8x8xf32>
    "tpu.trace_stop"() : () -> ()
    %135 = vector.shape_cast %134 : vector<2x8x8xf32> to vector<16x8xf32>
    %136 = vector.extract_strided_slice %5 {offsets = [24, 0], sizes = [8, 32], strides = [1, 1]} : vector<32x32xbf16> to vector<8x32xbf16>
    %137 = arith.truncf %135 : vector<16x8xf32> to vector<16x8xbf16>
    %cst_48 = arith.constant dense<0.000000e+00> : vector<16x32xf32>
    %138 = tpu.matmul %137, %136, %cst_48 {dimension_numbers = #tpu.dot_dimension_numbers<[1], [0], [0], [1], [0, 0, 1, 1], [], []>} : vector<16x8xbf16>, vector<8x32xbf16>, vector<16x32xf32> -> vector<16x32xf32>
    %139 = arith.addf %113, %138 : vector<16x32xf32>
    %140 = arith.addf %1, %139 : vector<16x32xf32>
    %c0_49 = arith.constant 0 : index
    %c0_50 = arith.constant 0 : index
    %c0_51 = arith.constant 0 : index
    %141 = vector.load %arg9[%c0_49, %c0_50, %c0_51] : memref<2x1x32xf32, #tpu.memory_space<vmem>>, vector<1x1x32xf32>
    %142 = vector.shape_cast %141 : vector<1x1x32xf32> to vector<1x32xf32>
    %143 = vector.broadcast %142 : vector<1x32xf32> to vector<16x32xf32>
    %144 = arith.addf %140, %143 : vector<16x32xf32>
    %c0_52 = arith.constant 0 : index
    %c0_53 = arith.constant 0 : index
    %c0_54 = arith.constant 0 : index
    %145 = vector.load %arg10[%c0_52, %c0_53, %c0_54] : memref<2x1x32xf32, #tpu.memory_space<vmem>>, vector<1x1x32xf32>
    %146 = vector.shape_cast %145 : vector<1x1x32xf32> to vector<1x32xf32>
    %c0_55 = arith.constant 0 : index
    %c0_56 = arith.constant 0 : index
    %c0_57 = arith.constant 0 : index
    %147 = vector.load %arg11[%c0_55, %c0_56, %c0_57] : memref<2x1x32xf32, #tpu.memory_space<vmem>>, vector<1x1x32xf32>
    %148 = vector.shape_cast %147 : vector<1x1x32xf32> to vector<1x32xf32>
    %cst_58 = arith.constant dense<0.000000e+00> : vector<16xf32>
    %149 = vector.multi_reduction <add>, %144, %cst_58 [1] : vector<16x32xf32> to vector<16xf32>
    %150 = vector.shape_cast %149 : vector<16xf32> to vector<16x1xf32>
    %cst_59 = arith.constant 3.200000e+01 : f32
    %151 = vector.broadcast %cst_59 : f32 to vector<16x1xf32>
    %152 = arith.divf %150, %151 : vector<16x1xf32>
    %153 = vector.broadcast %152 : vector<16x1xf32> to vector<16x32xf32>
    %154 = arith.subf %144, %153 : vector<16x32xf32>
    %155 = arith.mulf %154, %154 : vector<16x32xf32>
    %cst_60 = arith.constant dense<0.000000e+00> : vector<16xf32>
    %156 = vector.multi_reduction <add>, %155, %cst_60 [1] : vector<16x32xf32> to vector<16xf32>
    %157 = vector.shape_cast %156 : vector<16xf32> to vector<16x1xf32>
    %cst_61 = arith.constant 3.200000e+01 : f32
    %158 = vector.broadcast %cst_61 : f32 to vector<16x1xf32>
    %159 = arith.divf %157, %158 : vector<16x1xf32>
    %160 = vector.broadcast %152 : vector<16x1xf32> to vector<16x32xf32>
    %161 = arith.subf %144, %160 : vector<16x32xf32>
    %cst_62 = arith.constant 9.99999996E-13 : f32
    %162 = vector.broadcast %cst_62 : f32 to vector<16x1xf32>
    %163 = arith.addf %159, %162 : vector<16x1xf32>
    %164 = math.rsqrt %163 : vector<16x1xf32>
    %165 = vector.broadcast %164 : vector<16x1xf32> to vector<16x32xf32>
    %166 = arith.mulf %161, %165 : vector<16x32xf32>
    %167 = vector.broadcast %146 : vector<1x32xf32> to vector<16x32xf32>
    %168 = arith.mulf %166, %167 : vector<16x32xf32>
    %169 = vector.broadcast %148 : vector<1x32xf32> to vector<16x32xf32>
    %170 = arith.addf %168, %169 : vector<16x32xf32>
    %c0_63 = arith.constant 0 : index
    %c0_64 = arith.constant 0 : index
    %c0_65 = arith.constant 0 : index
    %171 = vector.load %arg12[%c0_63, %c0_64, %c0_65] : memref<2x32x128xbf16, #tpu.memory_space<vmem>>, vector<1x32x128xbf16>
    %172 = vector.shape_cast %171 : vector<1x32x128xbf16> to vector<32x128xbf16>
    %c0_66 = arith.constant 0 : index
    %c0_67 = arith.constant 0 : index
    %c0_68 = arith.constant 0 : index
    %173 = vector.load %arg13[%c0_66, %c0_67, %c0_68] : memref<2x1x128xf32, #tpu.memory_space<vmem>>, vector<1x1x128xf32>
    %174 = vector.shape_cast %173 : vector<1x1x128xf32> to vector<1x128xf32>
    %175 = arith.truncf %170 : vector<16x32xf32> to vector<16x32xbf16>
    %cst_69 = arith.constant dense<0.000000e+00> : vector<16x128xf32>
    %176 = tpu.matmul %175, %172, %cst_69 {dimension_numbers = #tpu.dot_dimension_numbers<[1], [0], [0], [1], [0, 0, 1, 1], [], []>} : vector<16x32xbf16>, vector<32x128xbf16>, vector<16x128xf32> -> vector<16x128xf32>
    %177 = vector.broadcast %174 : vector<1x128xf32> to vector<16x128xf32>
    %178 = arith.addf %176, %177 : vector<16x128xf32>
    %cst_70 = arith.constant 5.000000e-01 : f32
    %179 = vector.broadcast %cst_70 : f32 to vector<16x128xf32>
    %180 = arith.mulf %179, %178 : vector<16x128xf32>
    %cst_71 = arith.constant 4.471500e-02 : f32
    %181 = vector.broadcast %cst_71 : f32 to vector<16x128xf32>
    %182 = arith.mulf %181, %178 : vector<16x128xf32>
    %183 = arith.mulf %182, %178 : vector<16x128xf32>
    %184 = arith.mulf %183, %178 : vector<16x128xf32>
    %185 = arith.addf %178, %184 : vector<16x128xf32>
    %cst_72 = arith.constant 0.797884583 : f32
    %186 = vector.broadcast %cst_72 : f32 to vector<16x128xf32>
    %187 = arith.mulf %186, %185 : vector<16x128xf32>
    %188 = math.tanh %187 : vector<16x128xf32>
    %cst_73 = arith.constant 1.000000e+00 : f32
    %189 = vector.broadcast %cst_73 : f32 to vector<16x128xf32>
    %190 = arith.addf %189, %188 : vector<16x128xf32>
    %191 = arith.mulf %180, %190 : vector<16x128xf32>
    %c0_74 = arith.constant 0 : index
    %c0_75 = arith.constant 0 : index
    %c0_76 = arith.constant 0 : index
    %192 = vector.load %arg14[%c0_74, %c0_75, %c0_76] : memref<2x128x32xbf16, #tpu.memory_space<vmem>>, vector<1x128x32xbf16>
    %193 = vector.shape_cast %192 : vector<1x128x32xbf16> to vector<128x32xbf16>
    %c0_77 = arith.constant 0 : index
    %c0_78 = arith.constant 0 : index
    %c0_79 = arith.constant 0 : index
    %194 = vector.load %arg15[%c0_77, %c0_78, %c0_79] : memref<2x1x32xf32, #tpu.memory_space<vmem>>, vector<1x1x32xf32>
    %195 = vector.shape_cast %194 : vector<1x1x32xf32> to vector<1x32xf32>
    %196 = arith.truncf %191 : vector<16x128xf32> to vector<16x128xbf16>
    %cst_80 = arith.constant dense<0.000000e+00> : vector<16x32xf32>
    %197 = tpu.matmul %196, %193, %cst_80 {dimension_numbers = #tpu.dot_dimension_numbers<[1], [0], [0], [1], [0, 0, 1, 1], [], []>} : vector<16x128xbf16>, vector<128x32xbf16>, vector<16x32xf32> -> vector<16x32xf32>
    %198 = vector.broadcast %195 : vector<1x32xf32> to vector<16x32xf32>
    %199 = arith.addf %197, %198 : vector<16x32xf32>
    %200 = arith.addf %170, %199 : vector<16x32xf32>
    %c0_81 = arith.constant 0 : index
    %c0_82 = arith.constant 0 : index
    %c0_83 = arith.constant 0 : index
    %201 = vector.load %arg16[%c0_81, %c0_82, %c0_83] : memref<2x1x32xf32, #tpu.memory_space<vmem>>, vector<1x1x32xf32>
    %202 = vector.shape_cast %201 : vector<1x1x32xf32> to vector<1x32xf32>
    %c0_84 = arith.constant 0 : index
    %c0_85 = arith.constant 0 : index
    %c0_86 = arith.constant 0 : index
    %203 = vector.load %arg17[%c0_84, %c0_85, %c0_86] : memref<2x1x32xf32, #tpu.memory_space<vmem>>, vector<1x1x32xf32>
    %204 = vector.shape_cast %203 : vector<1x1x32xf32> to vector<1x32xf32>
    %cst_87 = arith.constant dense<0.000000e+00> : vector<16xf32>
    %205 = vector.multi_reduction <add>, %200, %cst_87 [1] : vector<16x32xf32> to vector<16xf32>
    %206 = vector.shape_cast %205 : vector<16xf32> to vector<16x1xf32>
    %cst_88 = arith.constant 3.200000e+01 : f32
    %207 = vector.broadcast %cst_88 : f32 to vector<16x1xf32>
    %208 = arith.divf %206, %207 : vector<16x1xf32>
    %209 = vector.broadcast %208 : vector<16x1xf32> to vector<16x32xf32>
    %210 = arith.subf %200, %209 : vector<16x32xf32>
    %211 = arith.mulf %210, %210 : vector<16x32xf32>
    %cst_89 = arith.constant dense<0.000000e+00> : vector<16xf32>
    %212 = vector.multi_reduction <add>, %211, %cst_89 [1] : vector<16x32xf32> to vector<16xf32>
    %213 = vector.shape_cast %212 : vector<16xf32> to vector<16x1xf32>
    %cst_90 = arith.constant 3.200000e+01 : f32
    %214 = vector.broadcast %cst_90 : f32 to vector<16x1xf32>
    %215 = arith.divf %213, %214 : vector<16x1xf32>
    %216 = vector.broadcast %208 : vector<16x1xf32> to vector<16x32xf32>
    %217 = arith.subf %200, %216 : vector<16x32xf32>
    %cst_91 = arith.constant 9.99999996E-13 : f32
    %218 = vector.broadcast %cst_91 : f32 to vector<16x1xf32>
    %219 = arith.addf %215, %218 : vector<16x1xf32>
    %220 = math.rsqrt %219 : vector<16x1xf32>
    %221 = vector.broadcast %220 : vector<16x1xf32> to vector<16x32xf32>
    %222 = arith.mulf %217, %221 : vector<16x32xf32>
    %223 = vector.broadcast %202 : vector<1x32xf32> to vector<16x32xf32>
    %224 = arith.mulf %222, %223 : vector<16x32xf32>
    %225 = vector.broadcast %204 : vector<1x32xf32> to vector<16x32xf32>
    %226 = arith.addf %224, %225 : vector<16x32xf32>
    %c1 = arith.constant 1 : index
    %c0_92 = arith.constant 0 : index
    %c0_93 = arith.constant 0 : index
    %227 = vector.load %arg8[%c1, %c0_92, %c0_93] : memref<2x32x32xbf16, #tpu.memory_space<vmem>>, vector<1x32x32xbf16>
    %228 = vector.shape_cast %227 : vector<1x32x32xbf16> to vector<32x32xbf16>
    %c1_94 = arith.constant 1 : index
    %c0_95 = arith.constant 0 : index
    %c0_96 = arith.constant 0 : index
    %229 = vector.load %arg2[%c1_94, %c0_95, %c0_96] : memref<2x32x32xbf16, #tpu.memory_space<vmem>>, vector<1x32x32xbf16>
    %230 = vector.shape_cast %229 : vector<1x32x32xbf16> to vector<32x32xbf16>
    %c1_97 = arith.constant 1 : index
    %c0_98 = arith.constant 0 : index
    %c0_99 = arith.constant 0 : index
    %231 = vector.load %arg3[%c1_97, %c0_98, %c0_99] : memref<2x1x32xf32, #tpu.memory_space<vmem>>, vector<1x1x32xf32>
    %232 = vector.shape_cast %231 : vector<1x1x32xf32> to vector<1x32xf32>
    %233 = arith.truncf %226 : vector<16x32xf32> to vector<16x32xbf16>
    %cst_100 = arith.constant dense<0.000000e+00> : vector<16x32xf32>
    %234 = tpu.matmul %233, %230, %cst_100 {dimension_numbers = #tpu.dot_dimension_numbers<[1], [0], [0], [1], [0, 0, 1, 1], [], []>} : vector<16x32xbf16>, vector<32x32xbf16>, vector<16x32xf32> -> vector<16x32xf32>
    %235 = vector.broadcast %232 : vector<1x32xf32> to vector<16x32xf32>
    %236 = arith.addf %234, %235 : vector<16x32xf32>
    %cst_101 = arith.constant 0.353553385 : f32
    %237 = vector.broadcast %cst_101 : f32 to vector<16x32xf32>
    %238 = arith.mulf %236, %237 : vector<16x32xf32>
    %c1_102 = arith.constant 1 : index
    %c0_103 = arith.constant 0 : index
    %c0_104 = arith.constant 0 : index
    %239 = vector.load %arg4[%c1_102, %c0_103, %c0_104] : memref<2x32x32xbf16, #tpu.memory_space<vmem>>, vector<1x32x32xbf16>
    %240 = vector.shape_cast %239 : vector<1x32x32xbf16> to vector<32x32xbf16>
    %c1_105 = arith.constant 1 : index
    %c0_106 = arith.constant 0 : index
    %c0_107 = arith.constant 0 : index
    %241 = vector.load %arg5[%c1_105, %c0_106, %c0_107] : memref<2x1x32xf32, #tpu.memory_space<vmem>>, vector<1x1x32xf32>
    %242 = vector.shape_cast %241 : vector<1x1x32xf32> to vector<1x32xf32>
    %243 = arith.truncf %226 : vector<16x32xf32> to vector<16x32xbf16>
    %cst_108 = arith.constant dense<0.000000e+00> : vector<16x32xf32>
    %244 = tpu.matmul %243, %240, %cst_108 {dimension_numbers = #tpu.dot_dimension_numbers<[1], [0], [0], [1], [0, 0, 1, 1], [], []>} : vector<16x32xbf16>, vector<32x32xbf16>, vector<16x32xf32> -> vector<16x32xf32>
    %245 = vector.broadcast %242 : vector<1x32xf32> to vector<16x32xf32>
    %246 = arith.addf %244, %245 : vector<16x32xf32>
    %c1_109 = arith.constant 1 : index
    %c0_110 = arith.constant 0 : index
    %c0_111 = arith.constant 0 : index
    %247 = vector.load %arg6[%c1_109, %c0_110, %c0_111] : memref<2x32x32xbf16, #tpu.memory_space<vmem>>, vector<1x32x32xbf16>
    %248 = vector.shape_cast %247 : vector<1x32x32xbf16> to vector<32x32xbf16>
    %c1_112 = arith.constant 1 : index
    %c0_113 = arith.constant 0 : index
    %c0_114 = arith.constant 0 : index
    %249 = vector.load %arg7[%c1_112, %c0_113, %c0_114] : memref<2x1x32xf32, #tpu.memory_space<vmem>>, vector<1x1x32xf32>
    %250 = vector.shape_cast %249 : vector<1x1x32xf32> to vector<1x32xf32>
    %251 = arith.truncf %226 : vector<16x32xf32> to vector<16x32xbf16>
    %cst_115 = arith.constant dense<0.000000e+00> : vector<16x32xf32>
    %252 = tpu.matmul %251, %248, %cst_115 {dimension_numbers = #tpu.dot_dimension_numbers<[1], [0], [0], [1], [0, 0, 1, 1], [], []>} : vector<16x32xbf16>, vector<32x32xbf16>, vector<16x32xf32> -> vector<16x32xf32>
    %253 = vector.broadcast %250 : vector<1x32xf32> to vector<16x32xf32>
    %254 = arith.addf %252, %253 : vector<16x32xf32>
    %255 = vector.shape_cast %238 : vector<16x32xf32> to vector<2x8x32xf32>
    %256 = vector.shape_cast %246 : vector<16x32xf32> to vector<2x8x32xf32>
    %257 = vector.shape_cast %254 : vector<16x32xf32> to vector<2x8x32xf32>
    %cst_116 = arith.constant 0.000000e+00 : f32
    %258 = vector.broadcast %cst_116 : f32 to vector<16x32xf32>
    %259 = vector.extract_strided_slice %255 {offsets = [0, 0, 0], sizes = [2, 8, 8], strides = [1, 1, 1]} : vector<2x8x32xf32> to vector<2x8x8xf32>
    %260 = arith.truncf %259 : vector<2x8x8xf32> to vector<2x8x8xbf16>
    %261 = vector.extract_strided_slice %256 {offsets = [0, 0, 0], sizes = [2, 8, 8], strides = [1, 1, 1]} : vector<2x8x32xf32> to vector<2x8x8xf32>
    %262 = arith.truncf %261 : vector<2x8x8xf32> to vector<2x8x8xbf16>
    %263 = vector.extract_strided_slice %257 {offsets = [0, 0, 0], sizes = [2, 8, 8], strides = [1, 1, 1]} : vector<2x8x32xf32> to vector<2x8x8xf32>
    %264 = arith.truncf %263 : vector<2x8x8xf32> to vector<2x8x8xbf16>
    "tpu.trace_start"() <{level = 10 : i32, message = "bqd,bkd->bqk"}> : () -> ()
    %cst_117 = arith.constant dense<0.000000e+00> : vector<2x8x8xf32>
    %265 = tpu.matmul %260, %262, %cst_117 {dimension_numbers = #tpu.dot_dimension_numbers<[2], [2], [1], [1], [0, 0, 0, 1, 1, 1], [0], [0]>} : vector<2x8x8xbf16>, vector<2x8x8xbf16>, vector<2x8x8xf32> -> vector<2x8x8xf32>
    "tpu.trace_stop"() : () -> ()
    %266 = vector.broadcast %3 : vector<2x1x8xf32> to vector<2x8x8xf32>
    %267 = arith.addf %265, %266 : vector<2x8x8xf32>
    %cst_118 = arith.constant dense<0xFF800000> : vector<2x8xf32>
    %268 = vector.multi_reduction <maximumf>, %267, %cst_118 [2] : vector<2x8x8xf32> to vector<2x8xf32>
    %269 = vector.shape_cast %268 : vector<2x8xf32> to vector<2x8x1xf32>
    %270 = vector.broadcast %269 : vector<2x8x1xf32> to vector<2x8x8xf32>
    %271 = arith.subf %267, %270 : vector<2x8x8xf32>
    %272 = math.exp %271 : vector<2x8x8xf32>
    %cst_119 = arith.constant dense<0.000000e+00> : vector<2x8xf32>
    %273 = vector.multi_reduction <add>, %272, %cst_119 [2] : vector<2x8x8xf32> to vector<2x8xf32>
    %274 = vector.shape_cast %273 : vector<2x8xf32> to vector<2x8x1xf32>
    %275 = tpu.reciprocal %274 {approx = true} : vector<2x8x1xf32> -> vector<2x8x1xf32>
    %276 = vector.broadcast %275 : vector<2x8x1xf32> to vector<2x8x8xf32>
    %277 = arith.mulf %272, %276 : vector<2x8x8xf32>
    %278 = arith.truncf %277 : vector<2x8x8xf32> to vector<2x8x8xbf16>
    "tpu.trace_start"() <{level = 10 : i32, message = "bqk,bkd->bqd"}> : () -> ()
    %cst_120 = arith.constant dense<0.000000e+00> : vector<2x8x8xf32>
    %279 = tpu.matmul %278, %264, %cst_120 {dimension_numbers = #tpu.dot_dimension_numbers<[2], [1], [1], [2], [0, 0, 0, 1, 1, 2], [0], [0]>} : vector<2x8x8xbf16>, vector<2x8x8xbf16>, vector<2x8x8xf32> -> vector<2x8x8xf32>
    "tpu.trace_stop"() : () -> ()
    %280 = vector.shape_cast %279 : vector<2x8x8xf32> to vector<16x8xf32>
    %281 = vector.extract_strided_slice %228 {offsets = [0, 0], sizes = [8, 32], strides = [1, 1]} : vector<32x32xbf16> to vector<8x32xbf16>
    %282 = arith.truncf %280 : vector<16x8xf32> to vector<16x8xbf16>
    %cst_121 = arith.constant dense<0.000000e+00> : vector<16x32xf32>
    %283 = tpu.matmul %282, %281, %cst_121 {dimension_numbers = #tpu.dot_dimension_numbers<[1], [0], [0], [1], [0, 0, 1, 1], [], []>} : vector<16x8xbf16>, vector<8x32xbf16>, vector<16x32xf32> -> vector<16x32xf32>
    %284 = arith.addf %258, %283 : vector<16x32xf32>
    %285 = vector.extract_strided_slice %255 {offsets = [0, 0, 8], sizes = [2, 8, 8], strides = [1, 1, 1]} : vector<2x8x32xf32> to vector<2x8x8xf32>
    %286 = arith.truncf %285 : vector<2x8x8xf32> to vector<2x8x8xbf16>
    %287 = vector.extract_strided_slice %256 {offsets = [0, 0, 8], sizes = [2, 8, 8], strides = [1, 1, 1]} : vector<2x8x32xf32> to vector<2x8x8xf32>
    %288 = arith.truncf %287 : vector<2x8x8xf32> to vector<2x8x8xbf16>
    %289 = vector.extract_strided_slice %257 {offsets = [0, 0, 8], sizes = [2, 8, 8], strides = [1, 1, 1]} : vector<2x8x32xf32> to vector<2x8x8xf32>
    %290 = arith.truncf %289 : vector<2x8x8xf32> to vector<2x8x8xbf16>
    "tpu.trace_start"() <{level = 10 : i32, message = "bqd,bkd->bqk"}> : () -> ()
    %cst_122 = arith.constant dense<0.000000e+00> : vector<2x8x8xf32>
    %291 = tpu.matmul %286, %288, %cst_122 {dimension_numbers = #tpu.dot_dimension_numbers<[2], [2], [1], [1], [0, 0, 0, 1, 1, 1], [0], [0]>} : vector<2x8x8xbf16>, vector<2x8x8xbf16>, vector<2x8x8xf32> -> vector<2x8x8xf32>
    "tpu.trace_stop"() : () -> ()
    %292 = vector.broadcast %3 : vector<2x1x8xf32> to vector<2x8x8xf32>
    %293 = arith.addf %291, %292 : vector<2x8x8xf32>
    %cst_123 = arith.constant dense<0xFF800000> : vector<2x8xf32>
    %294 = vector.multi_reduction <maximumf>, %293, %cst_123 [2] : vector<2x8x8xf32> to vector<2x8xf32>
    %295 = vector.shape_cast %294 : vector<2x8xf32> to vector<2x8x1xf32>
    %296 = vector.broadcast %295 : vector<2x8x1xf32> to vector<2x8x8xf32>
    %297 = arith.subf %293, %296 : vector<2x8x8xf32>
    %298 = math.exp %297 : vector<2x8x8xf32>
    %cst_124 = arith.constant dense<0.000000e+00> : vector<2x8xf32>
    %299 = vector.multi_reduction <add>, %298, %cst_124 [2] : vector<2x8x8xf32> to vector<2x8xf32>
    %300 = vector.shape_cast %299 : vector<2x8xf32> to vector<2x8x1xf32>
    %301 = tpu.reciprocal %300 {approx = true} : vector<2x8x1xf32> -> vector<2x8x1xf32>
    %302 = vector.broadcast %301 : vector<2x8x1xf32> to vector<2x8x8xf32>
    %303 = arith.mulf %298, %302 : vector<2x8x8xf32>
    %304 = arith.truncf %303 : vector<2x8x8xf32> to vector<2x8x8xbf16>
    "tpu.trace_start"() <{level = 10 : i32, message = "bqk,bkd->bqd"}> : () -> ()
    %cst_125 = arith.constant dense<0.000000e+00> : vector<2x8x8xf32>
    %305 = tpu.matmul %304, %290, %cst_125 {dimension_numbers = #tpu.dot_dimension_numbers<[2], [1], [1], [2], [0, 0, 0, 1, 1, 2], [0], [0]>} : vector<2x8x8xbf16>, vector<2x8x8xbf16>, vector<2x8x8xf32> -> vector<2x8x8xf32>
    "tpu.trace_stop"() : () -> ()
    %306 = vector.shape_cast %305 : vector<2x8x8xf32> to vector<16x8xf32>
    %307 = vector.extract_strided_slice %228 {offsets = [8, 0], sizes = [8, 32], strides = [1, 1]} : vector<32x32xbf16> to vector<8x32xbf16>
    %308 = arith.truncf %306 : vector<16x8xf32> to vector<16x8xbf16>
    %cst_126 = arith.constant dense<0.000000e+00> : vector<16x32xf32>
    %309 = tpu.matmul %308, %307, %cst_126 {dimension_numbers = #tpu.dot_dimension_numbers<[1], [0], [0], [1], [0, 0, 1, 1], [], []>} : vector<16x8xbf16>, vector<8x32xbf16>, vector<16x32xf32> -> vector<16x32xf32>
    %310 = arith.addf %284, %309 : vector<16x32xf32>
    %311 = vector.extract_strided_slice %255 {offsets = [0, 0, 16], sizes = [2, 8, 8], strides = [1, 1, 1]} : vector<2x8x32xf32> to vector<2x8x8xf32>
    %312 = arith.truncf %311 : vector<2x8x8xf32> to vector<2x8x8xbf16>
    %313 = vector.extract_strided_slice %256 {offsets = [0, 0, 16], sizes = [2, 8, 8], strides = [1, 1, 1]} : vector<2x8x32xf32> to vector<2x8x8xf32>
    %314 = arith.truncf %313 : vector<2x8x8xf32> to vector<2x8x8xbf16>
    %315 = vector.extract_strided_slice %257 {offsets = [0, 0, 16], sizes = [2, 8, 8], strides = [1, 1, 1]} : vector<2x8x32xf32> to vector<2x8x8xf32>
    %316 = arith.truncf %315 : vector<2x8x8xf32> to vector<2x8x8xbf16>
    "tpu.trace_start"() <{level = 10 : i32, message = "bqd,bkd->bqk"}> : () -> ()
    %cst_127 = arith.constant dense<0.000000e+00> : vector<2x8x8xf32>
    %317 = tpu.matmul %312, %314, %cst_127 {dimension_numbers = #tpu.dot_dimension_numbers<[2], [2], [1], [1], [0, 0, 0, 1, 1, 1], [0], [0]>} : vector<2x8x8xbf16>, vector<2x8x8xbf16>, vector<2x8x8xf32> -> vector<2x8x8xf32>
    "tpu.trace_stop"() : () -> ()
    %318 = vector.broadcast %3 : vector<2x1x8xf32> to vector<2x8x8xf32>
    %319 = arith.addf %317, %318 : vector<2x8x8xf32>
    %cst_128 = arith.constant dense<0xFF800000> : vector<2x8xf32>
    %320 = vector.multi_reduction <maximumf>, %319, %cst_128 [2] : vector<2x8x8xf32> to vector<2x8xf32>
    %321 = vector.shape_cast %320 : vector<2x8xf32> to vector<2x8x1xf32>
    %322 = vector.broadcast %321 : vector<2x8x1xf32> to vector<2x8x8xf32>
    %323 = arith.subf %319, %322 : vector<2x8x8xf32>
    %324 = math.exp %323 : vector<2x8x8xf32>
    %cst_129 = arith.constant dense<0.000000e+00> : vector<2x8xf32>
    %325 = vector.multi_reduction <add>, %324, %cst_129 [2] : vector<2x8x8xf32> to vector<2x8xf32>
    %326 = vector.shape_cast %325 : vector<2x8xf32> to vector<2x8x1xf32>
    %327 = tpu.reciprocal %326 {approx = true} : vector<2x8x1xf32> -> vector<2x8x1xf32>
    %328 = vector.broadcast %327 : vector<2x8x1xf32> to vector<2x8x8xf32>
    %329 = arith.mulf %324, %328 : vector<2x8x8xf32>
    %330 = arith.truncf %329 : vector<2x8x8xf32> to vector<2x8x8xbf16>
    "tpu.trace_start"() <{level = 10 : i32, message = "bqk,bkd->bqd"}> : () -> ()
    %cst_130 = arith.constant dense<0.000000e+00> : vector<2x8x8xf32>
    %331 = tpu.matmul %330, %316, %cst_130 {dimension_numbers = #tpu.dot_dimension_numbers<[2], [1], [1], [2], [0, 0, 0, 1, 1, 2], [0], [0]>} : vector<2x8x8xbf16>, vector<2x8x8xbf16>, vector<2x8x8xf32> -> vector<2x8x8xf32>
    "tpu.trace_stop"() : () -> ()
    %332 = vector.shape_cast %331 : vector<2x8x8xf32> to vector<16x8xf32>
    %333 = vector.extract_strided_slice %228 {offsets = [16, 0], sizes = [8, 32], strides = [1, 1]} : vector<32x32xbf16> to vector<8x32xbf16>
    %334 = arith.truncf %332 : vector<16x8xf32> to vector<16x8xbf16>
    %cst_131 = arith.constant dense<0.000000e+00> : vector<16x32xf32>
    %335 = tpu.matmul %334, %333, %cst_131 {dimension_numbers = #tpu.dot_dimension_numbers<[1], [0], [0], [1], [0, 0, 1, 1], [], []>} : vector<16x8xbf16>, vector<8x32xbf16>, vector<16x32xf32> -> vector<16x32xf32>
    %336 = arith.addf %310, %335 : vector<16x32xf32>
    %337 = vector.extract_strided_slice %255 {offsets = [0, 0, 24], sizes = [2, 8, 8], strides = [1, 1, 1]} : vector<2x8x32xf32> to vector<2x8x8xf32>
    %338 = arith.truncf %337 : vector<2x8x8xf32> to vector<2x8x8xbf16>
    %339 = vector.extract_strided_slice %256 {offsets = [0, 0, 24], sizes = [2, 8, 8], strides = [1, 1, 1]} : vector<2x8x32xf32> to vector<2x8x8xf32>
    %340 = arith.truncf %339 : vector<2x8x8xf32> to vector<2x8x8xbf16>
    %341 = vector.extract_strided_slice %257 {offsets = [0, 0, 24], sizes = [2, 8, 8], strides = [1, 1, 1]} : vector<2x8x32xf32> to vector<2x8x8xf32>
    %342 = arith.truncf %341 : vector<2x8x8xf32> to vector<2x8x8xbf16>
    "tpu.trace_start"() <{level = 10 : i32, message = "bqd,bkd->bqk"}> : () -> ()
    %cst_132 = arith.constant dense<0.000000e+00> : vector<2x8x8xf32>
    %343 = tpu.matmul %338, %340, %cst_132 {dimension_numbers = #tpu.dot_dimension_numbers<[2], [2], [1], [1], [0, 0, 0, 1, 1, 1], [0], [0]>} : vector<2x8x8xbf16>, vector<2x8x8xbf16>, vector<2x8x8xf32> -> vector<2x8x8xf32>
    "tpu.trace_stop"() : () -> ()
    %344 = vector.broadcast %3 : vector<2x1x8xf32> to vector<2x8x8xf32>
    %345 = arith.addf %343, %344 : vector<2x8x8xf32>
    %cst_133 = arith.constant dense<0xFF800000> : vector<2x8xf32>
    %346 = vector.multi_reduction <maximumf>, %345, %cst_133 [2] : vector<2x8x8xf32> to vector<2x8xf32>
    %347 = vector.shape_cast %346 : vector<2x8xf32> to vector<2x8x1xf32>
    %348 = vector.broadcast %347 : vector<2x8x1xf32> to vector<2x8x8xf32>
    %349 = arith.subf %345, %348 : vector<2x8x8xf32>
    %350 = math.exp %349 : vector<2x8x8xf32>
    %cst_134 = arith.constant dense<0.000000e+00> : vector<2x8xf32>
    %351 = vector.multi_reduction <add>, %350, %cst_134 [2] : vector<2x8x8xf32> to vector<2x8xf32>
    %352 = vector.shape_cast %351 : vector<2x8xf32> to vector<2x8x1xf32>
    %353 = tpu.reciprocal %352 {approx = true} : vector<2x8x1xf32> -> vector<2x8x1xf32>
    %354 = vector.broadcast %353 : vector<2x8x1xf32> to vector<2x8x8xf32>
    %355 = arith.mulf %350, %354 : vector<2x8x8xf32>
    %356 = arith.truncf %355 : vector<2x8x8xf32> to vector<2x8x8xbf16>
    "tpu.trace_start"() <{level = 10 : i32, message = "bqk,bkd->bqd"}> : () -> ()
    %cst_135 = arith.constant dense<0.000000e+00> : vector<2x8x8xf32>
    %357 = tpu.matmul %356, %342, %cst_135 {dimension_numbers = #tpu.dot_dimension_numbers<[2], [1], [1], [2], [0, 0, 0, 1, 1, 2], [0], [0]>} : vector<2x8x8xbf16>, vector<2x8x8xbf16>, vector<2x8x8xf32> -> vector<2x8x8xf32>
    "tpu.trace_stop"() : () -> ()
    %358 = vector.shape_cast %357 : vector<2x8x8xf32> to vector<16x8xf32>
    %359 = vector.extract_strided_slice %228 {offsets = [24, 0], sizes = [8, 32], strides = [1, 1]} : vector<32x32xbf16> to vector<8x32xbf16>
    %360 = arith.truncf %358 : vector<16x8xf32> to vector<16x8xbf16>
    %cst_136 = arith.constant dense<0.000000e+00> : vector<16x32xf32>
    %361 = tpu.matmul %360, %359, %cst_136 {dimension_numbers = #tpu.dot_dimension_numbers<[1], [0], [0], [1], [0, 0, 1, 1], [], []>} : vector<16x8xbf16>, vector<8x32xbf16>, vector<16x32xf32> -> vector<16x32xf32>
    %362 = arith.addf %336, %361 : vector<16x32xf32>
    %363 = arith.addf %226, %362 : vector<16x32xf32>
    %c1_137 = arith.constant 1 : index
    %c0_138 = arith.constant 0 : index
    %c0_139 = arith.constant 0 : index
    %364 = vector.load %arg9[%c1_137, %c0_138, %c0_139] : memref<2x1x32xf32, #tpu.memory_space<vmem>>, vector<1x1x32xf32>
    %365 = vector.shape_cast %364 : vector<1x1x32xf32> to vector<1x32xf32>
    %366 = vector.broadcast %365 : vector<1x32xf32> to vector<16x32xf32>
    %367 = arith.addf %363, %366 : vector<16x32xf32>
    %c1_140 = arith.constant 1 : index
    %c0_141 = arith.constant 0 : index
    %c0_142 = arith.constant 0 : index
    %368 = vector.load %arg10[%c1_140, %c0_141, %c0_142] : memref<2x1x32xf32, #tpu.memory_space<vmem>>, vector<1x1x32xf32>
    %369 = vector.shape_cast %368 : vector<1x1x32xf32> to vector<1x32xf32>
    %c1_143 = arith.constant 1 : index
    %c0_144 = arith.constant 0 : index
    %c0_145 = arith.constant 0 : index
    %370 = vector.load %arg11[%c1_143, %c0_144, %c0_145] : memref<2x1x32xf32, #tpu.memory_space<vmem>>, vector<1x1x32xf32>
    %371 = vector.shape_cast %370 : vector<1x1x32xf32> to vector<1x32xf32>
    %cst_146 = arith.constant dense<0.000000e+00> : vector<16xf32>
    %372 = vector.multi_reduction <add>, %367, %cst_146 [1] : vector<16x32xf32> to vector<16xf32>
    %373 = vector.shape_cast %372 : vector<16xf32> to vector<16x1xf32>
    %cst_147 = arith.constant 3.200000e+01 : f32
    %374 = vector.broadcast %cst_147 : f32 to vector<16x1xf32>
    %375 = arith.divf %373, %374 : vector<16x1xf32>
    %376 = vector.broadcast %375 : vector<16x1xf32> to vector<16x32xf32>
    %377 = arith.subf %367, %376 : vector<16x32xf32>
    %378 = arith.mulf %377, %377 : vector<16x32xf32>
    %cst_148 = arith.constant dense<0.000000e+00> : vector<16xf32>
    %379 = vector.multi_reduction <add>, %378, %cst_148 [1] : vector<16x32xf32> to vector<16xf32>
    %380 = vector.shape_cast %379 : vector<16xf32> to vector<16x1xf32>
    %cst_149 = arith.constant 3.200000e+01 : f32
    %381 = vector.broadcast %cst_149 : f32 to vector<16x1xf32>
    %382 = arith.divf %380, %381 : vector<16x1xf32>
    %383 = vector.broadcast %375 : vector<16x1xf32> to vector<16x32xf32>
    %384 = arith.subf %367, %383 : vector<16x32xf32>
    %cst_150 = arith.constant 9.99999996E-13 : f32
    %385 = vector.broadcast %cst_150 : f32 to vector<16x1xf32>
    %386 = arith.addf %382, %385 : vector<16x1xf32>
    %387 = math.rsqrt %386 : vector<16x1xf32>
    %388 = vector.broadcast %387 : vector<16x1xf32> to vector<16x32xf32>
    %389 = arith.mulf %384, %388 : vector<16x32xf32>
    %390 = vector.broadcast %369 : vector<1x32xf32> to vector<16x32xf32>
    %391 = arith.mulf %389, %390 : vector<16x32xf32>
    %392 = vector.broadcast %371 : vector<1x32xf32> to vector<16x32xf32>
    %393 = arith.addf %391, %392 : vector<16x32xf32>
    %c1_151 = arith.constant 1 : index
    %c0_152 = arith.constant 0 : index
    %c0_153 = arith.constant 0 : index
    %394 = vector.load %arg12[%c1_151, %c0_152, %c0_153] : memref<2x32x128xbf16, #tpu.memory_space<vmem>>, vector<1x32x128xbf16>
    %395 = vector.shape_cast %394 : vector<1x32x128xbf16> to vector<32x128xbf16>
    %c1_154 = arith.constant 1 : index
    %c0_155 = arith.constant 0 : index
    %c0_156 = arith.constant 0 : index
    %396 = vector.load %arg13[%c1_154, %c0_155, %c0_156] : memref<2x1x128xf32, #tpu.memory_space<vmem>>, vector<1x1x128xf32>
    %397 = vector.shape_cast %396 : vector<1x1x128xf32> to vector<1x128xf32>
    %398 = arith.truncf %393 : vector<16x32xf32> to vector<16x32xbf16>
    %cst_157 = arith.constant dense<0.000000e+00> : vector<16x128xf32>
    %399 = tpu.matmul %398, %395, %cst_157 {dimension_numbers = #tpu.dot_dimension_numbers<[1], [0], [0], [1], [0, 0, 1, 1], [], []>} : vector<16x32xbf16>, vector<32x128xbf16>, vector<16x128xf32> -> vector<16x128xf32>
    %400 = vector.broadcast %397 : vector<1x128xf32> to vector<16x128xf32>
    %401 = arith.addf %399, %400 : vector<16x128xf32>
    %cst_158 = arith.constant 5.000000e-01 : f32
    %402 = vector.broadcast %cst_158 : f32 to vector<16x128xf32>
    %403 = arith.mulf %402, %401 : vector<16x128xf32>
    %cst_159 = arith.constant 4.471500e-02 : f32
    %404 = vector.broadcast %cst_159 : f32 to vector<16x128xf32>
    %405 = arith.mulf %404, %401 : vector<16x128xf32>
    %406 = arith.mulf %405, %401 : vector<16x128xf32>
    %407 = arith.mulf %406, %401 : vector<16x128xf32>
    %408 = arith.addf %401, %407 : vector<16x128xf32>
    %cst_160 = arith.constant 0.797884583 : f32
    %409 = vector.broadcast %cst_160 : f32 to vector<16x128xf32>
    %410 = arith.mulf %409, %408 : vector<16x128xf32>
    %411 = math.tanh %410 : vector<16x128xf32>
    %cst_161 = arith.constant 1.000000e+00 : f32
    %412 = vector.broadcast %cst_161 : f32 to vector<16x128xf32>
    %413 = arith.addf %412, %411 : vector<16x128xf32>
    %414 = arith.mulf %403, %413 : vector<16x128xf32>
    %c1_162 = arith.constant 1 : index
    %c0_163 = arith.constant 0 : index
    %c0_164 = arith.constant 0 : index
    %415 = vector.load %arg14[%c1_162, %c0_163, %c0_164] : memref<2x128x32xbf16, #tpu.memory_space<vmem>>, vector<1x128x32xbf16>
    %416 = vector.shape_cast %415 : vector<1x128x32xbf16> to vector<128x32xbf16>
    %c1_165 = arith.constant 1 : index
    %c0_166 = arith.constant 0 : index
    %c0_167 = arith.constant 0 : index
    %417 = vector.load %arg15[%c1_165, %c0_166, %c0_167] : memref<2x1x32xf32, #tpu.memory_space<vmem>>, vector<1x1x32xf32>
    %418 = vector.shape_cast %417 : vector<1x1x32xf32> to vector<1x32xf32>
    %419 = arith.truncf %414 : vector<16x128xf32> to vector<16x128xbf16>
    %cst_168 = arith.constant dense<0.000000e+00> : vector<16x32xf32>
    %420 = tpu.matmul %419, %416, %cst_168 {dimension_numbers = #tpu.dot_dimension_numbers<[1], [0], [0], [1], [0, 0, 1, 1], [], []>} : vector<16x128xbf16>, vector<128x32xbf16>, vector<16x32xf32> -> vector<16x32xf32>
    %421 = vector.broadcast %418 : vector<1x32xf32> to vector<16x32xf32>
    %422 = arith.addf %420, %421 : vector<16x32xf32>
    %423 = arith.addf %393, %422 : vector<16x32xf32>
    %c1_169 = arith.constant 1 : index
    %c0_170 = arith.constant 0 : index
    %c0_171 = arith.constant 0 : index
    %424 = vector.load %arg16[%c1_169, %c0_170, %c0_171] : memref<2x1x32xf32, #tpu.memory_space<vmem>>, vector<1x1x32xf32>
    %425 = vector.shape_cast %424 : vector<1x1x32xf32> to vector<1x32xf32>
    %c1_172 = arith.constant 1 : index
    %c0_173 = arith.constant 0 : index
    %c0_174 = arith.constant 0 : index
    %426 = vector.load %arg17[%c1_172, %c0_173, %c0_174] : memref<2x1x32xf32, #tpu.memory_space<vmem>>, vector<1x1x32xf32>
    %427 = vector.shape_cast %426 : vector<1x1x32xf32> to vector<1x32xf32>
    %cst_175 = arith.constant dense<0.000000e+00> : vector<16xf32>
    %428 = vector.multi_reduction <add>, %423, %cst_175 [1] : vector<16x32xf32> to vector<16xf32>
    %429 = vector.shape_cast %428 : vector<16xf32> to vector<16x1xf32>
    %cst_176 = arith.constant 3.200000e+01 : f32
    %430 = vector.broadcast %cst_176 : f32 to vector<16x1xf32>
    %431 = arith.divf %429, %430 : vector<16x1xf32>
    %432 = vector.broadcast %431 : vector<16x1xf32> to vector<16x32xf32>
    %433 = arith.subf %423, %432 : vector<16x32xf32>
    %434 = arith.mulf %433, %433 : vector<16x32xf32>
    %cst_177 = arith.constant dense<0.000000e+00> : vector<16xf32>
    %435 = vector.multi_reduction <add>, %434, %cst_177 [1] : vector<16x32xf32> to vector<16xf32>
    %436 = vector.shape_cast %435 : vector<16xf32> to vector<16x1xf32>
    %cst_178 = arith.constant 3.200000e+01 : f32
    %437 = vector.broadcast %cst_178 : f32 to vector<16x1xf32>
    %438 = arith.divf %436, %437 : vector<16x1xf32>
    %439 = vector.broadcast %431 : vector<16x1xf32> to vector<16x32xf32>
    %440 = arith.subf %423, %439 : vector<16x32xf32>
    %cst_179 = arith.constant 9.99999996E-13 : f32
    %441 = vector.broadcast %cst_179 : f32 to vector<16x1xf32>
    %442 = arith.addf %438, %441 : vector<16x1xf32>
    %443 = math.rsqrt %442 : vector<16x1xf32>
    %444 = vector.broadcast %443 : vector<16x1xf32> to vector<16x32xf32>
    %445 = arith.mulf %440, %444 : vector<16x32xf32>
    %446 = vector.broadcast %425 : vector<1x32xf32> to vector<16x32xf32>
    %447 = arith.mulf %445, %446 : vector<16x32xf32>
    %448 = vector.broadcast %427 : vector<1x32xf32> to vector<16x32xf32>
    %449 = arith.addf %447, %448 : vector<16x32xf32>
    %450 = vector.shape_cast %449 : vector<16x32xf32> to vector<2x8x32xf32>
    %cst_180 = arith.constant dense<0.000000e+00> : vector<2x32xf32>
    %451 = vector.multi_reduction <add>, %450, %cst_180 [1] : vector<2x8x32xf32> to vector<2x32xf32>
    %cst_181 = arith.constant 8.000000e+00 : f32
    %452 = vector.broadcast %cst_181 : f32 to vector<2x32xf32>
    %453 = arith.divf %451, %452 : vector<2x32xf32>
    %454 = vector.extract_strided_slice %450 {offsets = [0, 0, 0], sizes = [2, 1, 32], strides = [1, 1, 1]} : vector<2x8x32xf32> to vector<2x1x32xf32>
    %455 = vector.shape_cast %454 : vector<2x1x32xf32> to vector<2x32xf32>
    %c0_182 = arith.constant 0 : index
    %c0_183 = arith.constant 0 : index
    %456 = vector.load %arg18[%c0_182, %c0_183] : memref<32x32xbf16, #tpu.memory_space<vmem>>, vector<32x32xbf16>
    %c0_184 = arith.constant 0 : index
    %c0_185 = arith.constant 0 : index
    %457 = vector.load %arg19[%c0_184, %c0_185] : memref<1x32xf32, #tpu.memory_space<vmem>>, vector<1x32xf32>
    %458 = arith.truncf %455 : vector<2x32xf32> to vector<2x32xbf16>
    %cst_186 = arith.constant dense<0.000000e+00> : vector<2x32xf32>
    %459 = tpu.matmul %458, %456, %cst_186 {dimension_numbers = #tpu.dot_dimension_numbers<[1], [0], [0], [1], [0, 0, 1, 1], [], []>} : vector<2x32xbf16>, vector<32x32xbf16>, vector<2x32xf32> -> vector<2x32xf32>
    %460 = vector.broadcast %457 : vector<1x32xf32> to vector<2x32xf32>
    %461 = arith.addf %459, %460 : vector<2x32xf32>
    %462 = math.tanh %461 : vector<2x32xf32>
    %c0_187 = arith.constant 0 : index
    %c0_188 = arith.constant 0 : index
    %463 = vector.load %arg20[%c0_187, %c0_188] : memref<32x16xbf16, #tpu.memory_space<vmem>>, vector<32x16xbf16>
    %c0_189 = arith.constant 0 : index
    %c0_190 = arith.constant 0 : index
    %464 = vector.load %arg21[%c0_189, %c0_190] : memref<1x16xf32, #tpu.memory_space<vmem>>, vector<1x16xf32>
    %465 = arith.truncf %453 : vector<2x32xf32> to vector<2x32xbf16>
    %cst_191 = arith.constant dense<0.000000e+00> : vector<2x16xf32>
    %466 = tpu.matmul %465, %463, %cst_191 {dimension_numbers = #tpu.dot_dimension_numbers<[1], [0], [0], [1], [0, 0, 1, 1], [], []>} : vector<2x32xbf16>, vector<32x16xbf16>, vector<2x16xf32> -> vector<2x16xf32>
    %467 = vector.broadcast %464 : vector<1x16xf32> to vector<2x16xf32>
    %468 = arith.addf %466, %467 : vector<2x16xf32>
    %c0_192 = arith.constant 0 : index
    %c0_193 = arith.constant 0 : index
    %469 = vector.load %arg22[%c0_192, %c0_193] : memref<32x8xbf16, #tpu.memory_space<vmem>>, vector<32x8xbf16>
    %c0_194 = arith.constant 0 : index
    %c0_195 = arith.constant 0 : index
    %470 = vector.load %arg23[%c0_194, %c0_195] : memref<1x8xf32, #tpu.memory_space<vmem>>, vector<1x8xf32>
    %471 = arith.truncf %462 : vector<2x32xf32> to vector<2x32xbf16>
    %cst_196 = arith.constant dense<0.000000e+00> : vector<2x8xf32>
    %472 = tpu.matmul %471, %469, %cst_196 {dimension_numbers = #tpu.dot_dimension_numbers<[1], [0], [0], [1], [0, 0, 1, 1], [], []>} : vector<2x32xbf16>, vector<32x8xbf16>, vector<2x8xf32> -> vector<2x8xf32>
    %473 = vector.broadcast %470 : vector<1x8xf32> to vector<2x8xf32>
    %474 = arith.addf %472, %473 : vector<2x8xf32>
    %c0_197 = arith.constant 0 : index
    %c0_198 = arith.constant 0 : index
    %475 = vector.load %arg24[%c0_197, %c0_198] : memref<32x128xbf16, #tpu.memory_space<vmem>>, vector<32x128xbf16>
    %c0_199 = arith.constant 0 : index
    %c0_200 = arith.constant 0 : index
    %476 = vector.load %arg25[%c0_199, %c0_200] : memref<1x128xf32, #tpu.memory_space<vmem>>, vector<1x128xf32>
    %477 = arith.truncf %453 : vector<2x32xf32> to vector<2x32xbf16>
    %cst_201 = arith.constant dense<0.000000e+00> : vector<2x128xf32>
    %478 = tpu.matmul %477, %475, %cst_201 {dimension_numbers = #tpu.dot_dimension_numbers<[1], [0], [0], [1], [0, 0, 1, 1], [], []>} : vector<2x32xbf16>, vector<32x128xbf16>, vector<2x128xf32> -> vector<2x128xf32>
    %479 = vector.broadcast %476 : vector<1x128xf32> to vector<2x128xf32>
    %480 = arith.addf %478, %479 : vector<2x128xf32>
    %cst_202 = arith.constant 0.000000e+00 : f32
    %481 = vector.broadcast %cst_202 : f32 to vector<2x16xf32>
    %482 = arith.subf %481, %468 : vector<2x16xf32>
    %483 = math.exp %482 : vector<2x16xf32>
    %cst_203 = arith.constant 1.000000e+00 : f32
    %484 = vector.broadcast %cst_203 : f32 to vector<2x16xf32>
    %485 = arith.addf %484, %483 : vector<2x16xf32>
    %cst_204 = arith.constant 1.000000e+00 : f32
    %486 = vector.broadcast %cst_204 : f32 to vector<2x16xf32>
    %487 = arith.divf %486, %485 : vector<2x16xf32>
    %cst_205 = arith.constant dense<0xFF800000> : vector<2xf32>
    %488 = vector.multi_reduction <maximumf>, %474, %cst_205 [1] : vector<2x8xf32> to vector<2xf32>
    %489 = vector.shape_cast %488 : vector<2xf32> to vector<2x1xf32>
    %490 = vector.broadcast %489 : vector<2x1xf32> to vector<2x8xf32>
    %491 = arith.subf %474, %490 : vector<2x8xf32>
    %492 = math.exp %491 : vector<2x8xf32>
    %cst_206 = arith.constant dense<0.000000e+00> : vector<2xf32>
    %493 = vector.multi_reduction <add>, %492, %cst_206 [1] : vector<2x8xf32> to vector<2xf32>
    %494 = vector.shape_cast %493 : vector<2xf32> to vector<2x1xf32>
    %495 = tpu.reciprocal %494 {approx = true} : vector<2x1xf32> -> vector<2x1xf32>
    %496 = vector.broadcast %495 : vector<2x1xf32> to vector<2x8xf32>
    %497 = arith.mulf %492, %496 : vector<2x8xf32>
    %c0_207 = arith.constant 0 : index
    %c0_208 = arith.constant 0 : index
    %498 = vector.load %arg26[%c0_207, %c0_208] : memref<16x128xbf16, #tpu.memory_space<vmem>>, vector<16x128xbf16>
    %c0_209 = arith.constant 0 : index
    %c0_210 = arith.constant 0 : index
    %499 = vector.load %arg27[%c0_209, %c0_210] : memref<1x128xf32, #tpu.memory_space<vmem>>, vector<1x128xf32>
    %500 = arith.truncf %487 : vector<2x16xf32> to vector<2x16xbf16>
    %cst_211 = arith.constant dense<0.000000e+00> : vector<2x128xf32>
    %501 = tpu.matmul %500, %498, %cst_211 {dimension_numbers = #tpu.dot_dimension_numbers<[1], [0], [0], [1], [0, 0, 1, 1], [], []>} : vector<2x16xbf16>, vector<16x128xbf16>, vector<2x128xf32> -> vector<2x128xf32>
    %502 = vector.broadcast %499 : vector<1x128xf32> to vector<2x128xf32>
    %503 = arith.addf %501, %502 : vector<2x128xf32>
    %c0_212 = arith.constant 0 : index
    %c0_213 = arith.constant 0 : index
    %504 = vector.load %arg28[%c0_212, %c0_213] : memref<8x128xbf16, #tpu.memory_space<vmem>>, vector<8x128xbf16>
    %c0_214 = arith.constant 0 : index
    %c0_215 = arith.constant 0 : index
    %505 = vector.load %arg29[%c0_214, %c0_215] : memref<1x128xf32, #tpu.memory_space<vmem>>, vector<1x128xf32>
    %506 = arith.truncf %497 : vector<2x8xf32> to vector<2x8xbf16>
    %cst_216 = arith.constant dense<0.000000e+00> : vector<2x128xf32>
    %507 = tpu.matmul %506, %504, %cst_216 {dimension_numbers = #tpu.dot_dimension_numbers<[1], [0], [0], [1], [0, 0, 1, 1], [], []>} : vector<2x8xbf16>, vector<8x128xbf16>, vector<2x128xf32> -> vector<2x128xf32>
    %508 = vector.broadcast %505 : vector<1x128xf32> to vector<2x128xf32>
    %509 = arith.addf %507, %508 : vector<2x128xf32>
    %c0_217 = arith.constant 0 : index
    %c0_218 = arith.constant 0 : index
    %510 = vector.load %arg30[%c0_217, %c0_218] : memref<128x128xbf16, #tpu.memory_space<vmem>>, vector<128x128xbf16>
    %511 = arith.truncf %503 : vector<2x128xf32> to vector<2x128xbf16>
    %cst_219 = arith.constant dense<0.000000e+00> : vector<2x128xf32>
    %512 = tpu.matmul %511, %510, %cst_219 {dimension_numbers = #tpu.dot_dimension_numbers<[1], [0], [0], [1], [0, 0, 1, 1], [], []>} : vector<2x128xbf16>, vector<128x128xbf16>, vector<2x128xf32> -> vector<2x128xf32>
    %c0_220 = arith.constant 0 : index
    %c0_221 = arith.constant 0 : index
    %513 = vector.load %arg31[%c0_220, %c0_221] : memref<128x128xbf16, #tpu.memory_space<vmem>>, vector<128x128xbf16>
    %514 = arith.truncf %509 : vector<2x128xf32> to vector<2x128xbf16>
    %cst_222 = arith.constant dense<0.000000e+00> : vector<2x128xf32>
    %515 = tpu.matmul %514, %513, %cst_222 {dimension_numbers = #tpu.dot_dimension_numbers<[1], [0], [0], [1], [0, 0, 1, 1], [], []>} : vector<2x128xbf16>, vector<128x128xbf16>, vector<2x128xf32> -> vector<2x128xf32>
    %516 = arith.addf %512, %515 : vector<2x128xf32>
    %c0_223 = arith.constant 0 : index
    %c0_224 = arith.constant 0 : index
    %517 = vector.load %arg32[%c0_223, %c0_224] : memref<1x128xf32, #tpu.memory_space<vmem>>, vector<1x128xf32>
    %518 = vector.broadcast %517 : vector<1x128xf32> to vector<2x128xf32>
    %519 = arith.addf %516, %518 : vector<2x128xf32>
    %cst_225 = arith.constant 0.000000e+00 : f32
    %520 = vector.broadcast %cst_225 : f32 to vector<2x128xf32>
    %521 = arith.subf %520, %519 : vector<2x128xf32>
    %522 = math.exp %521 : vector<2x128xf32>
    %cst_226 = arith.constant 1.000000e+00 : f32
    %523 = vector.broadcast %cst_226 : f32 to vector<2x128xf32>
    %524 = arith.addf %523, %522 : vector<2x128xf32>
    %cst_227 = arith.constant 1.000000e+00 : f32
    %525 = vector.broadcast %cst_227 : f32 to vector<2x128xf32>
    %526 = arith.divf %525, %524 : vector<2x128xf32>
    %527 = arith.mulf %526, %503 : vector<2x128xf32>
    %cst_228 = arith.constant 1.000000e+00 : f32
    %528 = vector.broadcast %cst_228 : f32 to vector<2x128xf32>
    %529 = arith.subf %528, %526 : vector<2x128xf32>
    %530 = arith.mulf %529, %509 : vector<2x128xf32>
    %531 = arith.addf %527, %530 : vector<2x128xf32>
    %cst_229 = arith.constant 0.000000e+00 : f32
    %532 = vector.broadcast %cst_229 : f32 to vector<2x104xf32>
    %533 = arith.addf %480, %531 : vector<2x128xf32>
    %534 = tpu.concatenate %468, %474, %532, %533 in 1 : vector<2x16xf32>, vector<2x8xf32>, vector<2x104xf32>, vector<2x128xf32> -> vector<2x256xf32>
    %c0_230 = arith.constant 0 : index
    %c0_231 = arith.constant 0 : index
    %535 = vector.load %arg33[%c0_230, %c0_231] : memref<2x256xf32, #tpu.memory_space<vmem>>, vector<2x256xf32>
    tpu.vector_store %arg33[%c0_230, %c0_231], %534 {strides = array<i32>} : memref<2x256xf32, #tpu.memory_space<vmem>>, vector<2x256xf32>,
    return
  }
}

</mosaic_0001>

<bundles_post_ra>
// kernel: tcm_joint_forward.1
= control target key start
LH: loop header
LB: loop body
LE: loop exit
PB: predicated region body
PF: predicated region fallthrough
CT: control target
= control target key end

     0   :  { %v5035_v0 = vmov 0.0   ;;  %s5036_s3 = smov 4   ;;  %s5037_s7 = smov 2   ;;  %vm5038_vm0 = vmmov 0   ;;  %vm193_vm1 = vcmask 261120   ;;  %vm384_vm2 = vcmask 64512   ;;  %s5870_s0 = inlined_call_operand.smem [shape: u32[34], index: -1, kind: input, shape index: {}] }
   0x1   :  { %4417 = vmatprep.subr.bf16.mxu1 %v5035_v0  ;;  %s5083_s6 = sld [smem:[%s5870_s0 + %s5036_s3]]   ;;  %4409 = vmatprep.subr.bf16.mxu0 %v5035_v0  ;;  %s5039_s14 = smov 6   ;;  %vm504_vm3 = vcmask 1043456   ;;  %v5045_v43 = vmov 1966171168   ;;  %v154_v45 = vlaneseq  ;;  %vm3386_vm4 = vcmask 1041409  }
   0x2   :  { %s5089_s10 = sld [smem:[%s5870_s0 + %s5037_s7]]   ;;  %4421 = vmatprep.mubr.msk.bf16.mxu1 %vm5038_vm0, %v5035_v0  ;;  %4413 = vmatprep.mubr.msk.bf16.mxu0 %vm5038_vm0, %v5035_v0  ;;  %s5040_s18 = smov 5   ;;  %v152_v44 = vunpack.c.l.s4 %v5045_v43  ;;  %vm3683_vm5 = vcmask 130048   ;;  %vm3655_vm6 = vcmask 58368   ;;  %vm4016_vm7 = vcmask 195584  }
   0x3   :  { %s1_s13 = sld [smem:[%s5870_s0]]   ;;  %s5041_s22 = smov 3   ;;  %v155_v47 = vshrl.u32 %v154_v45, 7 }
   0x4   :  { %s5101_s17 = sld [smem:[%s5870_s0 + %s5039_s14]]   ;;  %s5042_s26 = smov 120   ;;  %v153_v46 = vunpack.c.0.s8 %v152_v44 }
   0x5   :  { %s5133_s21 = sld [smem:[%s5870_s0 + %s5040_s18]]   ;;  %s5043_s27 = smov 7   ;;  %v376_v52 = vsub.s32 0, %v155_v47 }
   0x6   :  { %s5138_s25 = sld [smem:[%s5870_s0 + %s5041_s22]]   ;;  %s5044_s1 = smov 1   ;;  %v156_v49 = vsub.s32 %v153_v46, %v155_v47 }
   0x7   :  { %v4876_v1 = vld [vmem:[%s5083_s6] sm:$0xff]   ;;  %v4878_v3 = vld [vmem:[%s5083_s6 + $0x8] sm:$0xff]   ;;  %s5169_s30 = sld [smem:[%s5870_s0 + %s5043_s27]]   ;;  %s5046_s5 = smov 112  }
   0x8   :  { %v4877_v2 = vld [vmem:[%s5089_s10] sm:$0xff]   ;;  %4418 = vmatpush3.bf16.msra.mxu1 %v4876_v1  ;;  %v4879_v4 = vld [vmem:[%s5089_s10 + $0x8] sm:$0xff]   ;;  %s4034_s4 = sld [smem:[%s5870_s0 + %s5044_s1]]   ;;  %s5047_s7 = smov 8  }
   0x9   :  { %4410 = vmatpush3.bf16.msra.mxu0 %v4877_v2  ;;  %4419 = vmatprep.subr.bf16.mxu1 %v5035_v0  ;;  %v5109_v5 = vld [vmem:[%s1_s13] sm:$0xff]  ;;  %v5111_v6 = vld [vmem:[%s1_s13 + $0x8] sm:$0xff]  ;;  %s5246_s11 = sld [smem:[%s5870_s0 + %s5047_s7]]   ;;  %s5048_s12 = smov 104  }
   0xa   :  { %4411 = vmatprep.subr.bf16.mxu0 %v5035_v0  ;;  %v174_v7 = vpack.c.bf16 %v5111_v6, %v5109_v5  ;;  %v4880_v8 = vld [vmem:[%s5101_s17] sm:$0xff]   ;;  %v4881_v9 = vld [vmem:[%s5101_s17 + $0x8] sm:$0xff]   ;;  %s5049_s13 = smov 9   ;;  %s5050_s18 = smov 12  }
   0xb   :  { %v4072_v10 = vld [vmem:[%s5133_s21] ss:$0 sm:$0xff]  ;;  %s5362_s16 = sld [smem:[%s5870_s0 + %s5049_s13]]   ;;  %s5051_s23 = smov 10  }
   0xc   :  { %4420 = vmatpush3.bf16.msra.mxu1 %v4878_v3  ;;  %v4068_v11 = vld [vmem:[%s5138_s25] ss:$0 sm:$0xff]  ;;  %s5375_s22 = sld [smem:[%s5870_s0 + %s5050_s18]]   ;;  %s5052_s29 = smov 11  }
   0xd   :  { %4412 = vmatpush3.bf16.msra.mxu0 %v4879_v4  ;;  %4433 = vmatprep.subr.bf16.mxu1 %v5035_v0  ;;  %v4076_v36 = vld [vmem:[%s5169_s30] ss:$0 sm:$0xff]  ;;  %s5384_s28 = sld [smem:[%s5870_s0 + %s5051_s23]]   ;;  %s5054_s13 = smov 13  }
   0xe   :  { %4425 = vmatprep.subr.bf16.mxu0 %v5035_v0  ;;  %v4067_v48 = vld.sshfl [vmem:[%s4034_s4] sm:$0x11 pattern:$0x75316420]  ;;  %s5389_s3 = sld [smem:[%s5870_s0 + %s5052_s29]]   ;;  %s5053_s4 = smov 14  }
   0xf   :  { %4422 = vmatmul.mubr.msk.bf16.vlgmr.msra.gmra.mrb[0].mxu1 %vm193_vm1, %v174_v7  ;;  %v150_v50 = vcombine.high %v4067_v48, %v4067_v48  ;;  %v157_v51 = vrot.slane %v4067_v48, %v156_v49  ;;  %s5405_s9 = sld [smem:[%s5870_s0 + %s5053_s4]]   ;;  %s5055_s19 = smov 15  }
  0x10   :  { %4414 = vmatmul.mubr.msk.bf16.vlgmr.msra.gmra.mrb[0].mxu0 %vm193_vm1, %v174_v7  ;;  %4435 = vmatprep.mubr.msk.bf16.mxu1 %vm5038_vm0, %v5035_v0  ;;  %s5426_s18 = sld [smem:[%s5870_s0 + %s5054_s13]]   ;;  %s5056_s27 = smov 16  }
  0x11   :  { %4426 = vmatpush3.bf16.msra.mxu0 %v4880_v8  ;;  %4429 = vmatprep.mubr.msk.bf16.mxu0 %vm5038_vm0, %v5035_v0  ;;  %v164_v53 = vrot.slane %v150_v50, %v156_v49  ;;  %v5185_v54 = vrot.slane %v157_v51, %v376_v52  ;;  %s5434_s24 = sld [smem:[%s5870_s0 + %s5055_s19]]   ;;  %s5062_s15 = smov 26  }
  0x12   :  { %4427 = vmatprep.subr.bf16.mxu0 %v5035_v0  ;;  %s5451_s2 = sld [smem:[%s5870_s0 + %s5056_s27]]   ;;  %s5063_s23 = smov 19  }
  0x13   :  { %v5187_v55 = vrot.slane %v164_v53, %v376_v52  ;;  %s4059_s20 = sld [smem:[%s5870_s0 + %s5062_s15]]   ;;  %s5069_s13 = smov 27  }
  0x14   :  { %s4052_s1 = sld [smem:[%s5870_s0 + %s5063_s23]]   ;;  %s5070_s19 = smov 29  }
  0x15   :  { %4428 = vmatpush3.bf16.msra.mxu0 %v4881_v9  ;;  %s5071_s29 = smov 32   ;;  %s5072_s4 = smov 25  }
  0x16   :  { %4439 = vmatprep.subr.bf16.mxu0 %v5035_v0 }
  0x18   :  { %4430 = vmatmul.mubr.msk.bf16.vlgmr.msra.gmra.mrb[4].mxu0 %vm193_vm1, %v174_v7 }
  0x19   :  { %4441 = vmatprep.mubr.msk.bf16.mxu0 %vm5038_vm0, %v5035_v0 }
  0xe2   :  { %v297_v12 = vpop.f32.mrb[0].mxu1 }
  0xe3   :  { %v298_v13 = vadd.f32 %v4072_v10, %v297_v12  ;;  %v4423_v14 = vpop.f32.mrb[1].mxu1  ;;  %v231_v15 = vpop.f32.mrb[0].mxu0 }
  0xe4   :  { %v300_v16 = vpop.f32.mrb[2].mxu1  ;;  %v232_v17 = vadd.f32 %v4068_v11, %v231_v15  ;;  %v4415_v18 = vpop.f32.mrb[1].mxu0 }
  0xe5   :  { %v5142_v19 = vpack.c.bf16 %v298_v13, %v298_v13  ;;  %v301_v20 = vadd.f32 %v4072_v10, %v300_v16  ;;  %v4424_v21 = vpop.f32.mrb[3].mxu1  ;;  %v234_v22 = vpop.f32.mrb[2].mxu0 }
  0xe6   :  { %v4416_v23 = vpop.f32.mrb[3].mxu0  ;;  %v238_v25 = vmul.f32 0.35355338, %v232_v17  ;;  %v235_v26 = vadd.f32 %v4068_v11, %v234_v22 }
  0xe7   :  { %v5144_v24 = vpack.c.bf16 %v301_v20, %v301_v20  ;;  %v389_v27 = vsel %vm384_vm2, %v5142_v19, 0 }
  0xe8   :  { %4434 = vmatpush3.bf16.xpose.msra.mxu1 %v389_v27  ;;  %v5153_v29 = vpack.c.bf16 %v238_v25, %v238_v25  ;;  %v239_v30 = vmul.f32 0.35355338, %v235_v26 }
  0xe9   :  { %651 = vrot.lane.b32.xlu1 %v5144_v24, %s5042_s26  ;;  %v435_v28 = vsel %vm384_vm2, %v5144_v24, 0  ;;  %4445 = vmatprep.subr.bf16.mxu1 %v5035_v0 }
  0xea   :  { %4440 = vmatpush3.bf16.xpose.msra.mxu0 %v435_v28  ;;  %v5156_v35 = vpack.c.bf16 %v239_v30, %v239_v30 }
  0xeb   :  { %v361_v31 = vpop.f32.mrb[4].mxu0  ;;  %4451 = vmatprep.subr.bf16.mxu0 %v5035_v0 }
  0xec   :  { %v4431_v32 = vpop.f32.mrb[5].mxu0  ;;  %v362_v37 = vadd.f32 %v4076_v36, %v361_v31 }
  0xed   :  { %v364_v33 = vpop.f32.mrb[6].mxu0 }
  0xee   :  { %v4432_v34 = vpop.f32.mrb[7].mxu0  ;;  %v365_v38 = vadd.f32 %v4076_v36, %v364_v33  ;;  %v5172_v39 = vpack.c.bf16 %v362_v37, %v362_v37 }
  0xef   :  { %4436 = vmatmul.mubr.msk.bf16.vlgmr.msra.gmra.mrb[4].mxu1 %vm384_vm2, %v5153_v29 }
  0xf0   :  { %4447 = vmatprep.mubr.msk.bf16.mxu1 %vm5038_vm0, %v5035_v0  ;;  %v5174_v40 = vpack.c.bf16 %v365_v38, %v365_v38  ;;  %v506_v41 = vsel %vm504_vm3, %v5172_v39, 0 }
  0xf1   :  { %4442 = vmatmul.mubr.msk.bf16.vlgmr.msra.gmra.mrb[8].mxu0 %vm384_vm2, %v5156_v35  ;;  %4446 = vmatpush3.bf16.msra.mxu1 %v506_v41 }
  0xf2   :  { %4453 = vmatprep.mubr.msk.bf16.mxu0 %vm5038_vm0, %v5035_v0  ;;  %v552_v42 = vsel %vm504_vm3, %v5174_v40, 0  ;;  %4457 = vmatprep.subr.bf16.mxu1 %v5035_v0 }
  0xf3   :  { %4452 = vmatpush3.bf16.msra.mxu0 %v552_v42 }
  0xf4   :  { %4463 = vmatprep.subr.bf16.mxu0 %v5035_v0 }
 0x15b   :  { %v652_v17 = vpop.permute.xlu1 %651 }
 0x15c   :  { %v657_v31 = vsel %vm384_vm2, %v652_v17, 0 }
 0x1c2   :  { %v425_v56 = vpop.f32.mrb[4].mxu1 }
 0x1c3   :  { %v426_v57 = vadd.f32 %v425_v56, %v5185_v54  ;;  %v4437_v58 = vpop.f32.mrb[5].mxu1 }
 0x1c4   :  { %v428_v59 = vpop.f32.mrb[6].mxu1  ;;  %v471_v60 = vpop.f32.mrb[8].mxu0 }
 0x1c5   :  { %v472_v61 = vadd.f32 %v471_v60, %v5187_v55  ;;  %v4438_v62 = vpop.f32.mrb[7].mxu1  ;;  %v4443_v63 = vpop.f32.mrb[9].mxu0  ;;  %v477_v1 = vsel %vm384_vm2, %v426_v57, -inf }
 0x1c6   :  { %478 = vmax.xlane.f32.xlu0 %v477_v1  ;;  %v474_v2 = vpop.f32.mrb[10].mxu0 }
 0x1c7   :  { %v4444_v3 = vpop.f32.mrb[11].mxu0  ;;  %v480_v4 = vsel %vm384_vm2, %v472_v61, -inf }
 0x1ca   :  { %481 = vmax.xlane.f32.xlu0 %v480_v4 }
 0x1e0   :  { %599 = vrot.lane.b32.xlu0 %v5142_v19, %s5042_s26 }
 0x253   :  { %v479_v7 = vpop.xlane.xlu0 %478 }
 0x254   :  { %v483_v8 = vsub.f32 %v426_v57, %v479_v7 }
 0x256   :  { %v485_v9 = vmul.f32 1.442695, %v483_v8 }
 0x257   :  { %v482_v10 = vpop.xlane.xlu0 %481 }
 0x258   :  { %4933 = vpow2.f32 %v485_v9  ;;  %v484_v11 = vsub.f32 %v472_v61, %v482_v10 }
 0x25a   :  { %v487_v12 = vmul.f32 1.442695, %v484_v11 }
 0x25b   :  { %v600_v23 = vpop.permute.xlu0 %599 }
 0x25c   :  { %4935 = vpow2.f32 %v487_v12  ;;  %v605_v27 = vsel %vm384_vm2, %v600_v23, 0 }
 0x262   :  { %v4934_v13 = vpop.eup %4933 }
 0x263   :  { %v489_v14 = vsel %vm384_vm2, %v4934_v13, 0.0 }
 0x264   :  { %490 = vadd.xlane.f32.xlu1 %v489_v14 }
 0x266   :  { %v4936_v15 = vpop.eup %4935 }
 0x267   :  { %v492_v16 = vsel %vm384_vm2, %v4936_v15, 0.0 }
 0x268   :  { %493 = vadd.xlane.f32.xlu1 %v492_v16  ;;  %v166_v16 = vld [vmem:[%s5246_s11 + $0x4] sm:$0xf] }
 0x279   :  { %596 = vrot.lane.b32.xlu1 %v5153_v29, %s5042_s26 }
 0x27d   :  { %648 = vrot.lane.b32.xlu1 %v5156_v35, %s5042_s26 }
 0x2f1   :  { %v491_v18 = vpop.xlane.xlu1 %490 }
 0x2f2   :  { %4937 = vrcp.f32 %v491_v18 }
 0x2f5   :  { %v494_v20 = vpop.xlane.xlu1 %493 }
 0x2f6   :  { %4939 = vrcp.f32 %v494_v20  ;;  %v826_v20 = vsel %vm504_vm3, %v166_v16, 0 }
 0x2f9   :  { %v597_v32 = vpop.permute.xlu1 %596 }
 0x2fc   :  { %v4938_v21 = vpop.eup %4937 }
 0x2fd   :  { %v497_v22 = vmul.f32 %v4938_v21, %v4934_v13  ;;  %v649_v33 = vpop.permute.xlu1 %648 }
 0x2ff   :  { %v499_v25 = vpack.c.bf16 %v497_v22, %v497_v22  ;;  %v165_v22 = vld [vmem:[%s5246_s11] sm:$0xf] }
 0x300   :  { %v4940_v26 = vpop.eup %4939 }
 0x301   :  { %v498_v28 = vmul.f32 %v4940_v26, %v4936_v15  ;;  %4448 = vmatmul.mubr.msk.bf16.vlgmr.msra.gmra.mrb[8].mxu1 %vm384_vm2, %v499_v25  ;;  %v873_v26 = vsel %vm504_vm3, %v165_v22, 0 }
 0x302   :  { %4458 = vmatpush3.bf16.xpose.msra.mxu1 %v605_v27  ;;  %4459 = vmatprep.mubr.msk.bf16.mxu1 %vm5038_vm0, %v5035_v0 }
 0x303   :  { %v500_v30 = vpack.c.bf16 %v498_v28, %v498_v28  ;;  %4469 = vmatprep.subr.bf16.mxu1 %v5035_v0 }
 0x305   :  { %4454 = vmatmul.mubr.msk.bf16.vlgmr.msra.gmra.mrb[12].mxu0 %vm384_vm2, %v500_v30 }
 0x306   :  { %4464 = vmatpush3.bf16.xpose.msra.mxu0 %v657_v31  ;;  %4465 = vmatprep.mubr.msk.bf16.mxu0 %vm5038_vm0, %v5035_v0 }
 0x307   :  { %4475 = vmatprep.subr.bf16.mxu0 %v5035_v0 }
 0x309   :  { %4460 = vmatmul.mubr.msk.bf16.vlgmr.msra.gmra.mrb[12].mxu1 %vm384_vm2, %v597_v32 }
 0x30a   :  { %4471 = vmatprep.mubr.msk.bf16.mxu1 %vm5038_vm0, %v5035_v0 }
 0x30d   :  { %4466 = vmatmul.mubr.msk.bf16.vlgmr.msra.gmra.mrb[16].mxu0 %vm384_vm2, %v649_v33 }
 0x30e   :  { %4477 = vmatprep.mubr.msk.bf16.mxu0 %vm5038_vm0, %v5035_v0 }
 0x3d4   :  { %v5217_v34 = vpop.f32.mrb[8].mxu1 }
 0x3d5   :  { %v4449_v36 = vpop.f32.mrb[9].mxu1 }
 0x3d6   :  { %v545_v37 = vpop.f32.mrb[10].mxu1 }
 0x3d7   :  { %v4450_v38 = vpop.f32.mrb[11].mxu1 }
 0x3d8   :  { %v5219_v41 = vpop.f32.mrb[12].mxu0 }
 0x3d9   :  { %v594_v42 = vpack.c.bf16 %v5219_v41, %v5217_v34  ;;  %v4455_v43 = vpop.f32.mrb[13].mxu0 }
 0x3da   :  { %v591_v44 = vpop.f32.mrb[14].mxu0 }
 0x3db   :  { %v4456_v45 = vpop.f32.mrb[15].mxu0 }
 0x3dc   :  { %v641_v46 = vpop.f32.mrb[12].mxu1 }
 0x3dd   :  { %v642_v47 = vadd.f32 %v641_v46, %v5185_v54  ;;  %v4461_v48 = vpop.f32.mrb[13].mxu1 }
 0x3de   :  { %v644_v49 = vpop.f32.mrb[14].mxu1 }
 0x3df   :  { %v4462_v50 = vpop.f32.mrb[15].mxu1  ;;  %v699_v51 = vsel %vm384_vm2, %v642_v47, -inf }
 0x3e0   :  { %700 = vmax.xlane.f32.xlu0 %v699_v51  ;;  %v693_v52 = vpop.f32.mrb[16].mxu0 }
 0x3e1   :  { %v694_v53 = vadd.f32 %v693_v52, %v5187_v55  ;;  %v4467_v56 = vpop.f32.mrb[17].mxu0 }
 0x3e2   :  { %v696_v57 = vpop.f32.mrb[18].mxu0 }
 0x3e3   :  { %v4468_v58 = vpop.f32.mrb[19].mxu0  ;;  %v702_v59 = vsel %vm384_vm2, %v694_v53, -inf }
 0x3e4   :  { %703 = vmax.xlane.f32.xlu1 %v702_v59 }
 0x3f5   :  { %773 = vrot.lane.b32.xlu1 %v5174_v40, %s5042_s26 }
 0x3f9   :  { %918 = vrot.lane.b32.xlu1 %v5142_v19, %s5046_s5 }
 0x3fd   :  { %968 = vrot.lane.b32.xlu1 %v5144_v24, %s5046_s5 }
 0x401   :  { %966 = vrot.lane.b32.xlu1 %v5156_v35, %s5046_s5 }
 0x46d   :  { %v701_v60 = vpop.xlane.xlu0 %700 }
 0x46e   :  { %v705_v61 = vsub.f32 %v642_v47, %v701_v60 }
 0x470   :  { %v707_v62 = vmul.f32 1.442695, %v705_v61 }
 0x471   :  { %v704_v63 = vpop.xlane.xlu1 %703 }
 0x472   :  { %4941 = vpow2.f32 %v707_v62  ;;  %v706_v1 = vsub.f32 %v694_v53, %v704_v63 }
 0x474   :  { %v709_v2 = vmul.f32 1.442695, %v706_v1 }
 0x475   :  { %v774_v3 = vpop.permute.xlu1 %773 }
 0x476   :  { %4943 = vpow2.f32 %v709_v2  ;;  %v779_v4 = vsel %vm504_vm3, %v774_v3, 0 }
 0x477   :  { %4476 = vmatpush3.bf16.msra.mxu0 %v779_v4 }
 0x478   :  { %4487 = vmatprep.subr.bf16.mxu0 %v5035_v0 }
 0x479   :  { %v919_v27 = vpop.permute.xlu1 %918 }
 0x47a   :  { %v924_v43 = vsel %vm384_vm2, %v919_v27, 0 }
 0x47c   :  { %v4942_v7 = vpop.eup %4941 }
 0x47d   :  { %v711_v8 = vsel %vm384_vm2, %v4942_v7, 0.0  ;;  %v969_v28 = vpop.permute.xlu1 %968 }
 0x47e   :  { %712 = vadd.xlane.f32.xlu0 %v711_v8  ;;  %v974_v30 = vsel %vm384_vm2, %v969_v28, 0 }
 0x480   :  { %v4944_v9 = vpop.eup %4943 }
 0x481   :  { %v714_v10 = vsel %vm384_vm2, %v4944_v9, 0.0  ;;  %v967_v31 = vpop.permute.xlu1 %966 }
 0x482   :  { %715 = vadd.xlane.f32.xlu0 %v714_v10 }
 0x498   :  { %724 = vrot.lane.b32.xlu0 %v5172_v39, %s5042_s26 }
 0x49c   :  { %916 = vrot.lane.b32.xlu0 %v5153_v29, %s5046_s5 }
 0x50b   :  { %v713_v11 = vpop.xlane.xlu0 %712 }
 0x50c   :  { %4945 = vrcp.f32 %v713_v11 }
 0x50f   :  { %v716_v12 = vpop.xlane.xlu0 %715 }
 0x510   :  { %4947 = vrcp.f32 %v716_v12 }
 0x513   :  { %v725_v13 = vpop.permute.xlu0 %724 }
 0x514   :  { %v730_v14 = vsel %vm504_vm3, %v725_v13, 0 }
 0x515   :  { %4470 = vmatpush3.bf16.msra.mxu1 %v730_v14 }
 0x516   :  { %v4946_v15 = vpop.eup %4945  ;;  %4481 = vmatprep.subr.bf16.mxu1 %v5035_v0 }
 0x517   :  { %v719_v17 = vmul.f32 %v4946_v15, %v4942_v7  ;;  %v917_v47 = vpop.permute.xlu0 %916 }
 0x519   :  { %v721_v18 = vpack.c.bf16 %v719_v17, %v719_v17 }
 0x51a   :  { %v4948_v21 = vpop.eup %4947 }
 0x51b   :  { %v720_v23 = vmul.f32 %v4948_v21, %v4944_v9  ;;  %4472 = vmatmul.mubr.msk.bf16.vlgmr.msra.gmra.mrb[16].mxu1 %vm384_vm2, %v721_v18 }
 0x51c   :  { %4482 = vmatpush3.bf16.msra.mxu1 %v826_v20  ;;  %4483 = vmatprep.mubr.msk.bf16.mxu1 %vm5038_vm0, %v5035_v0 }
 0x51d   :  { %v722_v25 = vpack.c.bf16 %v720_v23, %v720_v23  ;;  %4493 = vmatprep.subr.bf16.mxu1 %v5035_v0 }
 0x51f   :  { %4478 = vmatmul.mubr.msk.bf16.vlgmr.msra.gmra.mrb[20].mxu0 %vm384_vm2, %v722_v25 }
 0x520   :  { %4488 = vmatpush3.bf16.msra.mxu0 %v873_v26  ;;  %4489 = vmatprep.mubr.msk.bf16.mxu0 %vm5038_vm0, %v5035_v0 }
 0x521   :  { %4499 = vmatprep.subr.bf16.mxu0 %v5035_v0 }
 0x527   :  { %4490 = vmatmul.mubr.msk.bf16.vlgmr.msra.gmra.mrb[24].mxu0 %vm384_vm2, %v594_v42 }
 0x528   :  { %4501 = vmatprep.mubr.msk.bf16.mxu0 %vm5038_vm0, %v5035_v0 }
 0x529   :  { %4500 = vmatpush3.bf16.xpose.msra.mxu0 %v974_v30 }
 0x52a   :  { %4511 = vmatprep.subr.bf16.mxu0 %v5035_v0 }
 0x530   :  { %4502 = vmatmul.mubr.msk.bf16.vlgmr.msra.gmra.mrb[28].mxu0 %vm384_vm2, %v967_v31 }
 0x531   :  { %4513 = vmatprep.mubr.msk.bf16.mxu0 %vm5038_vm0, %v5035_v0 }
 0x5ee   :  { %v766_v32 = vpop.f32.mrb[16].mxu1 }
 0x5ef   :  { %v4473_v33 = vpop.f32.mrb[17].mxu1 }
 0x5f0   :  { %v769_v36 = vpop.f32.mrb[18].mxu1 }
 0x5f1   :  { %v4474_v34 = vpop.f32.mrb[19].mxu1 }
 0x5f2   :  { %v815_v37 = vpop.f32.mrb[20].mxu0 }
 0x5f3   :  { %v821_v38 = vpack.c.bf16 %v815_v37, %v766_v32  ;;  %v4479_v41 = vpop.f32.mrb[21].mxu0 }
 0x5f4   :  { %v818_v42 = vpop.f32.mrb[22].mxu0 }
 0x5f5   :  { %v4480_v44 = vpop.f32.mrb[23].mxu0  ;;  %4484 = vmatmul.mubr.msk.bf16.vlgmr.msra.gmra.mrb[20].mxu1 %vm384_vm2, %v821_v38  ;;  %v167_v38 = vld [vmem:[%s5246_s11 + $0x8] sm:$0xf] }
 0x5f6   :  { %4494 = vmatpush3.bf16.xpose.msra.mxu1 %v924_v43  ;;  %4495 = vmatprep.mubr.msk.bf16.mxu1 %vm5038_vm0, %v5035_v0  ;;  %v1141_v41 = vsel %vm504_vm3, %v167_v38, 0 }
 0x5f7   :  { %4505 = vmatprep.subr.bf16.mxu1 %v5035_v0 }
 0x5fa   :  { %v909_v45 = vpop.f32.mrb[24].mxu0 }
 0x5fb   :  { %v4491_v46 = vpop.f32.mrb[25].mxu0 }
 0x5fc   :  { %v912_v48 = vpop.f32.mrb[26].mxu0 }
 0x5fd   :  { %v4492_v49 = vpop.f32.mrb[27].mxu0  ;;  %4496 = vmatmul.mubr.msk.bf16.vlgmr.msra.gmra.mrb[24].mxu1 %vm384_vm2, %v917_v47 }
 0x5fe   :  { %4507 = vmatprep.mubr.msk.bf16.mxu1 %vm5038_vm0, %v5035_v0 }
 0x603   :  { %v1010_v50 = vpop.f32.mrb[28].mxu0 }
 0x604   :  { %v1011_v51 = vadd.f32 %v1010_v50, %v5187_v55  ;;  %v4503_v52 = vpop.f32.mrb[29].mxu0 }
 0x605   :  { %v1013_v53 = vpop.f32.mrb[30].mxu0 }
 0x606   :  { %v4504_v56 = vpop.f32.mrb[31].mxu0  ;;  %v1019_v57 = vsel %vm384_vm2, %v1011_v51, -inf }
 0x607   :  { %1020 = vmax.xlane.f32.xlu1 %v1019_v57 }
 0x618   :  { %1088 = vrot.lane.b32.xlu1 %v5174_v40, %s5046_s5 }
 0x61c   :  { %1188 = vrot.lane.b32.xlu1 %v5142_v19, %s5048_s12 }
 0x620   :  { %1238 = vrot.lane.b32.xlu1 %v5144_v24, %s5048_s12 }
 0x624   :  { %1236 = vrot.lane.b32.xlu1 %v5156_v35, %s5048_s12 }
 0x694   :  { %v1021_v58 = vpop.xlane.xlu1 %1020 }
 0x695   :  { %v1023_v61 = vsub.f32 %v1011_v51, %v1021_v58 }
 0x697   :  { %v1026_v62 = vmul.f32 1.442695, %v1023_v61 }
 0x698   :  { %v1089_v59 = vpop.permute.xlu1 %1088 }
 0x699   :  { %v1094_v60 = vsel %vm504_vm3, %v1089_v59, 0  ;;  %4949 = vpow2.f32 %v1026_v62 }
 0x69a   :  { %4512 = vmatpush3.bf16.msra.mxu0 %v1094_v60 }
 0x69b   :  { %4523 = vmatprep.subr.bf16.mxu0 %v5035_v0 }
 0x69c   :  { %v1189_v22 = vpop.permute.xlu1 %1188 }
 0x69d   :  { %v1194_v25 = vsel %vm384_vm2, %v1189_v22, 0 }
 0x6a3   :  { %v4950_v11 = vpop.eup %4949 }
 0x6a4   :  { %v1031_v12 = vsel %vm384_vm2, %v4950_v11, 0.0 }
 0x6c8   :  { %v862_v63 = vpop.f32.mrb[20].mxu1 }
 0x6c9   :  { %v5293_v1 = vadd.f32 %v909_v45, %v862_v63  ;;  %v4485_v2 = vpop.f32.mrb[21].mxu1 }
 0x6ca   :  { %v865_v19 = vpop.f32.mrb[22].mxu1 }
 0x6cb   :  { %v5295_v3 = vadd.f32 %v912_v48, %v865_v19  ;;  %v4486_v24 = vpop.f32.mrb[23].mxu1  ;;  %v1239_v48 = vpop.permute.xlu1 %1238 }
 0x6cc   :  { %v1244_v53 = vsel %vm384_vm2, %v1239_v48, 0 }
 0x6cf   :  { %v1237_v57 = vpop.permute.xlu1 %1236 }
 0x6d0   :  { %v960_v4 = vpop.f32.mrb[24].mxu1 }
 0x6d1   :  { %v961_v35 = vadd.f32 %v960_v4, %v5185_v54  ;;  %v4497_v7 = vpop.f32.mrb[25].mxu1 }
 0x6d2   :  { %v963_v8 = vpop.f32.mrb[26].mxu1 }
 0x6d3   :  { %v4498_v9 = vpop.f32.mrb[27].mxu1  ;;  %v1016_v10 = vsel %vm384_vm2, %v961_v35, -inf }
 0x6d4   :  { %1017 = vmax.xlane.f32.xlu0 %v1016_v10 }
 0x6d8   :  { %1032 = vadd.xlane.f32.xlu0 %v1031_v12 }
 0x761   :  { %v1018_v13 = vpop.xlane.xlu0 %1017 }
 0x762   :  { %v1022_v14 = vsub.f32 %v961_v35, %v1018_v13 }
 0x764   :  { %v1024_v15 = vmul.f32 1.442695, %v1022_v14 }
 0x765   :  { %v1033_v16 = vpop.xlane.xlu0 %1032 }
 0x766   :  { %4951 = vpow2.f32 %v1024_v15 }
 0x767   :  { %4953 = vrcp.f32 %v1033_v16 }
 0x770   :  { %v4952_v17 = vpop.eup %4951 }
 0x771   :  { %v4954_v18 = vpop.eup %4953  ;;  %v1028_v20 = vsel %vm384_vm2, %v4952_v17, 0.0 }
 0x772   :  { %v1037_v21 = vmul.f32 %v4954_v18, %v4950_v11  ;;  %1029 = vadd.xlane.f32.xlu0 %v1028_v20 }
 0x774   :  { %v1039_v23 = vpack.c.bf16 %v1037_v21, %v1037_v21 }
 0x776   :  { %4514 = vmatmul.mubr.msk.bf16.vlgmr.msra.gmra.mrb[32].mxu0 %vm384_vm2, %v1039_v23 }
 0x777   :  { %4524 = vmatpush3.bf16.xpose.msra.mxu0 %v1194_v25  ;;  %4525 = vmatprep.mubr.msk.bf16.mxu0 %vm5038_vm0, %v5035_v0 }
 0x778   :  { %4535 = vmatprep.subr.bf16.mxu0 %v5035_v0 }
 0x788   :  { %1040 = vrot.lane.b32.xlu0 %v5172_v39, %s5046_s5 }
 0x78c   :  { %1186 = vrot.lane.b32.xlu0 %v5153_v29, %s5048_s12 }
 0x7ff   :  { %v1030_v26 = vpop.xlane.xlu0 %1029 }
 0x800   :  { %4955 = vrcp.f32 %v1030_v26 }
 0x803   :  { %v1041_v27 = vpop.permute.xlu0 %1040 }
 0x804   :  { %v1046_v28 = vsel %vm504_vm3, %v1041_v27, 0 }
 0x805   :  { %4506 = vmatpush3.bf16.msra.mxu1 %v1046_v28  ;;  %v168_v28 = vld [vmem:[%s5246_s11 + $0xc] sm:$0xf] }
 0x806   :  { %4517 = vmatprep.subr.bf16.mxu1 %v5035_v0 }
 0x807   :  { %v1187_v30 = vpop.permute.xlu0 %1186 }
 0x808   :  { %4526 = vmatmul.mubr.msk.bf16.vlgmr.msra.gmra.mrb[36].mxu0 %vm384_vm2, %v1187_v30  ;;  %v1411_v30 = vsel %vm504_vm3, %v168_v28, 0  ;;  %v4103_v28 = vld [vmem:[%s5426_s18] ss:$0 sm:$0xff] }
 0x809   :  { %4537 = vmatprep.mubr.msk.bf16.mxu0 %vm5038_vm0, %v5035_v0 }
 0x80a   :  { %v4956_v31 = vpop.eup %4955 }
 0x80b   :  { %v1036_v32 = vmul.f32 %v4956_v31, %v4952_v17 }
 0x80d   :  { %v1038_v33 = vpack.c.bf16 %v1036_v32, %v1036_v32 }
 0x80f   :  { %4508 = vmatmul.mubr.msk.bf16.vlgmr.msra.gmra.mrb[28].mxu1 %vm384_vm2, %v1038_v33 }
 0x810   :  { %4519 = vmatprep.mubr.msk.bf16.mxu1 %vm5038_vm0, %v5035_v0  ;;  %4518 = vmatpush3.bf16.msra.mxu1 %v1141_v41 }
 0x811   :  { %4529 = vmatprep.subr.bf16.mxu1 %v5035_v0 }
 0x849   :  { %v1130_v29 = vpop.f32.mrb[32].mxu0 }
 0x84a   :  { %v4515_v36 = vpop.f32.mrb[33].mxu0 }
 0x84b   :  { %v1133_v34 = vpop.f32.mrb[34].mxu0 }
 0x84c   :  { %v4516_v37 = vpop.f32.mrb[35].mxu0 }
 0x8db   :  { %v1230_v42 = vpop.f32.mrb[36].mxu0 }
 0x8dc   :  { %v1231_v43 = vadd.f32 %v1230_v42, %v5185_v54  ;;  %v4527_v44 = vpop.f32.mrb[37].mxu0 }
 0x8dd   :  { %v1233_v45 = vpop.f32.mrb[38].mxu0 }
 0x8de   :  { %v4528_v46 = vpop.f32.mrb[39].mxu0  ;;  %v1286_v47 = vsel %vm384_vm2, %v1231_v43, -inf }
 0x8df   :  { %1287 = vmax.xlane.f32.xlu0 %v1286_v47  ;;  %v4100_v46 = vld [vmem:[%s5362_s16] ss:$0 sm:$0xff] }
 0x8e2   :  { %v1082_v49 = vpop.f32.mrb[28].mxu1 }
 0x8e3   :  { %v1136_v50 = vpack.c.bf16 %v1130_v29, %v1082_v49  ;;  %v4509_v51 = vpop.f32.mrb[29].mxu1 }
 0x8e4   :  { %v1085_v52 = vpop.f32.mrb[30].mxu1 }
 0x8e5   :  { %v4510_v56 = vpop.f32.mrb[31].mxu1  ;;  %4520 = vmatmul.mubr.msk.bf16.vlgmr.msra.gmra.mrb[32].mxu1 %vm384_vm2, %v1136_v50 }
 0x8e6   :  { %4530 = vmatpush3.bf16.xpose.msra.mxu1 %v1244_v53  ;;  %4531 = vmatprep.mubr.msk.bf16.mxu1 %vm5038_vm0, %v5035_v0 }
 0x8e7   :  { %4541 = vmatprep.subr.bf16.mxu1 %v5035_v0 }
 0x8ed   :  { %4532 = vmatmul.mubr.msk.bf16.vlgmr.msra.gmra.mrb[36].mxu1 %vm384_vm2, %v1237_v57 }
 0x8ee   :  { %4543 = vmatprep.mubr.msk.bf16.mxu1 %vm5038_vm0, %v5035_v0 }
 0x96c   :  { %v1288_v58 = vpop.xlane.xlu0 %1287 }
 0x96d   :  { %v1292_v59 = vsub.f32 %v1231_v43, %v1288_v58 }
 0x96f   :  { %v1294_v60 = vmul.f32 1.442695, %v1292_v59 }
 0x971   :  { %4957 = vpow2.f32 %v1294_v60 }
 0x97b   :  { %v4958_v61 = vpop.eup %4957 }
 0x97c   :  { %v1298_v62 = vsel %vm384_vm2, %v4958_v61, 0.0 }
 0x97d   :  { %1299 = vadd.xlane.f32.xlu0 %v1298_v62 }
 0x9b8   :  { %v1177_v63 = vpop.f32.mrb[32].mxu1 }
 0x9b9   :  { %v1184_v2 = vadd.f32 %v1177_v63, %v5293_v1  ;;  %v4521_v19 = vpop.f32.mrb[33].mxu1 }
 0x9ba   :  { %v1180_v24 = vpop.f32.mrb[34].mxu1  ;;  %v4882_v19 = vld [vmem:[%s5375_s22] sm:$0xff]  }
 0x9bb   :  { %v5334_v4 = vadd.f32 %v1180_v24, %v5295_v3  ;;  %v4522_v35 = vpop.f32.mrb[35].mxu1  ;;  %v4883_v24 = vld [vmem:[%s5375_s22 + $0x8] sm:$0xff]  }
 0x9c0   :  { %v1280_v7 = vpop.f32.mrb[36].mxu1 }
 0x9c1   :  { %v1281_v8 = vadd.f32 %v1280_v7, %v5187_v55  ;;  %v4533_v9 = vpop.f32.mrb[37].mxu1 }
 0x9c2   :  { %v1283_v10 = vpop.f32.mrb[38].mxu1 }
 0x9c3   :  { %v4534_v11 = vpop.f32.mrb[39].mxu1  ;;  %v1289_v12 = vsel %vm384_vm2, %v1281_v8, -inf }
 0x9c4   :  { %1290 = vmax.xlane.f32.xlu1 %v1289_v12  ;;  %v4101_v12 = vld [vmem:[%s5384_s28] ss:$0 sm:$0xff] }
 0x9d5   :  { %1358 = vrot.lane.b32.xlu1 %v5174_v40, %s5048_s12 }
 0xa0a   :  { %v1300_v18 = vpop.xlane.xlu0 %1299 }
 0xa51   :  { %v1291_v13 = vpop.xlane.xlu1 %1290 }
 0xa52   :  { %v1293_v1 = vsub.f32 %v1281_v8, %v1291_v13 }
 0xa54   :  { %v1296_v14 = vmul.f32 1.442695, %v1293_v1 }
 0xa55   :  { %v1359_v15 = vpop.permute.xlu1 %1358 }
 0xa56   :  { %4959 = vpow2.f32 %v1296_v14  ;;  %v1364_v3 = vsel %vm504_vm3, %v1359_v15, 0 }
 0xa57   :  { %4542 = vmatpush3.bf16.msra.mxu1 %v1364_v3  ;;  %4961 = vrcp.f32 %v1300_v18  ;;  %v4102_v3 = vld [vmem:[%s5389_s3] ss:$0 sm:$0xff] }
 0xa58   :  { %4553 = vmatprep.subr.bf16.mxu1 %v5035_v0 }
 0xa60   :  { %v4960_v16 = vpop.eup %4959 }
 0xa61   :  { %v1301_v17 = vsel %vm384_vm2, %v4960_v16, 0.0  ;;  %v4962_v40 = vpop.eup %4961 }
 0xa62   :  { %1302 = vadd.xlane.f32.xlu0 %v1301_v17  ;;  %v1306_v21 = vmul.f32 %v4962_v40, %v4958_v61 }
 0xa64   :  { %v1308_v25 = vpack.c.bf16 %v1306_v21, %v1306_v21  ;;  %v4885_v21 = vld [vmem:[%s5405_s9 + $0x8] sm:$0xff]  }
 0xa78   :  { %1310 = vrot.lane.b32.xlu0 %v5172_v39, %s5048_s12 }
 0xaef   :  { %v1303_v20 = vpop.xlane.xlu0 %1302 }
 0xaf0   :  { %4963 = vrcp.f32 %v1303_v20  ;;  %v4884_v20 = vld [vmem:[%s5405_s9] sm:$0xff]  }
 0xaf3   :  { %v1311_v22 = vpop.permute.xlu0 %1310 }
 0xaf4   :  { %v1316_v23 = vsel %vm504_vm3, %v1311_v22, 0  ;;  %v4886_v22 = vld [vmem:[%s5405_s9 + $0x10] sm:$0xff]  }
 0xaf5   :  { %4536 = vmatpush3.bf16.msra.mxu0 %v1316_v23  ;;  %v4887_v23 = vld [vmem:[%s5405_s9 + $0x18] sm:$0xff]  }
 0xaf6   :  { %4547 = vmatprep.subr.bf16.mxu0 %v5035_v0 }
 0xaf8   :  { %4538 = vmatmul.mubr.msk.bf16.vlgmr.msra.gmra.mrb[40].mxu0 %vm384_vm2, %v1308_v25  ;;  %v4888_v25 = vld [vmem:[%s5405_s9 + $0x20] sm:$0xff]  }
 0xaf9   :  { %4549 = vmatprep.mubr.msk.bf16.mxu0 %vm5038_vm0, %v5035_v0  ;;  %4548 = vmatpush3.bf16.msra.mxu0 %v1411_v30 }
 0xafa   :  { %v4964_v39 = vpop.eup %4963  ;;  %4561 = vmatprep.subr.bf16.mxu0 %v5035_v0 }
 0xafb   :  { %v1307_v26 = vmul.f32 %v4964_v39, %v4960_v16  ;;  %v4889_v39 = vld [vmem:[%s5405_s9 + $0x28] sm:$0xff]  }
 0xafd   :  { %v1309_v27 = vpack.c.bf16 %v1307_v26, %v1307_v26  ;;  %v4890_v26 = vld [vmem:[%s5405_s9 + $0x30] sm:$0xff]  }
 0xaff   :  { %4544 = vmatmul.mubr.msk.bf16.vlgmr.msra.gmra.mrb[40].mxu1 %vm384_vm2, %v1309_v27  ;;  %v4891_v27 = vld [vmem:[%s5405_s9 + $0x38] sm:$0xff]  }
 0xb00   :  { %4557 = vmatprep.mubr.msk.bf16.mxu1 %vm5038_vm0, %v5035_v0  ;;  %4554 = vmatpush3.bf16.msra.mxu1 %v4882_v19 }
 0xb01   :  { %4555 = vmatprep.subr.bf16.mxu1 %v5035_v0 }
 0xb04   :  { %4556 = vmatpush3.bf16.msra.mxu1 %v4883_v24 }
 0xb05   :  { %4581 = vmatprep.subr.bf16.mxu1 %v5035_v0 }
 0xbcb   :  { %v1352_v31 = vpop.f32.mrb[40].mxu0 }
 0xbcc   :  { %v4539_v32 = vpop.f32.mrb[41].mxu0 }
 0xbcd   :  { %v1355_v33 = vpop.f32.mrb[42].mxu0 }
 0xbce   :  { %v4540_v29 = vpop.f32.mrb[43].mxu0 }
 0xbd2   :  { %v1400_v36 = vpop.f32.mrb[40].mxu1 }
 0xbd3   :  { %v1406_v34 = vpack.c.bf16 %v1400_v36, %v1352_v31  ;;  %v4545_v37 = vpop.f32.mrb[41].mxu1 }
 0xbd4   :  { %v1403_v38 = vpop.f32.mrb[42].mxu1 }
 0xbd5   :  { %v4546_v41 = vpop.f32.mrb[43].mxu1  ;;  %4550 = vmatmul.mubr.msk.bf16.vlgmr.msra.gmra.mrb[44].mxu0 %vm384_vm2, %v1406_v34 }
 0xbd6   :  { %4577 = vmatprep.mubr.msk.bf16.mxu0 %vm5038_vm0, %v5035_v0  ;;  %4562 = vmatpush3.bf16.msra.mxu0 %v4884_v20 }
 0xbd7   :  { %4563 = vmatprep.subr.bf16.mxu0 %v5035_v0 }
 0xbda   :  { %4564 = vmatpush3.bf16.msra.mxu0 %v4885_v21 }
 0xbdb   :  { %4565 = vmatprep.subr.bf16.mxu0 %v5035_v0 }
 0xbde   :  { %4566 = vmatpush3.bf16.msra.mxu0 %v4886_v22 }
 0xbdf   :  { %4567 = vmatprep.subr.bf16.mxu0 %v5035_v0 }
 0xbe2   :  { %4568 = vmatpush3.bf16.msra.mxu0 %v4887_v23  ;;  %v4116_v23 = vld [vmem:[%s5451_s2] ss:$0 sm:$0xff] }
 0xbe3   :  { %4569 = vmatprep.subr.bf16.mxu0 %v5035_v0 }
 0xbe6   :  { %4570 = vmatpush3.bf16.msra.mxu0 %v4888_v25 }
 0xbe7   :  { %4571 = vmatprep.subr.bf16.mxu0 %v5035_v0 }
 0xbea   :  { %4572 = vmatpush3.bf16.msra.mxu0 %v4889_v39 }
 0xbeb   :  { %4573 = vmatprep.subr.bf16.mxu0 %v5035_v0 }
 0xbee   :  { %4574 = vmatpush3.bf16.msra.mxu0 %v4890_v26 }
 0xbef   :  { %4575 = vmatprep.subr.bf16.mxu0 %v5035_v0 }
 0xbf2   :  { %4576 = vmatpush3.bf16.msra.mxu0 %v4891_v27 }
 0xbf3   :  { %4611 = vmatprep.subr.bf16.mxu0 %v5035_v0 }
 0xca8   :  { %v1447_v42 = vpop.f32.mrb[44].mxu0 }
 0xca9   :  { %v1454_v43 = vadd.f32 %v1447_v42, %v1184_v2  ;;  %v4551_v44 = vpop.f32.mrb[45].mxu0 }
 0xcaa   :  { %v1450_v45 = vpop.f32.mrb[46].mxu0 }
 0xcab   :  { %v1456_v47 = vadd.f32 %v1454_v43, %v5109_v5  ;;  %v1455_v48 = vadd.f32 %v1450_v45, %v5334_v4  ;;  %v4552_v49 = vpop.f32.mrb[47].mxu0 }
 0xcad   :  { %v1457_v50 = vadd.f32 %v1455_v48, %v5111_v6  ;;  %v1465_v51 = vadd.f32 %v4100_v46, %v1456_v47 }
 0xcaf   :  { %v1469_v52 = vsel %vm193_vm1, %v1465_v51, 0.0  ;;  %v1466_v53 = vadd.f32 %v4100_v46, %v1457_v50 }
 0xcb0   :  { %1470 = vadd.xlane.f32.xlu1 %v1469_v52 }
 0xcb1   :  { %v1472_v56 = vsel %vm193_vm1, %v1466_v53, 0.0 }
 0xcb2   :  { %1473 = vadd.xlane.f32.xlu0 %v1472_v56 }
 0xd3d   :  { %v1471_v57 = vpop.xlane.xlu1 %1470 }
 0xd3e   :  { %v1476_v58 = vmul.f32 0.03125, %v1471_v57 }
 0xd3f   :  { %v1474_v59 = vpop.xlane.xlu0 %1473 }
 0xd40   :  { %v1478_v60 = vsub.f32 %v1465_v51, %v1476_v58  ;;  %v1477_v61 = vmul.f32 0.03125, %v1474_v59  ;;  %v4107_v59 = vld [vmem:[%s5434_s24] ss:$0 sm:$0xff] }
 0xd42   :  { %v1479_v62 = vsub.f32 %v1466_v53, %v1477_v61  ;;  %v1480_v5 = vmul.f32 %v1478_v60, %v1478_v60 }
 0xd44   :  { %v1482_v63 = vsel %vm193_vm1, %v1480_v5, 0.0  ;;  %v1481_v2 = vmul.f32 %v1479_v62, %v1479_v62 }
 0xd45   :  { %1483 = vadd.xlane.f32.xlu0 %v1482_v63 }
 0xd46   :  { %v1485_v6 = vsel %vm193_vm1, %v1481_v2, 0.0 }
 0xd47   :  { %1486 = vadd.xlane.f32.xlu1 %v1485_v6 }
 0xdd2   :  { %v1484_v4 = vpop.xlane.xlu0 %1483 }
 0xdd3   :  { %v1488_v35 = vmul.f32 0.03125, %v1484_v4 }
 0xdd4   :  { %v1487_v7 = vpop.xlane.xlu1 %1486 }
 0xdd5   :  { %v1490_v8 = vadd.f32 1e-12, %v1488_v35  ;;  %v1489_v9 = vmul.f32 0.03125, %v1487_v7 }
 0xdd7   :  { %4965 = vrsqrt.f32 %v1490_v8  ;;  %v1491_v10 = vadd.f32 1e-12, %v1489_v9 }
 0xdd9   :  { %4967 = vrsqrt.f32 %v1491_v10 }
 0xde1   :  { %v4966_v11 = vpop.eup %4965 }
 0xde2   :  { %v1494_v13 = vmul.f32 %v4966_v11, %v1478_v60 }
 0xde3   :  { %v4968_v1 = vpop.eup %4967 }
 0xde4   :  { %v1502_v14 = vmul.f32 %v4101_v12, %v1494_v13  ;;  %v1495_v15 = vmul.f32 %v4968_v1, %v1479_v62 }
 0xde6   :  { %v1503_v16 = vmul.f32 %v4101_v12, %v1495_v15  ;;  %v5393_v17 = vadd.f32 %v4102_v3, %v1502_v14  ;;  %v4892_v15 = vld [vmem:[%s5089_s10 + $0x10] sm:$0xff]  }
 0xde8   :  { %v5395_v18 = vadd.f32 %v4102_v3, %v1503_v16  ;;  %v4893_v3 = vld [vmem:[%s5089_s10 + $0x18] sm:$0xff]   ;;  %s5057_s10 = smov 17  }
 0xde9   :  { %s5456_s8 = sld [smem:[%s5870_s0 + %s5057_s10]]  }
 0xdea   :  { %v1517_v40 = vpack.c.bf16 %v5395_v18, %v5393_v17  ;;  %s4065_s10 = sld [smem:[%s5870_s0 + %s5071_s29]]  }
 0xdec   :  { %4558 = vmatmul.mubr.msk.bf16.vlgmr.msra.gmra.mrb[44].mxu1 %vm193_vm1, %v1517_v40 }
 0xded   :  { %4585 = vmatprep.mubr.msk.bf16.mxu1 %vm5038_vm0, %v5035_v0  ;;  %4582 = vmatpush3.bf16.msra.mxu1 %v4892_v15 }
 0xdee   :  { %4583 = vmatprep.subr.bf16.mxu1 %v5035_v0 }
 0xdf1   :  { %4584 = vmatpush3.bf16.msra.mxu1 %v4893_v3 }
 0xdf2   :  { %4589 = vmatprep.subr.bf16.mxu1 %v5035_v0 }
 0xebf   :  { %v1573_v30 = vpop.f32.mrb[44].mxu1 }
 0xec0   :  { %v1574_v31 = vadd.f32 %v4103_v28, %v1573_v30  ;;  %v4559_v32 = vpop.f32.mrb[45].mxu1 }
 0xec1   :  { %v1576_v33 = vpop.f32.mrb[46].mxu1 }
 0xec2   :  { %v1582_v29 = vmul.f32 0.044715, %v1574_v31  ;;  %v1577_v36 = vadd.f32 %v4103_v28, %v1576_v33  ;;  %v4560_v34 = vpop.f32.mrb[47].mxu1  ;;  %v1580_v51 = vmul.f32 0.5, %v1574_v31  ;;  %v4117_v28 = vld [vmem:[%s5456_s8] ss:$0 sm:$0xff] }
 0xec3   :  { %v4894_v33 = vld [vmem:[%s5083_s6 + $0x10] sm:$0xff]  }
 0xec4   :  { %v1584_v37 = vmul.f32 %v1582_v29, %v1574_v31  ;;  %v1583_v38 = vmul.f32 0.044715, %v1577_v36  ;;  %v1581_v52 = vmul.f32 0.5, %v1577_v36  ;;  %v4896_v34 = vld [vmem:[%s5101_s17 + $0x10] sm:$0xff]  }
 0xec6   :  { %v1586_v41 = vmul.f32 %v1584_v37, %v1574_v31  ;;  %v1585_v42 = vmul.f32 %v1583_v38, %v1577_v36  ;;  %v4897_v37 = vld [vmem:[%s5101_s17 + $0x18] sm:$0xff]   ;;  %s5073_s17 = smov 33  }
 0xec8   :  { %v1588_v43 = vadd.f32 %v1586_v41, %v1574_v31  ;;  %v1587_v44 = vmul.f32 %v1585_v42, %v1577_v36 }
 0xeca   :  { %v1590_v45 = vmul.f32 0.7978846, %v1588_v43  ;;  %v1589_v46 = vadd.f32 %v1587_v44, %v1577_v36  ;;  %v4895_v36 = vld [vmem:[%s5083_s6 + $0x18] sm:$0xff]   ;;  %v4136_v44 = vld [vmem:[%s5133_s21 + $0x1] ss:$0 sm:$0xff]  ;;  %s5058_s6 = smov 18  }
 0xecc   :  { %4969 = vtanh.f32 %v1590_v45  ;;  %v1591_v47 = vmul.f32 0.7978846, %v1589_v46  ;;  %v4127_v45 = vld [vmem:[%s5138_s25 + $0x1] ss:$0 sm:$0xff]  ;;  %s4051_s25 = sld [smem:[%s5870_s0 + %s5058_s6]]  }
 0xecd   :  { %s4058_s6 = sld [smem:[%s5870_s0 + %s5072_s4]]  }
 0xece   :  { %4971 = vtanh.f32 %v1591_v47 }
 0xed6   :  { %v4970_v48 = vpop.eup %4969 }
 0xed7   :  { %v1594_v49 = vadd.f32 1.0, %v4970_v48 }
 0xed8   :  { %v4972_v50 = vpop.eup %4971 }
 0xed9   :  { %v1595_v53 = vadd.f32 1.0, %v4972_v50  ;;  %v1596_v56 = vmul.f32 %v1594_v49, %v1580_v51 }
 0xedb   :  { %v1597_v57 = vmul.f32 %v1595_v53, %v1581_v52 }
 0xedd   :  { %v1615_v58 = vpack.c.bf16 %v1597_v57, %v1596_v56 }
 0xedf   :  { %4578 = vmatmul.mubr.bf16.vlgmr.msra.gmra.mrb[48].mxu0 %v1615_v58 }
 0xee0   :  { %4613 = vmatprep.mubr.msk.bf16.mxu0 %vm5038_vm0, %v5035_v0 }
 0xfb2   :  { %v1704_v60 = vpop.f32.mrb[48].mxu0 }
 0xfb3   :  { %v1705_v61 = vadd.f32 %v4107_v59, %v1704_v60  ;;  %v4579_v62 = vpop.f32.mrb[49].mxu0 }
 0xfb4   :  { %v1707_v5 = vpop.f32.mrb[50].mxu0 }
 0xfb5   :  { %v1708_v63 = vadd.f32 %v4107_v59, %v1707_v5  ;;  %v4580_v2 = vpop.f32.mrb[51].mxu0  ;;  %v1711_v6 = vadd.f32 %v1705_v61, %v5393_v17  ;;  %v4145_v59 = vld [vmem:[%s5169_s30 + $0x1] ss:$0 sm:$0xff] }
 0xfb7   :  { %v1715_v19 = vsel %vm193_vm1, %v1711_v6, 0.0  ;;  %v1712_v24 = vadd.f32 %v1708_v63, %v5395_v18 }
 0xfb8   :  { %1716 = vadd.xlane.f32.xlu0 %v1715_v19 }
 0xfb9   :  { %v1718_v4 = vsel %vm193_vm1, %v1712_v24, 0.0 }
 0xfba   :  { %1719 = vadd.xlane.f32.xlu1 %v1718_v4 }
0x1045   :  { %v1717_v35 = vpop.xlane.xlu0 %1716 }
0x1046   :  { %v1721_v7 = vmul.f32 0.03125, %v1717_v35 }
0x1047   :  { %v1720_v8 = vpop.xlane.xlu1 %1719 }
0x1048   :  { %v1723_v9 = vsub.f32 %v1711_v6, %v1721_v7  ;;  %v1722_v10 = vmul.f32 0.03125, %v1720_v8 }
0x104a   :  { %v1724_v11 = vsub.f32 %v1712_v24, %v1722_v10  ;;  %v1725_v12 = vmul.f32 %v1723_v9, %v1723_v9 }
0x104c   :  { %v1727_v13 = vsel %vm193_vm1, %v1725_v12, 0.0  ;;  %v1726_v1 = vmul.f32 %v1724_v11, %v1724_v11 }
0x104d   :  { %1728 = vadd.xlane.f32.xlu0 %v1727_v13 }
0x104e   :  { %v1730_v14 = vsel %vm193_vm1, %v1726_v1, 0.0 }
0x104f   :  { %1731 = vadd.xlane.f32.xlu1 %v1730_v14 }
0x10da   :  { %v1729_v16 = vpop.xlane.xlu0 %1728 }
0x10db   :  { %v1733_v17 = vmul.f32 0.03125, %v1729_v16 }
0x10dc   :  { %v1732_v18 = vpop.xlane.xlu1 %1731 }
0x10dd   :  { %v1735_v40 = vadd.f32 1e-12, %v1733_v17  ;;  %v1734_v20 = vmul.f32 0.03125, %v1732_v18 }
0x10df   :  { %4973 = vrsqrt.f32 %v1735_v40  ;;  %v1736_v21 = vadd.f32 1e-12, %v1734_v20 }
0x10e1   :  { %4975 = vrsqrt.f32 %v1736_v21 }
0x10e9   :  { %v4974_v22 = vpop.eup %4973 }
0x10ea   :  { %v1739_v25 = vmul.f32 %v4974_v22, %v1723_v9 }
0x10eb   :  { %v4976_v39 = vpop.eup %4975 }
0x10ec   :  { %v1747_v26 = vmul.f32 %v4116_v23, %v1739_v25  ;;  %v1740_v27 = vmul.f32 %v4976_v39, %v1724_v11 }
0x10ee   :  { %v1748_v30 = vmul.f32 %v4116_v23, %v1740_v27  ;;  %v5460_v31 = vadd.f32 %v4117_v28, %v1747_v26 }
0x10f0   :  { %v5462_v32 = vadd.f32 %v4117_v28, %v1748_v30 }
0x10f2   :  { %v1769_v29 = vpack.c.bf16 %v5462_v32, %v5460_v31 }
0x10f4   :  { %4586 = vmatmul.mubr.msk.bf16.vlgmr.msra.gmra.mrb[48].mxu1 %vm193_vm1, %v1769_v29 }
0x10f5   :  { %4590 = vmatpush3.bf16.msra.mxu1 %v4894_v33  ;;  %4593 = vmatprep.mubr.msk.bf16.mxu1 %vm5038_vm0, %v5035_v0 }
0x10f6   :  { %4591 = vmatprep.subr.bf16.mxu1 %v5035_v0 }
0x10f9   :  { %4592 = vmatpush3.bf16.msra.mxu1 %v4895_v36 }
0x10fa   :  { %4597 = vmatprep.subr.bf16.mxu1 %v5035_v0 }
0x10fc   :  { %4594 = vmatmul.mubr.msk.bf16.vlgmr.msra.gmra.mrb[52].mxu1 %vm193_vm1, %v1769_v29 }
0x10fd   :  { %4598 = vmatpush3.bf16.msra.mxu1 %v4896_v34  ;;  %4601 = vmatprep.mubr.msk.bf16.mxu1 %vm5038_vm0, %v5035_v0 }
0x10fe   :  { %4599 = vmatprep.subr.bf16.mxu1 %v5035_v0 }
0x1101   :  { %4600 = vmatpush3.bf16.msra.mxu1 %v4897_v37 }
0x1102   :  { %4605 = vmatprep.subr.bf16.mxu1 %v5035_v0 }
0x1104   :  { %4602 = vmatmul.mubr.msk.bf16.vlgmr.msra.gmra.mrb[56].mxu1 %vm193_vm1, %v1769_v29 }
0x1105   :  { %4607 = vmatprep.mubr.msk.bf16.mxu1 %vm5038_vm0, %v5035_v0 }
0x11c7   :  { %v1825_v38 = vpop.f32.mrb[48].mxu1 }
0x11c8   :  { %v4587_v41 = vpop.f32.mrb[49].mxu1  ;;  %v1826_v50 = vadd.f32 %v4127_v45, %v1825_v38 }
0x11c9   :  { %v1828_v42 = vpop.f32.mrb[50].mxu1 }
0x11ca   :  { %v4588_v43 = vpop.f32.mrb[51].mxu1  ;;  %v1829_v56 = vadd.f32 %v4127_v45, %v1828_v42  ;;  %v1832_v60 = vmul.f32 0.35355338, %v1826_v50 }
0x11cc   :  { %v1833_v5 = vmul.f32 0.35355338, %v1829_v56  ;;  %v5496_v19 = vpack.c.bf16 %v1832_v60, %v1832_v60 }
0x11ce   :  { %v5500_v7 = vpack.c.bf16 %v1833_v5, %v1833_v5 }
0x11cf   :  { %v1893_v46 = vpop.f32.mrb[52].mxu1 }
0x11d0   :  { %v1894_v47 = vadd.f32 %v4136_v44, %v1893_v46  ;;  %v4595_v48 = vpop.f32.mrb[53].mxu1 }
0x11d1   :  { %v1896_v49 = vpop.f32.mrb[54].mxu1 }
0x11d2   :  { %v5485_v51 = vpack.c.bf16 %v1894_v47, %v1894_v47  ;;  %v1897_v52 = vadd.f32 %v4136_v44, %v1896_v49  ;;  %v4596_v53 = vpop.f32.mrb[55].mxu1 }
0x11d4   :  { %v5487_v57 = vpack.c.bf16 %v1897_v52, %v1897_v52  ;;  %v1976_v58 = vsel %vm384_vm2, %v5485_v51, 0 }
0x11d5   :  { %4606 = vmatpush3.bf16.xpose.msra.mxu1 %v1976_v58 }
0x11d6   :  { %v2022_v61 = vsel %vm384_vm2, %v5487_v57, 0  ;;  %4617 = vmatprep.subr.bf16.mxu1 %v5035_v0 }
0x11d7   :  { %v1959_v62 = vpop.f32.mrb[56].mxu1  ;;  %4612 = vmatpush3.bf16.xpose.msra.mxu0 %v2022_v61 }
0x11d8   :  { %v1960_v63 = vadd.f32 %v4145_v59, %v1959_v62  ;;  %v4603_v2 = vpop.f32.mrb[57].mxu1  ;;  %4623 = vmatprep.subr.bf16.mxu0 %v5035_v0 }
0x11d9   :  { %v1962_v6 = vpop.f32.mrb[58].mxu1 }
0x11da   :  { %v5498_v24 = vpack.c.bf16 %v1960_v63, %v1960_v63  ;;  %v1963_v4 = vadd.f32 %v4145_v59, %v1962_v6  ;;  %v4604_v35 = vpop.f32.mrb[59].mxu1 }
0x11dc   :  { %v5502_v8 = vpack.c.bf16 %v1963_v4, %v1963_v4  ;;  %4608 = vmatmul.mubr.msk.bf16.vlgmr.msra.gmra.mrb[60].mxu1 %vm384_vm2, %v5496_v19  ;;  %v2092_v9 = vsel %vm504_vm3, %v5498_v24, 0 }
0x11dd   :  { %4618 = vmatpush3.bf16.msra.mxu1 %v2092_v9  ;;  %4619 = vmatprep.mubr.msk.bf16.mxu1 %vm5038_vm0, %v5035_v0 }
0x11de   :  { %4614 = vmatmul.mubr.msk.bf16.vlgmr.msra.gmra.mrb[52].mxu0 %vm384_vm2, %v5500_v7  ;;  %v2138_v10 = vsel %vm504_vm3, %v5502_v8, 0  ;;  %4629 = vmatprep.subr.bf16.mxu1 %v5035_v0 }
0x11df   :  { %4624 = vmatpush3.bf16.msra.mxu0 %v2138_v10  ;;  %4625 = vmatprep.mubr.msk.bf16.mxu0 %vm5038_vm0, %v5035_v0 }
0x11e0   :  { %4635 = vmatprep.subr.bf16.mxu0 %v5035_v0 }
0x12af   :  { %v2012_v11 = vpop.f32.mrb[60].mxu1 }
0x12b0   :  { %v2013_v12 = vadd.f32 %v2012_v11, %v5185_v54  ;;  %v4609_v13 = vpop.f32.mrb[61].mxu1 }
0x12b1   :  { %v2015_v1 = vpop.f32.mrb[62].mxu1  ;;  %v2058_v14 = vpop.f32.mrb[52].mxu0 }
0x12b2   :  { %v2059_v15 = vadd.f32 %v2058_v14, %v5187_v55  ;;  %v4610_v3 = vpop.f32.mrb[63].mxu1  ;;  %v4615_v16 = vpop.f32.mrb[53].mxu0  ;;  %v2064_v17 = vsel %vm384_vm2, %v2013_v12, -inf }
0x12b3   :  { %2065 = vmax.xlane.f32.xlu0 %v2064_v17  ;;  %v2061_v18 = vpop.f32.mrb[54].mxu0 }
0x12b4   :  { %v4616_v40 = vpop.f32.mrb[55].mxu0  ;;  %v2067_v20 = vsel %vm384_vm2, %v2059_v15, -inf }
0x12b5   :  { %2068 = vmax.xlane.f32.xlu1 %v2067_v20 }
0x12c6   :  { %2237 = vrot.lane.b32.xlu1 %v5487_v57, %s5042_s26 }
0x1340   :  { %v2066_v21 = vpop.xlane.xlu0 %2065 }
0x1341   :  { %v2070_v22 = vsub.f32 %v2013_v12, %v2066_v21 }
0x1342   :  { %v2069_v23 = vpop.xlane.xlu1 %2068 }
0x1343   :  { %v2072_v25 = vmul.f32 1.442695, %v2070_v22  ;;  %v2071_v39 = vsub.f32 %v2059_v15, %v2069_v23 }
0x1345   :  { %4977 = vpow2.f32 %v2072_v25  ;;  %v2074_v26 = vmul.f32 1.442695, %v2071_v39 }
0x1346   :  { %v2238_v29 = vpop.permute.xlu1 %2237 }
0x1347   :  { %4979 = vpow2.f32 %v2074_v26  ;;  %v2243_v47 = vsel %vm384_vm2, %v2238_v29, 0 }
0x134f   :  { %v4978_v27 = vpop.eup %4977 }
0x1350   :  { %v2076_v28 = vsel %vm384_vm2, %v4978_v27, 0.0 }
0x1351   :  { %v4980_v30 = vpop.eup %4979  ;;  %2077 = vadd.xlane.f32.xlu0 %v2076_v28 }
0x1352   :  { %v2079_v33 = vsel %vm384_vm2, %v4980_v30, 0.0 }
0x1353   :  { %2080 = vadd.xlane.f32.xlu1 %v2079_v33  ;;  %v4119_v33 = vld [vmem:[%s5246_s11 + $0x14] sm:$0xf] }
0x1364   :  { %2182 = vrot.lane.b32.xlu1 %v5496_v19, %s5042_s26 }
0x1367   :  { %2185 = vrot.lane.b32.xlu0 %v5485_v51, %s5042_s26 }
0x1368   :  { %2234 = vrot.lane.b32.xlu1 %v5500_v7, %s5042_s26 }
0x13de   :  { %v2078_v36 = vpop.xlane.xlu0 %2077 }
0x13df   :  { %4981 = vrcp.f32 %v2078_v36 }
0x13e0   :  { %v2081_v34 = vpop.xlane.xlu1 %2080 }
0x13e1   :  { %4983 = vrcp.f32 %v2081_v34  ;;  %v2412_v34 = vsel %vm504_vm3, %v4119_v33, 0 }
0x13e2   :  { %v2186_v42 = vpop.permute.xlu0 %2185 }
0x13e3   :  { %v2191_v45 = vsel %vm384_vm2, %v2186_v42, 0 }
0x13e4   :  { %v2183_v48 = vpop.permute.xlu1 %2182 }
0x13e8   :  { %v2235_v49 = vpop.permute.xlu1 %2234 }
0x13e9   :  { %v4982_v37 = vpop.eup %4981 }
0x13ea   :  { %v2084_v38 = vmul.f32 %v4982_v37, %v4978_v27 }
0x13eb   :  { %v4984_v41 = vpop.eup %4983 }
0x13ec   :  { %v2085_v43 = vmul.f32 %v4984_v41, %v4980_v30  ;;  %v2086_v44 = vpack.c.bf16 %v2084_v38, %v2084_v38  ;;  %v4118_v38 = vld [vmem:[%s5246_s11 + $0x10] sm:$0xf] }
0x13ee   :  { %4620 = vmatmul.mubr.msk.bf16.vlgmr.msra.gmra.mrb[64].mxu1 %vm384_vm2, %v2086_v44  ;;  %v2087_v46 = vpack.c.bf16 %v2085_v43, %v2085_v43  ;;  %v2459_v43 = vsel %vm504_vm3, %v4118_v38, 0 }
0x13ef   :  { %4630 = vmatpush3.bf16.xpose.msra.mxu1 %v2191_v45  ;;  %4631 = vmatprep.mubr.msk.bf16.mxu1 %vm5038_vm0, %v5035_v0 }
0x13f0   :  { %4626 = vmatmul.mubr.msk.bf16.vlgmr.msra.gmra.mrb[56].mxu0 %vm384_vm2, %v2087_v46  ;;  %4641 = vmatprep.subr.bf16.mxu1 %v5035_v0 }
0x13f1   :  { %4636 = vmatpush3.bf16.xpose.msra.mxu0 %v2243_v47  ;;  %4637 = vmatprep.mubr.msk.bf16.mxu0 %vm5038_vm0, %v5035_v0 }
0x13f2   :  { %4647 = vmatprep.subr.bf16.mxu0 %v5035_v0 }
0x13f6   :  { %4632 = vmatmul.mubr.msk.bf16.vlgmr.msra.gmra.mrb[68].mxu1 %vm384_vm2, %v2183_v48 }
0x13f7   :  { %4643 = vmatprep.mubr.msk.bf16.mxu1 %vm5038_vm0, %v5035_v0 }
0x13f8   :  { %4638 = vmatmul.mubr.msk.bf16.vlgmr.msra.gmra.mrb[60].mxu0 %vm384_vm2, %v2235_v49 }
0x13f9   :  { %4649 = vmatprep.mubr.msk.bf16.mxu0 %vm5038_vm0, %v5035_v0 }
0x14c1   :  { %v5548_v50 = vpop.f32.mrb[64].mxu1 }
0x14c2   :  { %v4621_v52 = vpop.f32.mrb[65].mxu1 }
0x14c3   :  { %v2131_v53 = vpop.f32.mrb[66].mxu1  ;;  %v5550_v56 = vpop.f32.mrb[56].mxu0 }
0x14c4   :  { %v2180_v58 = vpack.c.bf16 %v5550_v56, %v5548_v50  ;;  %v4622_v59 = vpop.f32.mrb[67].mxu1  ;;  %v4627_v60 = vpop.f32.mrb[57].mxu0 }
0x14c5   :  { %v2177_v61 = vpop.f32.mrb[58].mxu0 }
0x14c6   :  { %v4628_v62 = vpop.f32.mrb[59].mxu0 }
0x14c9   :  { %v2227_v5 = vpop.f32.mrb[68].mxu1 }
0x14ca   :  { %v2228_v63 = vadd.f32 %v2227_v5, %v5185_v54  ;;  %v4633_v2 = vpop.f32.mrb[69].mxu1 }
0x14cb   :  { %v2230_v6 = vpop.f32.mrb[70].mxu1  ;;  %v2279_v4 = vpop.f32.mrb[60].mxu0 }
0x14cc   :  { %v2280_v35 = vadd.f32 %v2279_v4, %v5187_v55  ;;  %v4634_v9 = vpop.f32.mrb[71].mxu1  ;;  %v4639_v10 = vpop.f32.mrb[61].mxu0  ;;  %v2285_v11 = vsel %vm384_vm2, %v2228_v63, -inf }
0x14cd   :  { %2286 = vmax.xlane.f32.xlu0 %v2285_v11  ;;  %v2282_v12 = vpop.f32.mrb[62].mxu0 }
0x14ce   :  { %v4640_v13 = vpop.f32.mrb[63].mxu0  ;;  %v2288_v1 = vsel %vm384_vm2, %v2280_v35, -inf }
0x14cf   :  { %2289 = vmax.xlane.f32.xlu1 %v2288_v1 }
0x14e0   :  { %2359 = vrot.lane.b32.xlu1 %v5502_v8, %s5042_s26 }
0x14e4   :  { %2504 = vrot.lane.b32.xlu1 %v5485_v51, %s5046_s5 }
0x14e8   :  { %2554 = vrot.lane.b32.xlu1 %v5487_v57, %s5046_s5 }
0x14ec   :  { %2552 = vrot.lane.b32.xlu1 %v5500_v7, %s5046_s5 }
0x155a   :  { %v2287_v14 = vpop.xlane.xlu0 %2286 }
0x155b   :  { %v2291_v15 = vsub.f32 %v2228_v63, %v2287_v14 }
0x155c   :  { %v2290_v3 = vpop.xlane.xlu1 %2289 }
0x155d   :  { %v2293_v16 = vmul.f32 1.442695, %v2291_v15  ;;  %v2292_v17 = vsub.f32 %v2280_v35, %v2290_v3 }
0x155f   :  { %4985 = vpow2.f32 %v2293_v16  ;;  %v2295_v18 = vmul.f32 1.442695, %v2292_v17 }
0x1560   :  { %v2360_v40 = vpop.permute.xlu1 %2359 }
0x1561   :  { %4987 = vpow2.f32 %v2295_v18  ;;  %v2365_v20 = vsel %vm504_vm3, %v2360_v40, 0 }
0x1562   :  { %4648 = vmatpush3.bf16.msra.mxu0 %v2365_v20 }
0x1563   :  { %4659 = vmatprep.subr.bf16.mxu0 %v5035_v0 }
0x1564   :  { %v2505_v44 = vpop.permute.xlu1 %2504 }
0x1565   :  { %v2510_v60 = vsel %vm384_vm2, %v2505_v44, 0 }
0x1568   :  { %v2555_v45 = vpop.permute.xlu1 %2554 }
0x1569   :  { %v4986_v21 = vpop.eup %4985  ;;  %v2560_v46 = vsel %vm384_vm2, %v2555_v45, 0 }
0x156a   :  { %v2297_v22 = vsel %vm384_vm2, %v4986_v21, 0.0 }
0x156b   :  { %v4988_v23 = vpop.eup %4987  ;;  %2298 = vadd.xlane.f32.xlu0 %v2297_v22 }
0x156c   :  { %v2300_v25 = vsel %vm384_vm2, %v4988_v23, 0.0  ;;  %v2553_v47 = vpop.permute.xlu1 %2552 }
0x156f   :  { %2301 = vadd.xlane.f32.xlu0 %v2300_v25 }
0x1585   :  { %2310 = vrot.lane.b32.xlu0 %v5498_v24, %s5042_s26  ;;  %s5059_s26 = smov 20  }
0x1589   :  { %2502 = vrot.lane.b32.xlu0 %v5496_v19, %s5046_s5 }
0x15f8   :  { %v2299_v39 = vpop.xlane.xlu0 %2298 }
0x15f9   :  { %4989 = vrcp.f32 %v2299_v39 }
0x15fc   :  { %v2302_v26 = vpop.xlane.xlu0 %2301 }
0x15fd   :  { %4991 = vrcp.f32 %v2302_v26 }
0x1600   :  { %v2311_v27 = vpop.permute.xlu0 %2310 }
0x1601   :  { %v2316_v28 = vsel %vm504_vm3, %v2311_v27, 0 }
0x1602   :  { %4642 = vmatpush3.bf16.msra.mxu1 %v2316_v28 }
0x1603   :  { %v4990_v30 = vpop.eup %4989  ;;  %4653 = vmatprep.subr.bf16.mxu1 %v5035_v0 }
0x1604   :  { %v2305_v29 = vmul.f32 %v4990_v30, %v4986_v21  ;;  %v2503_v63 = vpop.permute.xlu0 %2502 }
0x1606   :  { %v2307_v36 = vpack.c.bf16 %v2305_v29, %v2305_v29 }
0x1607   :  { %v4992_v37 = vpop.eup %4991 }
0x1608   :  { %v2306_v41 = vmul.f32 %v4992_v37, %v4988_v23  ;;  %4644 = vmatmul.mubr.msk.bf16.vlgmr.msra.gmra.mrb[72].mxu1 %vm384_vm2, %v2307_v36 }
0x1609   :  { %4654 = vmatpush3.bf16.msra.mxu1 %v2412_v34  ;;  %4655 = vmatprep.mubr.msk.bf16.mxu1 %vm5038_vm0, %v5035_v0 }
0x160a   :  { %v2308_v42 = vpack.c.bf16 %v2306_v41, %v2306_v41  ;;  %4665 = vmatprep.subr.bf16.mxu1 %v5035_v0 }
0x160c   :  { %4650 = vmatmul.mubr.msk.bf16.vlgmr.msra.gmra.mrb[64].mxu0 %vm384_vm2, %v2308_v42 }
0x160d   :  { %4660 = vmatpush3.bf16.msra.mxu0 %v2459_v43  ;;  %4661 = vmatprep.mubr.msk.bf16.mxu0 %vm5038_vm0, %v5035_v0 }
0x160e   :  { %4671 = vmatprep.subr.bf16.mxu0 %v5035_v0 }
0x1614   :  { %4662 = vmatmul.mubr.msk.bf16.vlgmr.msra.gmra.mrb[68].mxu0 %vm384_vm2, %v2180_v58 }
0x1615   :  { %4673 = vmatprep.mubr.msk.bf16.mxu0 %vm5038_vm0, %v5035_v0 }
0x1616   :  { %4672 = vmatpush3.bf16.xpose.msra.mxu0 %v2560_v46 }
0x1617   :  { %4683 = vmatprep.subr.bf16.mxu0 %v5035_v0 }
0x161d   :  { %4674 = vmatmul.mubr.msk.bf16.vlgmr.msra.gmra.mrb[72].mxu0 %vm384_vm2, %v2553_v47 }
0x161e   :  { %4685 = vmatprep.mubr.msk.bf16.mxu0 %vm5038_vm0, %v5035_v0 }
0x16db   :  { %v2352_v48 = vpop.f32.mrb[72].mxu1 }
0x16dc   :  { %v4645_v49 = vpop.f32.mrb[73].mxu1 }
0x16dd   :  { %v2355_v52 = vpop.f32.mrb[74].mxu1 }
0x16de   :  { %v4646_v50 = vpop.f32.mrb[75].mxu1 }
0x16df   :  { %v2401_v53 = vpop.f32.mrb[64].mxu0 }
0x16e0   :  { %v2407_v56 = vpack.c.bf16 %v2401_v53, %v2352_v48  ;;  %v4651_v58 = vpop.f32.mrb[65].mxu0 }
0x16e1   :  { %v2404_v59 = vpop.f32.mrb[66].mxu0 }
0x16e2   :  { %v4652_v61 = vpop.f32.mrb[67].mxu0  ;;  %4656 = vmatmul.mubr.msk.bf16.vlgmr.msra.gmra.mrb[76].mxu1 %vm384_vm2, %v2407_v56  ;;  %v4120_v56 = vld [vmem:[%s5246_s11 + $0x18] sm:$0xf] }
0x16e3   :  { %4666 = vmatpush3.bf16.xpose.msra.mxu1 %v2510_v60  ;;  %4667 = vmatprep.mubr.msk.bf16.mxu1 %vm5038_vm0, %v5035_v0  ;;  %v2727_v58 = vsel %vm504_vm3, %v4120_v56, 0 }
0x16e4   :  { %4677 = vmatprep.subr.bf16.mxu1 %v5035_v0 }
0x16e7   :  { %v2495_v62 = vpop.f32.mrb[68].mxu0 }
0x16e8   :  { %v4663_v5 = vpop.f32.mrb[69].mxu0 }
0x16e9   :  { %v2498_v2 = vpop.f32.mrb[70].mxu0 }
0x16ea   :  { %v4664_v6 = vpop.f32.mrb[71].mxu0  ;;  %4668 = vmatmul.mubr.msk.bf16.vlgmr.msra.gmra.mrb[80].mxu1 %vm384_vm2, %v2503_v63 }
0x16eb   :  { %4679 = vmatprep.mubr.msk.bf16.mxu1 %vm5038_vm0, %v5035_v0 }
0x16f0   :  { %v2596_v4 = vpop.f32.mrb[72].mxu0 }
0x16f1   :  { %v2597_v35 = vadd.f32 %v2596_v4, %v5187_v55  ;;  %v4675_v9 = vpop.f32.mrb[73].mxu0 }
0x16f2   :  { %v2599_v10 = vpop.f32.mrb[74].mxu0 }
0x16f3   :  { %v4676_v11 = vpop.f32.mrb[75].mxu0  ;;  %v2605_v12 = vsel %vm384_vm2, %v2597_v35, -inf }
0x16f4   :  { %2606 = vmax.xlane.f32.xlu1 %v2605_v12 }
0x1705   :  { %2674 = vrot.lane.b32.xlu1 %v5502_v8, %s5046_s5 }
0x1709   :  { %2774 = vrot.lane.b32.xlu1 %v5485_v51, %s5048_s12 }
0x170d   :  { %2824 = vrot.lane.b32.xlu1 %v5487_v57, %s5048_s12 }
0x1711   :  { %2822 = vrot.lane.b32.xlu1 %v5500_v7, %s5048_s12 }
0x1781   :  { %v2607_v13 = vpop.xlane.xlu1 %2606 }
0x1782   :  { %v2609_v15 = vsub.f32 %v2597_v35, %v2607_v13 }
0x1784   :  { %v2612_v3 = vmul.f32 1.442695, %v2609_v15 }
0x1785   :  { %v2675_v1 = vpop.permute.xlu1 %2674 }
0x1786   :  { %v2680_v14 = vsel %vm504_vm3, %v2675_v1, 0  ;;  %4993 = vpow2.f32 %v2612_v3 }
0x1787   :  { %4684 = vmatpush3.bf16.msra.mxu0 %v2680_v14 }
0x1788   :  { %4695 = vmatprep.subr.bf16.mxu0 %v5035_v0 }
0x1789   :  { %v2775_v38 = vpop.permute.xlu1 %2774 }
0x178a   :  { %v2780_v42 = vsel %vm384_vm2, %v2775_v38, 0 }
0x1790   :  { %v4994_v39 = vpop.eup %4993 }
0x1791   :  { %v2617_v26 = vsel %vm384_vm2, %v4994_v39, 0.0 }
0x17b5   :  { %v2448_v16 = vpop.f32.mrb[76].mxu1 }
0x17b6   :  { %v5619_v17 = vadd.f32 %v2495_v62, %v2448_v16  ;;  %v4657_v18 = vpop.f32.mrb[77].mxu1 }
0x17b7   :  { %v2451_v51 = vpop.f32.mrb[78].mxu1 }
0x17b8   :  { %v5621_v40 = vadd.f32 %v2498_v2, %v2451_v51  ;;  %v4658_v57 = vpop.f32.mrb[79].mxu1  ;;  %v2825_v2 = vpop.permute.xlu1 %2824 }
0x17b9   :  { %v2830_v10 = vsel %vm384_vm2, %v2825_v2, 0 }
0x17bd   :  { %v2546_v20 = vpop.f32.mrb[80].mxu1 }
0x17be   :  { %v2547_v7 = vadd.f32 %v2546_v20, %v5185_v54  ;;  %v4669_v21 = vpop.f32.mrb[81].mxu1 }
0x17bf   :  { %v2549_v22 = vpop.f32.mrb[82].mxu1 }
0x17c0   :  { %v4670_v23 = vpop.f32.mrb[83].mxu1  ;;  %v2602_v25 = vsel %vm384_vm2, %v2547_v7, -inf }
0x17c1   :  { %2603 = vmax.xlane.f32.xlu0 %v2602_v25 }
0x17c5   :  { %2618 = vadd.xlane.f32.xlu0 %v2617_v26 }
0x184e   :  { %v2604_v27 = vpop.xlane.xlu0 %2603 }
0x184f   :  { %v2608_v28 = vsub.f32 %v2547_v7, %v2604_v27 }
0x1851   :  { %v2610_v30 = vmul.f32 1.442695, %v2608_v28 }
0x1852   :  { %v2619_v33 = vpop.xlane.xlu0 %2618 }
0x1853   :  { %4995 = vpow2.f32 %v2610_v30 }
0x1854   :  { %4997 = vrcp.f32 %v2619_v33 }
0x185d   :  { %v4996_v29 = vpop.eup %4995 }
0x185e   :  { %v4998_v36 = vpop.eup %4997  ;;  %v2614_v34 = vsel %vm384_vm2, %v4996_v29, 0.0 }
0x185f   :  { %v2623_v37 = vmul.f32 %v4998_v36, %v4994_v39  ;;  %2615 = vadd.xlane.f32.xlu0 %v2614_v34 }
0x1861   :  { %v2625_v41 = vpack.c.bf16 %v2623_v37, %v2623_v37 }
0x1863   :  { %4686 = vmatmul.mubr.msk.bf16.vlgmr.msra.gmra.mrb[76].mxu0 %vm384_vm2, %v2625_v41 }
0x1864   :  { %4696 = vmatpush3.bf16.xpose.msra.mxu0 %v2780_v42  ;;  %4697 = vmatprep.mubr.msk.bf16.mxu0 %vm5038_vm0, %v5035_v0 }
0x1865   :  { %4707 = vmatprep.subr.bf16.mxu0 %v5035_v0 }
0x1875   :  { %2626 = vrot.lane.b32.xlu0 %v5498_v24, %s5046_s5 }
0x1879   :  { %2772 = vrot.lane.b32.xlu0 %v5496_v19, %s5048_s12 }
0x18ec   :  { %v2616_v43 = vpop.xlane.xlu0 %2615 }
0x18ed   :  { %4999 = vrcp.f32 %v2616_v43  ;;  %v4121_v43 = vld [vmem:[%s5246_s11 + $0x1c] sm:$0xf]  ;;  %s5739_s11 = sld [smem:[%s5870_s0 + %s5059_s26]]  }
0x18ee   :  { %s4066_s26 = sld [smem:[%s5870_s0 + %s5073_s17]]  }
0x18f0   :  { %v2627_v44 = vpop.permute.xlu0 %2626 }
0x18f1   :  { %v2632_v45 = vsel %vm504_vm3, %v2627_v44, 0  ;;  %v2997_v44 = vsel %vm504_vm3, %v4121_v43, 0 }
0x18f2   :  { %4678 = vmatpush3.bf16.msra.mxu1 %v2632_v45 }
0x18f3   :  { %4689 = vmatprep.subr.bf16.mxu1 %v5035_v0 }
0x18f4   :  { %v2773_v46 = vpop.permute.xlu0 %2772 }
0x18f5   :  { %4698 = vmatmul.mubr.msk.bf16.vlgmr.msra.gmra.mrb[80].mxu0 %vm384_vm2, %v2773_v46 }
0x18f6   :  { %4709 = vmatprep.mubr.msk.bf16.mxu0 %vm5038_vm0, %v5035_v0 }
0x18f7   :  { %v5000_v47 = vpop.eup %4999 }
0x18f8   :  { %v2622_v48 = vmul.f32 %v5000_v47, %v4996_v29 }
0x18fa   :  { %v2624_v49 = vpack.c.bf16 %v2622_v48, %v2622_v48 }
0x18fc   :  { %4680 = vmatmul.mubr.msk.bf16.vlgmr.msra.gmra.mrb[84].mxu1 %vm384_vm2, %v2624_v49 }
0x18fd   :  { %4691 = vmatprep.mubr.msk.bf16.mxu1 %vm5038_vm0, %v5035_v0  ;;  %4690 = vmatpush3.bf16.msra.mxu1 %v2727_v58 }
0x18fe   :  { %4701 = vmatprep.subr.bf16.mxu1 %v5035_v0 }
0x1936   :  { %v2716_v19 = vpop.f32.mrb[76].mxu0 }
0x1937   :  { %v4687_v52 = vpop.f32.mrb[77].mxu0 }
0x1938   :  { %v2719_v50 = vpop.f32.mrb[78].mxu0 }
0x1939   :  { %v4688_v53 = vpop.f32.mrb[79].mxu0 }
0x19c8   :  { %v2816_v59 = vpop.f32.mrb[80].mxu0 }
0x19c9   :  { %v2817_v60 = vadd.f32 %v2816_v59, %v5185_v54  ;;  %v4699_v61 = vpop.f32.mrb[81].mxu0  ;;  %v2823_v54 = vpop.permute.xlu1 %2822 }
0x19ca   :  { %v2819_v62 = vpop.f32.mrb[82].mxu0  ;;  %v4170_v61 = vld [vmem:[%s5362_s16 + $0x1] ss:$0 sm:$0xff] }
0x19cb   :  { %v4700_v5 = vpop.f32.mrb[83].mxu0  ;;  %v2872_v63 = vsel %vm384_vm2, %v2817_v60, -inf }
0x19cc   :  { %2873 = vmax.xlane.f32.xlu0 %v2872_v63 }
0x19cf   :  { %v2668_v6 = vpop.f32.mrb[84].mxu1 }
0x19d0   :  { %v2722_v4 = vpack.c.bf16 %v2716_v19, %v2668_v6  ;;  %v4681_v35 = vpop.f32.mrb[85].mxu1 }
0x19d1   :  { %v2671_v9 = vpop.f32.mrb[86].mxu1 }
0x19d2   :  { %v4682_v11 = vpop.f32.mrb[87].mxu1  ;;  %4692 = vmatmul.mubr.msk.bf16.vlgmr.msra.gmra.mrb[88].mxu1 %vm384_vm2, %v2722_v4 }
0x19d3   :  { %4702 = vmatpush3.bf16.xpose.msra.mxu1 %v2830_v10  ;;  %4703 = vmatprep.mubr.msk.bf16.mxu1 %vm5038_vm0, %v5035_v0 }
0x19d4   :  { %4713 = vmatprep.subr.bf16.mxu1 %v5035_v0 }
0x19da   :  { %4704 = vmatmul.mubr.msk.bf16.vlgmr.msra.gmra.mrb[92].mxu1 %vm384_vm2, %v2823_v54 }
0x19db   :  { %4715 = vmatprep.mubr.msk.bf16.mxu1 %vm5038_vm0, %v5035_v0 }
0x1a59   :  { %v2874_v12 = vpop.xlane.xlu0 %2873 }
0x1a5a   :  { %v2878_v13 = vsub.f32 %v2817_v60, %v2874_v12 }
0x1a5c   :  { %v2880_v1 = vmul.f32 1.442695, %v2878_v13 }
0x1a5e   :  { %5001 = vpow2.f32 %v2880_v1 }
0x1a68   :  { %v5002_v14 = vpop.eup %5001 }
0x1a69   :  { %v2884_v15 = vsel %vm384_vm2, %v5002_v14, 0.0 }
0x1a6a   :  { %2885 = vadd.xlane.f32.xlu0 %v2884_v15 }
0x1aa5   :  { %v2763_v3 = vpop.f32.mrb[88].mxu1 }
0x1aa6   :  { %v2770_v16 = vadd.f32 %v2763_v3, %v5619_v17  ;;  %v4693_v18 = vpop.f32.mrb[89].mxu1  ;;  %v4898_v3 = vld [vmem:[%s5375_s22 + $0x10] sm:$0xff]  }
0x1aa7   :  { %v2766_v51 = vpop.f32.mrb[90].mxu1 }
0x1aa8   :  { %v2771_v57 = vadd.f32 %v2766_v51, %v5621_v40  ;;  %v4694_v20 = vpop.f32.mrb[91].mxu1 }
0x1aad   :  { %v2866_v7 = vpop.f32.mrb[92].mxu1 }
0x1aae   :  { %v2867_v21 = vadd.f32 %v2866_v7, %v5187_v55  ;;  %v4705_v22 = vpop.f32.mrb[93].mxu1 }
0x1aaf   :  { %v2869_v23 = vpop.f32.mrb[94].mxu1 }
0x1ab0   :  { %v4706_v25 = vpop.f32.mrb[95].mxu1  ;;  %v2875_v39 = vsel %vm384_vm2, %v2867_v21, -inf  ;;  %v4173_v23 = vld [vmem:[%s5384_s28 + $0x1] ss:$0 sm:$0xff] }
0x1ab1   :  { %2876 = vmax.xlane.f32.xlu1 %v2875_v39 }
0x1ac2   :  { %2944 = vrot.lane.b32.xlu1 %v5502_v8, %s5048_s12 }
0x1af7   :  { %v2886_v33 = vpop.xlane.xlu0 %2885 }
0x1b3e   :  { %v2877_v26 = vpop.xlane.xlu1 %2876 }
0x1b3f   :  { %v2879_v27 = vsub.f32 %v2867_v21, %v2877_v26 }
0x1b41   :  { %v2882_v17 = vmul.f32 1.442695, %v2879_v27 }
0x1b42   :  { %v2945_v28 = vpop.permute.xlu1 %2944 }
0x1b43   :  { %5003 = vpow2.f32 %v2882_v17  ;;  %v2950_v40 = vsel %vm504_vm3, %v2945_v28, 0  ;;  %v4174_v17 = vld [vmem:[%s5389_s3 + $0x1] ss:$0 sm:$0xff]  ;;  %s5061_s3 = smov 24  }
0x1b44   :  { %4714 = vmatpush3.bf16.msra.mxu1 %v2950_v40  ;;  %5005 = vrcp.f32 %v2886_v33  ;;  %v4900_v33 = vld [vmem:[%s5405_s9 + $0x40] sm:$0xff]   ;;  %s5763_s14 = sld [smem:[%s5870_s0 + %s5061_s3]]  }
0x1b45   :  { %4725 = vmatprep.subr.bf16.mxu1 %v5035_v0 }
0x1b4d   :  { %v5004_v55 = vpop.eup %5003 }
0x1b4e   :  { %v2887_v30 = vsel %vm384_vm2, %v5004_v55, 0.0  ;;  %v5006_v8 = vpop.eup %5005 }
0x1b4f   :  { %2888 = vadd.xlane.f32.xlu0 %v2887_v30  ;;  %v2892_v36 = vmul.f32 %v5006_v8, %v5002_v14  ;;  %v4901_v8 = vld [vmem:[%s5405_s9 + $0x48] sm:$0xff]  }
0x1b51   :  { %v2894_v38 = vpack.c.bf16 %v2892_v36, %v2892_v36  ;;  %v4903_v36 = vld [vmem:[%s5405_s9 + $0x58] sm:$0xff]  }
0x1b65   :  { %2896 = vrot.lane.b32.xlu0 %v5498_v24, %s5048_s12  ;;  %s5060_s12 = smov 22  }
0x1b66   :  { %s4055_s28 = sld [smem:[%s5870_s0 + %s5060_s12]]  }
0x1bdc   :  { %v2889_v29 = vpop.xlane.xlu0 %2888 }
0x1bdd   :  { %5007 = vrcp.f32 %v2889_v29  ;;  %v4902_v29 = vld [vmem:[%s5405_s9 + $0x50] sm:$0xff]  }
0x1be0   :  { %v2897_v34 = vpop.permute.xlu0 %2896 }
0x1be1   :  { %v2902_v37 = vsel %vm504_vm3, %v2897_v34, 0  ;;  %v4904_v34 = vld [vmem:[%s5405_s9 + $0x60] sm:$0xff]  }
0x1be2   :  { %4708 = vmatpush3.bf16.msra.mxu0 %v2902_v37  ;;  %v4905_v37 = vld [vmem:[%s5405_s9 + $0x68] sm:$0xff]  }
0x1be3   :  { %4719 = vmatprep.subr.bf16.mxu0 %v5035_v0 }
0x1be5   :  { %4710 = vmatmul.mubr.msk.bf16.vlgmr.msra.gmra.mrb[84].mxu0 %vm384_vm2, %v2894_v38  ;;  %v4906_v38 = vld [vmem:[%s5405_s9 + $0x70] sm:$0xff]  }
0x1be6   :  { %4721 = vmatprep.mubr.msk.bf16.mxu0 %vm5038_vm0, %v5035_v0  ;;  %4720 = vmatpush3.bf16.msra.mxu0 %v2997_v44 }
0x1be7   :  { %v5008_v24 = vpop.eup %5007  ;;  %4733 = vmatprep.subr.bf16.mxu0 %v5035_v0 }
0x1be8   :  { %v2893_v41 = vmul.f32 %v5008_v24, %v5004_v55  ;;  %v4907_v24 = vld [vmem:[%s5405_s9 + $0x78] sm:$0xff]  }
0x1bea   :  { %v2895_v42 = vpack.c.bf16 %v2893_v41, %v2893_v41  ;;  %v4180_v41 = vld [vmem:[%s5426_s18 + $0x1] ss:$0 sm:$0xff]  ;;  %s4060_s18 = sld [smem:[%s5870_s0 + %s5069_s13]]  }
0x1bec   :  { %4716 = vmatmul.mubr.msk.bf16.vlgmr.msra.gmra.mrb[96].mxu1 %vm384_vm2, %v2895_v42 }
0x1bed   :  { %4729 = vmatprep.mubr.msk.bf16.mxu1 %vm5038_vm0, %v5035_v0  ;;  %4726 = vmatpush3.bf16.msra.mxu1 %v4898_v3 }
0x1bee   :  { %4727 = vmatprep.subr.bf16.mxu1 %v5035_v0 }
0x1cb8   :  { %v2938_v45 = vpop.f32.mrb[84].mxu0 }
0x1cb9   :  { %v4711_v46 = vpop.f32.mrb[85].mxu0 }
0x1cba   :  { %v2941_v47 = vpop.f32.mrb[86].mxu0 }
0x1cbb   :  { %v4712_v48 = vpop.f32.mrb[87].mxu0 }
0x1cbf   :  { %v2986_v49 = vpop.f32.mrb[96].mxu1 }
0x1cc0   :  { %v2992_v19 = vpack.c.bf16 %v2986_v49, %v2938_v45  ;;  %v4717_v52 = vpop.f32.mrb[97].mxu1 }
0x1cc1   :  { %v2989_v50 = vpop.f32.mrb[98].mxu1 }
0x1cc2   :  { %v4718_v53 = vpop.f32.mrb[99].mxu1  ;;  %4722 = vmatmul.mubr.msk.bf16.vlgmr.msra.gmra.mrb[88].mxu0 %vm384_vm2, %v2992_v19 }
0x1cc3   :  { %4749 = vmatprep.mubr.msk.bf16.mxu0 %vm5038_vm0, %v5035_v0  ;;  %4734 = vmatpush3.bf16.msra.mxu0 %v4900_v33 }
0x1cc4   :  { %4735 = vmatprep.subr.bf16.mxu0 %v5035_v0 }
0x1cc7   :  { %4736 = vmatpush3.bf16.msra.mxu0 %v4901_v8  ;;  %v4212_v8 = vld [vmem:[%s5451_s2 + $0x1] ss:$0 sm:$0xff]  ;;  %s5064_s2 = smov 21  }
0x1cc8   :  { %4737 = vmatprep.subr.bf16.mxu0 %v5035_v0  ;;  %s4054_s7 = sld [smem:[%s5870_s0 + %s5064_s2]]  }
0x1ccb   :  { %4738 = vmatpush3.bf16.msra.mxu0 %v4902_v29 }
0x1ccc   :  { %4739 = vmatprep.subr.bf16.mxu0 %v5035_v0 }
0x1ccf   :  { %4740 = vmatpush3.bf16.msra.mxu0 %v4903_v36 }
0x1cd0   :  { %4741 = vmatprep.subr.bf16.mxu0 %v5035_v0 }
0x1cd3   :  { %4742 = vmatpush3.bf16.msra.mxu0 %v4904_v34  ;;  %v4213_v34 = vld [vmem:[%s5456_s8 + $0x1] ss:$0 sm:$0xff]  ;;  %s5065_s8 = smov 23  }
0x1cd4   :  { %4743 = vmatprep.subr.bf16.mxu0 %v5035_v0  ;;  %s4056_s21 = sld [smem:[%s5870_s0 + %s5065_s8]]  }
0x1cd7   :  { %4744 = vmatpush3.bf16.msra.mxu0 %v4905_v37 }
0x1cd8   :  { %4745 = vmatprep.subr.bf16.mxu0 %v5035_v0 }
0x1cdb   :  { %4746 = vmatpush3.bf16.msra.mxu0 %v4906_v38 }
0x1cdc   :  { %4747 = vmatprep.subr.bf16.mxu0 %v5035_v0 }
0x1cdf   :  { %4748 = vmatpush3.bf16.msra.mxu0 %v4907_v24 }
0x1ce0   :  { %4785 = vmatprep.subr.bf16.mxu0 %v5035_v0 }
0x1d95   :  { %v3033_v56 = vpop.f32.mrb[88].mxu0 }
0x1d96   :  { %v3040_v58 = vadd.f32 %v3033_v56, %v2770_v16  ;;  %v4723_v59 = vpop.f32.mrb[89].mxu0  ;;  %v4899_v16 = vld [vmem:[%s5375_s22 + $0x18] sm:$0xff]   ;;  %s5068_s22 = smov 31  }
0x1d97   :  { %v3036_v60 = vpop.f32.mrb[90].mxu0  ;;  %4728 = vmatpush3.bf16.msra.mxu1 %v4899_v16  ;;  %s5816_s9 = sld [smem:[%s5870_s0 + %s5068_s22]]  }
0x1d98   :  { %v3042_v62 = vadd.f32 %v3040_v58, %v5460_v31  ;;  %v3041_v5 = vadd.f32 %v3036_v60, %v2771_v57  ;;  %v4724_v63 = vpop.f32.mrb[91].mxu0  ;;  %4753 = vmatprep.subr.bf16.mxu1 %v5035_v0 }
0x1d9a   :  { %v3043_v2 = vadd.f32 %v3041_v5, %v5462_v32  ;;  %v3052_v6 = vadd.f32 %v4170_v61, %v3042_v62 }
0x1d9c   :  { %v3058_v4 = vsel %vm193_vm1, %v3052_v6, 0.0  ;;  %v3053_v35 = vadd.f32 %v4170_v61, %v3043_v2 }
0x1d9d   :  { %3059 = vadd.xlane.f32.xlu1 %v3058_v4 }
0x1d9e   :  { %v3061_v9 = vsel %vm193_vm1, %v3053_v35, 0.0 }
0x1d9f   :  { %3062 = vadd.xlane.f32.xlu0 %v3061_v9 }
0x1e2a   :  { %v3060_v10 = vpop.xlane.xlu1 %3059 }
0x1e2b   :  { %v3064_v11 = vmul.f32 0.03125, %v3060_v10  ;;  %v4201_v10 = vld [vmem:[%s5434_s24 + $0x1] ss:$0 sm:$0xff]  ;;  %s4062_s24 = sld [smem:[%s5870_s0 + %s5070_s19]]  }
0x1e2c   :  { %v3063_v54 = vpop.xlane.xlu0 %3062 }
0x1e2d   :  { %v3066_v12 = vsub.f32 %v3052_v6, %v3064_v11  ;;  %v3065_v13 = vmul.f32 0.03125, %v3063_v54 }
0x1e2f   :  { %v3067_v31 = vsub.f32 %v3053_v35, %v3065_v13  ;;  %v3068_v1 = vmul.f32 %v3066_v12, %v3066_v12 }
0x1e31   :  { %v3070_v14 = vsel %vm193_vm1, %v3068_v1, 0.0  ;;  %v3069_v32 = vmul.f32 %v3067_v31, %v3067_v31 }
0x1e32   :  { %3071 = vadd.xlane.f32.xlu0 %v3070_v14 }
0x1e33   :  { %v3073_v15 = vsel %vm193_vm1, %v3069_v32, 0.0 }
0x1e34   :  { %3074 = vadd.xlane.f32.xlu1 %v3073_v15 }
0x1ebf   :  { %v3072_v18 = vpop.xlane.xlu0 %3071 }
0x1ec0   :  { %v3076_v51 = vmul.f32 0.03125, %v3072_v18 }
0x1ec1   :  { %v3075_v57 = vpop.xlane.xlu1 %3074 }
0x1ec2   :  { %v3078_v20 = vadd.f32 1e-12, %v3076_v51  ;;  %v3077_v7 = vmul.f32 0.03125, %v3075_v57 }
0x1ec4   :  { %5009 = vrsqrt.f32 %v3078_v20  ;;  %v3079_v21 = vadd.f32 1e-12, %v3077_v7 }
0x1ec6   :  { %5011 = vrsqrt.f32 %v3079_v21 }
0x1ece   :  { %v5010_v22 = vpop.eup %5009 }
0x1ecf   :  { %v3082_v25 = vmul.f32 %v5010_v22, %v3066_v12 }
0x1ed0   :  { %v5012_v39 = vpop.eup %5011 }
0x1ed1   :  { %v3090_v26 = vmul.f32 %v4173_v23, %v3082_v25  ;;  %v3083_v27 = vmul.f32 %v5012_v39, %v3067_v31  ;;  %v4908_v39 = vld [vmem:[%s4051_s25] sm:$0xff]  }
0x1ed3   :  { %v3091_v28 = vmul.f32 %v4173_v23, %v3083_v27  ;;  %v5696_v40 = vadd.f32 %v4174_v17, %v3090_v26  ;;  %v4909_v26 = vld [vmem:[%s4051_s25 + $0x8] sm:$0xff]   ;;  %s5066_s25 = smov 28  }
0x1ed4   :  { %s4061_s5 = sld [smem:[%s5870_s0 + %s5066_s25]]  }
0x1ed5   :  { %v5698_v55 = vadd.f32 %v4174_v17, %v3091_v28 }
0x1ed7   :  { %v3107_v30 = vpack.c.bf16 %v5698_v55, %v5696_v40 }
0x1ed9   :  { %4730 = vmatmul.mubr.msk.bf16.vlgmr.msra.gmra.mrb[100].mxu1 %vm193_vm1, %v3107_v30 }
0x1eda   :  { %4757 = vmatprep.mubr.msk.bf16.mxu1 %vm5038_vm0, %v5035_v0  ;;  %4754 = vmatpush3.bf16.msra.mxu1 %v4908_v39 }
0x1edb   :  { %4755 = vmatprep.subr.bf16.mxu1 %v5035_v0 }
0x1ede   :  { %4756 = vmatpush3.bf16.msra.mxu1 %v4909_v26 }
0x1edf   :  { %4761 = vmatprep.subr.bf16.mxu1 %v5035_v0 }
0x1fac   :  { %v3163_v42 = vpop.f32.mrb[100].mxu1 }
0x1fad   :  { %v3164_v43 = vadd.f32 %v4180_v41, %v3163_v42  ;;  %v4731_v44 = vpop.f32.mrb[101].mxu1 }
0x1fae   :  { %v3166_v45 = vpop.f32.mrb[102].mxu1 }
0x1faf   :  { %v3172_v46 = vmul.f32 0.044715, %v3164_v43  ;;  %v3167_v47 = vadd.f32 %v4180_v41, %v3166_v45  ;;  %v4732_v48 = vpop.f32.mrb[103].mxu1  ;;  %v3170_v63 = vmul.f32 0.5, %v3164_v43 }
0x1fb1   :  { %v3174_v49 = vmul.f32 %v3172_v46, %v3164_v43  ;;  %v3173_v19 = vmul.f32 0.044715, %v3167_v47  ;;  %v3171_v2 = vmul.f32 0.5, %v3167_v47 }
0x1fb3   :  { %v3176_v52 = vmul.f32 %v3174_v49, %v3164_v43  ;;  %v3175_v50 = vmul.f32 %v3173_v19, %v3167_v47 }
0x1fb5   :  { %v3178_v53 = vadd.f32 %v3176_v52, %v3164_v43  ;;  %v3177_v56 = vmul.f32 %v3175_v50, %v3167_v47 }
0x1fb7   :  { %v3180_v58 = vmul.f32 0.7978846, %v3178_v53  ;;  %v3179_v59 = vadd.f32 %v3177_v56, %v3167_v47 }
0x1fb9   :  { %5013 = vtanh.f32 %v3180_v58  ;;  %v3181_v60 = vmul.f32 0.7978846, %v3179_v59 }
0x1fbb   :  { %5015 = vtanh.f32 %v3181_v60 }
0x1fc3   :  { %v5014_v61 = vpop.eup %5013 }
0x1fc4   :  { %v3184_v62 = vadd.f32 1.0, %v5014_v61  ;;  %v4910_v61 = vld [vmem:[%s5739_s11] sm:$0xff]  }
0x1fc5   :  { %v5016_v5 = vpop.eup %5015 }
0x1fc6   :  { %v3185_v6 = vadd.f32 1.0, %v5016_v5  ;;  %v3186_v4 = vmul.f32 %v3184_v62, %v3170_v63 }
0x1fc8   :  { %v3187_v35 = vmul.f32 %v3185_v6, %v3171_v2 }
0x1fca   :  { %v3207_v9 = vpack.c.bf16 %v3187_v35, %v3186_v4  ;;  %v4911_v4 = vld [vmem:[%s5739_s11 + $0x8] sm:$0xff]   ;;  %s5067_s11 = smov 30  }
0x1fcb   :  { %s5809_s16 = sld [smem:[%s5870_s0 + %s5067_s11]]  }
0x1fcc   :  { %4750 = vmatmul.mubr.bf16.vlgmr.msra.gmra.mrb[92].mxu0 %v3207_v9 }
0x1fcd   :  { %4787 = vmatprep.mubr.msk.bf16.mxu0 %vm5038_vm0, %v5035_v0 }
0x209f   :  { %v3296_v11 = vpop.f32.mrb[92].mxu0 }
0x20a0   :  { %v3297_v54 = vadd.f32 %v4201_v10, %v3296_v11  ;;  %v4751_v12 = vpop.f32.mrb[93].mxu0 }
0x20a1   :  { %v3299_v13 = vpop.f32.mrb[94].mxu0 }
0x20a2   :  { %v3300_v31 = vadd.f32 %v4201_v10, %v3299_v13  ;;  %v4752_v1 = vpop.f32.mrb[95].mxu0  ;;  %v3303_v14 = vadd.f32 %v3297_v54, %v5696_v40 }
0x20a4   :  { %v3309_v32 = vsel %vm193_vm1, %v3303_v14, 0.0  ;;  %v3304_v15 = vadd.f32 %v3300_v31, %v5698_v55 }
0x20a5   :  { %3310 = vadd.xlane.f32.xlu1 %v3309_v32  ;;  %v4913_v32 = vld [vmem:[%s4055_s28 + $0x8] sm:$0xff]  }
0x20a6   :  { %v3312_v3 = vsel %vm193_vm1, %v3304_v15, 0.0 }
0x20a7   :  { %3313 = vadd.xlane.f32.xlu0 %v3312_v3  ;;  %v4214_v3 = vld [vmem:[%s4052_s1] ss:$0 sm:$0xff] }
0x2132   :  { %v3311_v16 = vpop.xlane.xlu1 %3310 }
0x2133   :  { %v3315_v18 = vmul.f32 0.03125, %v3311_v16 }
0x2134   :  { %v3314_v51 = vpop.xlane.xlu0 %3313 }
0x2135   :  { %v3317_v57 = vsub.f32 %v3303_v14, %v3315_v18  ;;  %v3316_v20 = vmul.f32 0.03125, %v3314_v51  ;;  %v4912_v14 = vld [vmem:[%s4055_s28] sm:$0xff]  }
0x2137   :  { %v3318_v7 = vsub.f32 %v3304_v15, %v3316_v20  ;;  %v3319_v21 = vmul.f32 %v3317_v57, %v3317_v57  ;;  %v4916_v15 = vld [vmem:[%s4059_s20] sm:$0xff]  }
0x2138   :  { %4786 = vmatpush3.bf16.msra.mxu0 %v4916_v15  ;;  %v4230_v15 = vld [vmem:[%s4060_s18] ss:$0 sm:$0xff] }
0x2139   :  { %v3321_v22 = vsel %vm193_vm1, %v3319_v21, 0.0  ;;  %v3320_v23 = vmul.f32 %v3318_v7, %v3318_v7  ;;  %4797 = vmatprep.subr.bf16.mxu0 %v5035_v0 }
0x213a   :  { %3322 = vadd.xlane.f32.xlu1 %v3321_v22 }
0x213b   :  { %v3324_v25 = vsel %vm193_vm1, %v3320_v23, 0.0  ;;  %v4914_v23 = vld [vmem:[%s5763_s14] sm:$0xff]  }
0x213c   :  { %3325 = vadd.xlane.f32.xlu0 %v3324_v25 }
0x21c7   :  { %v3323_v27 = vpop.xlane.xlu1 %3322 }
0x21c8   :  { %v3327_v17 = vmul.f32 0.03125, %v3323_v27 }
0x21c9   :  { %v3326_v28 = vpop.xlane.xlu0 %3325 }
0x21ca   :  { %v3329_v40 = vadd.f32 1e-12, %v3327_v17  ;;  %v3328_v55 = vmul.f32 0.03125, %v3326_v28 }
0x21cc   :  { %5017 = vrsqrt.f32 %v3329_v40  ;;  %v3330_v30 = vadd.f32 1e-12, %v3328_v55  ;;  %v4915_v40 = vld [vmem:[%s5763_s14 + $0x8] sm:$0xff]  }
0x21ce   :  { %5019 = vrsqrt.f32 %v3330_v30 }
0x21d6   :  { %v5018_v33 = vpop.eup %5017 }
0x21d7   :  { %v3333_v29 = vmul.f32 %v5018_v33, %v3317_v57 }
0x21d8   :  { %v5020_v36 = vpop.eup %5019 }
0x21d9   :  { %v3341_v37 = vmul.f32 %v4212_v8, %v3333_v29  ;;  %v3334_v38 = vmul.f32 %v5020_v36, %v3318_v7  ;;  %v4218_v7 = vld [vmem:[%s4054_s7] ss:$0 sm:$0xff] }
0x21da   :  { %v4222_v36 = vld [vmem:[%s4056_s21] ss:$0 sm:$0xff] }
0x21db   :  { %v3349_v24 = vadd.f32 %v4213_v34, %v3341_v37  ;;  %v3342_v41 = vmul.f32 %v4212_v8, %v3334_v38 }
0x21dd   :  { %v3351_v42 = vsel %vm193_vm1, %v3349_v24, 0.0  ;;  %v3350_v43 = vadd.f32 %v4213_v34, %v3342_v41  ;;  %v3373_v46 = vpack.c.bf16 %v3349_v24, %v3349_v24 }
0x21de   :  { %v3352_v44 = vrot.slane %v3351_v42, 4 }
0x21df   :  { %v3358_v45 = vsel %vm193_vm1, %v3350_v43, 0.0  ;;  %v3374_v47 = vpack.c.bf16 %v3350_v43, %v3350_v43  ;;  %v3383_v53 = vunpack.c.l.b16 %v3373_v46 }
0x21e0   :  { %v3353_v48 = vadd.f32 %v3352_v44, %v3351_v42  ;;  %v3359_v49 = vrot.slane %v3358_v45, 4 }
0x21e1   :  { %v3384_v19 = vunpack.c.l.b16 %v3374_v47 }
0x21e2   :  { %v3354_v52 = vrot.slane %v3353_v48, 2  ;;  %v3360_v50 = vadd.f32 %v3359_v49, %v3358_v45 }
0x21e3   :  { %v3385_v56 = vrot.slane %v3384_v19, 7 }
0x21e4   :  { %v3361_v58 = vrot.slane %v3360_v50, 2  ;;  %v3355_v59 = vadd.f32 %v3354_v52, %v3353_v48 }
0x21e5   :  { %v3387_v60 = vsel %vm3386_vm4, %v3385_v56, %v3383_v53 }
0x21e6   :  { %v3388_v62 = vpack.c.b16 %v3387_v60, %v3387_v60  ;;  %v3356_v5 = vrot.slane %v3355_v59, 1  ;;  %v3362_v63 = vadd.f32 %v3361_v58, %v3360_v50 }
0x21e8   :  { %4758 = vmatmul.mubr.msk.bf16.vlgmr.msra.gmra.mrb[104].mxu1 %vm193_vm1, %v3388_v62  ;;  %v3357_v2 = vadd.f32 %v3356_v5, %v3355_v59  ;;  %v3363_v6 = vrot.slane %v3362_v63, 1  ;;  %v3727_v59 = vld [vmem:[%s4061_s5] sm:$0xf]  ;;  %v4926_v62 = vld [vmem:[%s5816_s9 + $0x8] sm:$0xff]   ;;  %v4927_v5 = vld [vmem:[%s5816_s9 + $0x10] sm:$0xff]  }
0x21e9   :  { %4762 = vmatpush3.bf16.msra.mxu1 %v4910_v61  ;;  %4765 = vmatprep.mubr.msk.bf16.mxu1 %vm5038_vm0, %v5035_v0  ;;  %v3740_v60 = vsel %vm504_vm3, %v3727_v59, 0  ;;  %v4925_v61 = vld [vmem:[%s5816_s9] sm:$0xff]  }
0x21ea   :  { %4763 = vmatprep.subr.bf16.mxu1 %v5035_v0  ;;  %v3364_v35 = vadd.f32 %v3363_v6, %v3362_v63  ;;  %v3366_v9 = vmul.f32 0.125, %v3357_v2  ;;  %v4928_v63 = vld [vmem:[%s5816_s9 + $0x18] sm:$0xff]   ;;  %v4929_v2 = vld [vmem:[%s5816_s9 + $0x20] sm:$0xff]   ;;  %v4930_v6 = vld [vmem:[%s5816_s9 + $0x28] sm:$0xff]  }
0x21ec   :  { %v3367_v10 = vmul.f32 0.125, %v3364_v35  ;;  %v3450_v11 = vpack.c.bf16 %v3366_v9, %v3366_v9 }
0x21ed   :  { %4764 = vmatpush3.bf16.msra.mxu1 %v4911_v4  ;;  %v4931_v4 = vld [vmem:[%s5816_s9 + $0x30] sm:$0xff]  }
0x21ee   :  { %v3451_v54 = vpack.c.bf16 %v3367_v10, %v3367_v10  ;;  %4769 = vmatprep.subr.bf16.mxu1 %v5035_v0  ;;  %v3460_v12 = vunpack.c.l.b16 %v3450_v11  ;;  %v4917_v11 = vld [vmem:[%s5809_s16] sm:$0xff]  }
0x21f0   :  { %v3461_v13 = vunpack.c.l.b16 %v3451_v54 }
0x21f2   :  { %v3462_v31 = vsel %vm3386_vm4, %v3461_v13, %v3460_v12  ;;  %v4918_v12 = vld [vmem:[%s5809_s16 + $0x8] sm:$0xff]   ;;  %v4919_v13 = vld [vmem:[%s5809_s16 + $0x10] sm:$0xff]  }
0x21f3   :  { %v3463_v1 = vpack.c.b16 %v3462_v31, %v3462_v31  ;;  %v4920_v31 = vld [vmem:[%s5809_s16 + $0x18] sm:$0xff]  }
0x21f5   :  { %4766 = vmatmul.mubr.msk.bf16.vlgmr.msra.gmra.mrb[108].mxu1 %vm193_vm1, %v3463_v1 }
0x21f6   :  { %4773 = vmatprep.mubr.msk.bf16.mxu1 %vm5038_vm0, %v5035_v0  ;;  %4770 = vmatpush3.bf16.msra.mxu1 %v4912_v14  ;;  %v4922_v14 = vld [vmem:[%s5809_s16 + $0x28] sm:$0xff]  }
0x21f7   :  { %4771 = vmatprep.subr.bf16.mxu1 %v5035_v0 }
0x21fa   :  { %4772 = vmatpush3.bf16.msra.mxu1 %v4913_v32  ;;  %v4923_v32 = vld [vmem:[%s5809_s16 + $0x30] sm:$0xff]  }
0x21fb   :  { %4777 = vmatprep.subr.bf16.mxu1 %v5035_v0 }
0x22bb   :  { %v3438_v16 = vpop.f32.mrb[104].mxu1 }
0x22bc   :  { %v3439_v18 = vadd.f32 %v4214_v3, %v3438_v16  ;;  %v4759_v51 = vpop.f32.mrb[105].mxu1  ;;  %v4924_v3 = vld [vmem:[%s5809_s16 + $0x38] sm:$0xff]  }
0x22bd   :  { %v3441_v57 = vpop.f32.mrb[106].mxu1  ;;  %v4932_v51 = vld [vmem:[%s5816_s9 + $0x38] sm:$0xff]  }
0x22be   :  { %5021 = vtanh.f32 %v3439_v18  ;;  %v4760_v20 = vpop.f32.mrb[107].mxu1  ;;  %v4233_v57 = vld [vmem:[%s4062_s24] ss:$0 sm:$0xff] }
0x22c8   :  { %v5022_v21 = vpop.eup %5021  ;;  %v3513_v22 = vpop.f32.mrb[108].mxu1 }
0x22c9   :  { %v3524_v25 = vpack.c.bf16 %v5022_v21, %v5022_v21  ;;  %v5778_v39 = vadd.f32 %v4218_v7, %v3513_v22  ;;  %v4767_v26 = vpop.f32.mrb[109].mxu1 }
0x22ca   :  { %v3516_v27 = vpop.f32.mrb[110].mxu1 }
0x22cb   :  { %v3649_v17 = vsub.f32 0.0, %v5778_v39  ;;  %v4768_v28 = vpop.f32.mrb[111].mxu1  ;;  %4774 = vmatmul.mubr.msk.bf16.vlgmr.msra.gmra.mrb[112].mxu1 %vm193_vm1, %v3524_v25 }
0x22cc   :  { %4778 = vmatpush3.bf16.msra.mxu1 %v4914_v23  ;;  %4781 = vmatprep.mubr.msk.bf16.mxu1 %vm5038_vm0, %v5035_v0 }
0x22cd   :  { %v3650_v55 = vmul.f32 1.442695, %v3649_v17  ;;  %4779 = vmatprep.subr.bf16.mxu1 %v5035_v0 }
0x22cf   :  { %5023 = vpow2.f32 %v3650_v55 }
0x22d0   :  { %4780 = vmatpush3.bf16.msra.mxu1 %v4915_v40  ;;  %v4251_v40 = vld [vmem:[%s4065_s10] ss:$0 sm:$0xff] }
0x22d1   :  { %4791 = vmatprep.subr.bf16.mxu1 %v5035_v0 }
0x22d3   :  { %4782 = vmatmul.mubr.msk.bf16.vlgmr.msra.gmra.mrb[116].mxu1 %vm193_vm1, %v3463_v1  ;;  %v4921_v1 = vld [vmem:[%s5809_s16 + $0x20] sm:$0xff]  }
0x22d4   :  { %4793 = vmatprep.mubr.msk.bf16.mxu1 %vm5038_vm0, %v5035_v0  ;;  %4792 = vmatpush3.bf16.msra.mxu1 %v3740_v60 }
0x22d5   :  { %4817 = vmatprep.subr.bf16.mxu1 %v5035_v0 }
0x22d9   :  { %v5024_v30 = vpop.eup %5023 }
0x22da   :  { %v3652_v33 = vadd.f32 1.0, %v5024_v30 }
0x22dc   :  { %5025 = vrcp.f32 %v3652_v33 }
0x22e6   :  { %v5026_v8 = vpop.eup %5025 }
0x22e7   :  { %v3670_v29 = vpack.c.bf16 %v5026_v8, %v5026_v8 }
0x22e9   :  { %4788 = vmatmul.mubr.msk.bf16.vlgmr.msra.gmra.mrb[96].mxu0 %vm3683_vm5, %v3670_v29 }
0x22ea   :  { %4813 = vmatprep.mubr.msk.bf16.mxu0 %vm5038_vm0, %v5035_v0  ;;  %4798 = vmatpush3.bf16.msra.mxu0 %v4925_v61 }
0x22eb   :  { %4799 = vmatprep.subr.bf16.mxu0 %v5035_v0 }
0x22ee   :  { %4800 = vmatpush3.bf16.msra.mxu0 %v4926_v62 }
0x22ef   :  { %4801 = vmatprep.subr.bf16.mxu0 %v5035_v0 }
0x22f2   :  { %4802 = vmatpush3.bf16.msra.mxu0 %v4927_v5 }
0x22f3   :  { %4803 = vmatprep.subr.bf16.mxu0 %v5035_v0 }
0x22f6   :  { %4804 = vmatpush3.bf16.msra.mxu0 %v4928_v63 }
0x22f7   :  { %4805 = vmatprep.subr.bf16.mxu0 %v5035_v0 }
0x22fa   :  { %4806 = vmatpush3.bf16.msra.mxu0 %v4929_v2 }
0x22fb   :  { %4807 = vmatprep.subr.bf16.mxu0 %v5035_v0 }
0x22fe   :  { %4808 = vmatpush3.bf16.msra.mxu0 %v4930_v6 }
0x22ff   :  { %4809 = vmatprep.subr.bf16.mxu0 %v5035_v0 }
0x2302   :  { %4810 = vmatpush3.bf16.msra.mxu0 %v4931_v4 }
0x2303   :  { %4811 = vmatprep.subr.bf16.mxu0 %v5035_v0 }
0x2306   :  { %4812 = vmatpush3.bf16.msra.mxu0 %v4932_v51 }
0x239e   :  { %v3580_v34 = vpop.f32.mrb[112].mxu1 }
0x239f   :  { %v3581_v37 = vadd.f32 %v4222_v36, %v3580_v34  ;;  %v4775_v38 = vpop.f32.mrb[113].mxu1 }
0x23a0   :  { %v3583_v24 = vpop.f32.mrb[114].mxu1 }
0x23a1   :  { %v4776_v41 = vpop.f32.mrb[115].mxu1  ;;  %v3656_v42 = vsel %vm3655_vm6, %v3581_v37, -inf }
0x23a2   :  { %3657 = vmax.xlane.f32.xlu0 %v3656_v42  ;;  %v4226_v42 = vld [vmem:[%s4058_s6] ss:$0 sm:$0xff] }
0x23a6   :  { %v5797_v43 = vpop.f32.mrb[116].mxu1 }
0x23a7   :  { %v4783_v44 = vpop.f32.mrb[117].mxu1 }
0x23a8   :  { %v3646_v45 = vpop.f32.mrb[118].mxu1 }
0x23a9   :  { %v4784_v46 = vpop.f32.mrb[119].mxu1 }
0x23b8   :  { %4012 = vrot.lane.b32.xlu0 %v3581_v37, %s5056_s27 }
0x23bc   :  { %v5800_v47 = vpop.f32.mrb[96].mxu0 }
0x23bd   :  { %v4789_v48 = vpop.f32.mrb[97].mxu0  ;;  %v3722_v16 = vadd.f32 %v4230_v15, %v5800_v47  ;;  %v3644_v47 = vadd.f32 %v4226_v42, %v5797_v43 }
0x23be   :  { %v3724_v49 = vpop.f32.mrb[98].mxu0 }
0x23bf   :  { %v4790_v19 = vpop.f32.mrb[99].mxu0  ;;  %v3798_v18 = vpack.c.bf16 %v3722_v16, %v3722_v16 }
0x242f   :  { %v3658_v52 = vpop.xlane.xlu0 %3657 }
0x2430   :  { %v3659_v50 = vsub.f32 %v3581_v37, %v3658_v52 }
0x2432   :  { %v3660_v53 = vmul.f32 1.442695, %v3659_v50 }
0x2433   :  { %v4013_v44 = vpop.permute.xlu0 %4012 }
0x2434   :  { %5027 = vpow2.f32 %v3660_v53  ;;  %v4015_v48 = vsel %vm3683_vm5, %v5778_v39, %v4013_v44 }
0x2435   :  { %v4017_v52 = vsel %vm4016_vm7, %v4015_v48, 0.0 }
0x243e   :  { %v5028_v56 = vpop.eup %5027 }
0x243f   :  { %v3662_v58 = vsel %vm3655_vm6, %v5028_v56, 0.0 }
0x2440   :  { %3663 = vadd.xlane.f32.xlu1 %v3662_v58 }
0x24cd   :  { %v3664_v35 = vpop.xlane.xlu1 %3663 }
0x24ce   :  { %5029 = vrcp.f32 %v3664_v35 }
0x24d8   :  { %v5030_v9 = vpop.eup %5029 }
0x24d9   :  { %v3666_v10 = vmul.f32 %v5030_v9, %v5028_v56 }
0x24db   :  { %v3729_v54 = vpack.c.bf16 %v3666_v10, %v3666_v10 }
0x24dd   :  { %4794 = vmatmul.mubr.msk.bf16.vlgmr.msra.gmra.mrb[120].mxu1 %vm384_vm2, %v3729_v54 }
0x24de   :  { %4818 = vmatpush3.bf16.msra.mxu1 %v4917_v11  ;;  %4833 = vmatprep.mubr.msk.bf16.mxu1 %vm5038_vm0, %v5035_v0 }
0x24df   :  { %4819 = vmatprep.subr.bf16.mxu1 %v5035_v0 }
0x24e2   :  { %4820 = vmatpush3.bf16.msra.mxu1 %v4918_v12 }
0x24e3   :  { %4821 = vmatprep.subr.bf16.mxu1 %v5035_v0 }
0x24e6   :  { %4822 = vmatpush3.bf16.msra.mxu1 %v4919_v13 }
0x24e7   :  { %4823 = vmatprep.subr.bf16.mxu1 %v5035_v0 }
0x24ea   :  { %4824 = vmatpush3.bf16.msra.mxu1 %v4920_v31 }
0x24eb   :  { %4825 = vmatprep.subr.bf16.mxu1 %v5035_v0 }
0x24ee   :  { %4826 = vmatpush3.bf16.msra.mxu1 %v4921_v1 }
0x24ef   :  { %4827 = vmatprep.subr.bf16.mxu1 %v5035_v0 }
0x24f2   :  { %4828 = vmatpush3.bf16.msra.mxu1 %v4922_v14 }
0x24f3   :  { %4829 = vmatprep.subr.bf16.mxu1 %v5035_v0 }
0x24f6   :  { %4830 = vmatpush3.bf16.msra.mxu1 %v4923_v32 }
0x24f7   :  { %4831 = vmatprep.subr.bf16.mxu1 %v5035_v0 }
0x24fa   :  { %4832 = vmatpush3.bf16.msra.mxu1 %v4924_v3 }
0x24fd   :  { %4834 = vmatmul.mubr.bf16.vlgmr.msra.gmra.mrb[124].mxu1 %v3798_v18 }
0x25b0   :  { %v3776_v20 = vpop.f32.mrb[120].mxu1 }
0x25b1   :  { %v3777_v7 = vadd.f32 %v4233_v57, %v3776_v20  ;;  %v4795_v21 = vpop.f32.mrb[121].mxu1 }
0x25b2   :  { %v3779_v22 = vpop.f32.mrb[122].mxu1 }
0x25b3   :  { %v3815_v23 = vpack.c.bf16 %v3777_v7, %v3777_v7  ;;  %v4796_v25 = vpop.f32.mrb[123].mxu1 }
0x25b5   :  { %4814 = vmatmul.mubr.bf16.vlgmr.msra.gmra.mrb[100].mxu0 %v3815_v23 }
0x25d0   :  { %v3986_v26 = vpop.f32.mrb[124].mxu1 }
0x25d1   :  { %v4835_v0 = vpop.f32.mrb[125].mxu1 }
0x25d2   :  { %v3989_v27 = vpop.f32.mrb[126].mxu1 }
0x25d3   :  { %v4836_v17 = vpop.f32.mrb[127].mxu1 }
0x2688   :  { %v3898_v28 = vpop.f32.mrb[100].mxu0 }
0x2689   :  { %v3987_v55 = vadd.f32 %v3986_v26, %v3898_v28  ;;  %v4815_v30 = vpop.f32.mrb[101].mxu0 }
0x268a   :  { %v3901_v33 = vpop.f32.mrb[102].mxu0 }
0x268b   :  { %v3999_v8 = vadd.f32 %v4251_v40, %v3987_v55  ;;  %v4816_v29 = vpop.f32.mrb[103].mxu0 }
0x268d   :  { %v4000_v36 = vsub.f32 0.0, %v3999_v8 }
0x268f   :  { %v4001_v34 = vmul.f32 1.442695, %v4000_v36 }
0x2691   :  { %5031 = vpow2.f32 %v4001_v34 }
0x269b   :  { %v5032_v37 = vpop.eup %5031 }
0x269c   :  { %v4003_v38 = vadd.f32 1.0, %v5032_v37 }
0x269e   :  { %5033 = vrcp.f32 %v4003_v38 }
0x26a8   :  { %v5034_v24 = vpop.eup %5033 }
0x26a9   :  { %v4007_v41 = vsub.f32 1.0, %v5034_v24  ;;  %v4006_v45 = vmul.f32 %v5034_v24, %v3722_v16 }
0x26ab   :  { %v4008_v46 = vmul.f32 %v4007_v41, %v3777_v7 }
0x26ad   :  { %v4009_v49 = vadd.f32 %v4008_v46, %v4006_v45 }
0x26af   :  { %v4010_v19 = vadd.f32 %v4009_v49, %v3644_v47 }
0x26b1   :  { %v4020_v50 = vcombine.low %v4017_v52, %v4010_v19 }
0x26b3   :  { %4252 = vst.sshfl [vmem:[%s4066_s26] sm:$0x33 pattern:$0x76325410] %v4020_v50 }

</bundles_post_ra>
